<compile_context>
chip_gen: v6e
topology: v6e:2x2x1
jax: 0.10.0
libtpu: 0.0.40
codegen_flags: <defaults>
</compile_context>

<pallas_src>
import jax
import jax.numpy as jnp
from jax.experimental import pallas as pl
from jax.experimental.pallas import tpu as pltpu

EPS = 1e-5
LANE = 128
HIDDEN = (256, 512, 1024)  # lin1 / lin2 / lin3 output widths


def _round_up(n, m):
    return (n + m - 1) // m * m


def _generator_kernel(x_ref, w1_ref, gb_ref,          # VMEM inputs
                      w2_hbm, w3_hbm, w4_hbm,         # HBM (pl.ANY) inputs
                      o_ref,                          # VMEM output
                      w2_buf, w3_buf, w4_buf, dma_sem):  # scratch
    """Fused Generator forward: 3x (lin -> bn -> relu) + lin -> bn -> sigmoid.

    Large weights are fetched with manual async DMAs that overlap the earlier
    layers' compute; each copy is waited on immediately before its matmul.
    """
    cp2 = pltpu.make_async_copy(w2_hbm, w2_buf, dma_sem.at[0])
    cp3 = pltpu.make_async_copy(w3_hbm, w3_buf, dma_sem.at[1])
    cp4 = pltpu.make_async_copy(w4_hbm, w4_buf, dma_sem.at[2])
    cp2.start()
    cp3.start()
    cp4.start()

    gb = gb_ref[...]  # (8, 1024) f32: rows 0..3 gamma per layer, rows 4..7 beta

    def lin_bn_act(h, w, gamma, beta, act):
        # Linear, no bias (a pre-BN per-feature bias cancels exactly when the
        # batch mean is subtracted in training-mode BatchNorm).
        y = jnp.dot(h.astype(jnp.bfloat16), w, preferred_element_type=jnp.float32)
        # BatchNorm1d, training mode: batch mean, biased batch variance.
        mean = jnp.mean(y, axis=0, keepdims=True)
        diff = y - mean
        var = jnp.mean(diff * diff, axis=0, keepdims=True)
        # Fold gamma into the normalization scale: (1,N) work, not (B,N).
        scale = gamma * jax.lax.rsqrt(var + EPS)
        z = diff * scale + beta
        if act == "relu":
            return jnp.maximum(z, 0.0)
        return jax.nn.sigmoid(z)

    n1 = w1_ref.shape[1]
    n2 = w2_buf.shape[1]
    n3 = w3_buf.shape[1]
    n4 = w4_buf.shape[1]

    h = x_ref[...].astype(jnp.float32)
    h = lin_bn_act(h, w1_ref[...], gb[0:1, :n1], gb[4:5, :n1], "relu")
    cp2.wait()
    h = lin_bn_act(h, w2_buf[...], gb[1:2, :n2], gb[5:6, :n2], "relu")
    cp3.wait()
    h = lin_bn_act(h, w3_buf[...], gb[2:3, :n3], gb[6:7, :n3], "relu")
    cp4.wait()
    h = lin_bn_act(h, w4_buf[...], gb[3:4, :n4], gb[7:8, :n4], "sigmoid")
    o_ref[...] = h.astype(o_ref.dtype)


def init_generator_params(key, in_feats_size, out_feats_size):
    """Deterministic init matching the PyTorch module's layer shapes.

    nn.Linear default W init: U(-1/sqrt(fan_in), 1/sqrt(fan_in)).  The Linear
    bias is omitted (exact no-op under training-mode BatchNorm).  BatchNorm1d
    defaults gamma=1, beta=0 are packed into one (8, 1024) slab: rows 0..3
    gamma per layer, rows 4..7 beta per layer (zero on padded columns).
    Weights are pre-transposed to (in, out) and stored bf16; the last layer's
    output dim is zero-padded up to a multiple of 128 (784 -> 896).
    """
    sizes = [(in_feats_size, HIDDEN[0]), (HIDDEN[0], HIDDEN[1]),
             (HIDDEN[1], HIDDEN[2]), (HIDDEN[2], out_feats_size)]
    out_pad = _round_up(out_feats_size, LANE)
    gb_width = max(HIDDEN[2], out_pad)
    ws = []
    gb = jnp.zeros((8, gb_width), jnp.float32)
    for li, (fin, fout) in enumerate(sizes):
        key, kw = jax.random.split(key)
        bound = 1.0 / (fin ** 0.5)
        w = jax.random.uniform(kw, (fin, fout), jnp.float32, -bound, bound)
        fpad = out_pad if li == len(sizes) - 1 else fout
        if fpad != fout:
            w = jnp.pad(w, ((0, 0), (0, fpad - fout)))
        ws.append(w.astype(jnp.bfloat16))
        gb = gb.at[li, :fout].set(1.0)   # gamma = 1 on real columns only
        # beta rows (4..7) stay 0 == nn.BatchNorm1d default
    return ws, gb


def generator_forward(x, ws, gb, out_feats_size):
    """Single fused pallas_call for the whole Generator."""
    B = x.shape[0]
    out_pad = ws[3].shape[1]  # padded last-layer width (multiple of 128)

    vmem = pl.BlockSpec(memory_space=pltpu.VMEM)
    hbm = pl.BlockSpec(memory_space=pl.ANY)

    # TODO(synk): for repeated GAN sampling, keep the weights VMEM-resident
    # across calls (or quantize w3/w4 to int8 on v5e/v6e) to shrink the
    # per-call weight fetch further.
    out = pl.pallas_call(
        _generator_kernel,
        out_shape=jax.ShapeDtypeStruct((B, out_pad), jnp.bfloat16),
        in_specs=[vmem, vmem, vmem, hbm, hbm, hbm],
        out_specs=vmem,
        scratch_shapes=[
            pltpu.VMEM(ws[1].shape, jnp.bfloat16),
            pltpu.VMEM(ws[2].shape, jnp.bfloat16),
            pltpu.VMEM(ws[3].shape, jnp.bfloat16),
            pltpu.SemaphoreType.DMA((3,)),
        ],
        compiler_params=pltpu.CompilerParams(vmem_limit_bytes=32 * 1024 * 1024),
    )(x, ws[0], gb, ws[1], ws[2], ws[3])
    return out[:, :out_feats_size]  # slice padded 896 -> 784 (module semantics)


def _reference_forward(x, ws, gb, out_feats_size):
    """Pure-JAX reference with the same bf16 weights / f32 math (parity check)."""
    acts = ["relu", "relu", "relu", "sigmoid"]
    h = x.astype(jnp.float32)
    for li, (w, act) in enumerate(zip(ws, acts)):
        n = w.shape[1]
        y = jnp.dot(h.astype(jnp.bfloat16), w, preferred_element_type=jnp.float32)
        mean = jnp.mean(y, axis=0, keepdims=True)
        var = jnp.mean((y - mean) ** 2, axis=0, keepdims=True)
        g = gb[li:li + 1, :n]
        b = gb[li + 4:li + 5, :n]
        z = g * ((y - mean) * jax.lax.rsqrt(var + EPS)) + b
        h = jnp.maximum(z, 0.0) if act == "relu" else jax.nn.sigmoid(z)
    return h[:, :out_feats_size]


if __name__ == "__main__":
    key = jax.random.PRNGKey(0)
    k_params, k_x = jax.random.split(key)

    B = 16           # multiple of 16 (bf16 LHS packs 2 rows/sublane); >=2 for BN
    IN_FEATS = 64    # size of the input noise vector
    OUT_FEATS = 784  # 28x28 MNIST image flattened

    ws, gb = init_generator_params(k_params, IN_FEATS, OUT_FEATS)
    x = jax.random.normal(k_x, (B, IN_FEATS), jnp.float32)

    out = generator_forward(x, ws, gb, OUT_FEATS)
    out = jax.block_until_ready(out)

    assert out.shape == (B, OUT_FEATS), out.shape
    out_f32 = out.astype(jnp.float32)
    assert bool(jnp.all(jnp.isfinite(out_f32)))
    assert bool(jnp.all((out_f32 >= 0.0) & (out_f32 <= 1.0)))  # sigmoid range

    ref = _reference_forward(x, ws, gb, OUT_FEATS)
    err = float(jnp.max(jnp.abs(out_f32 - ref)))
    assert err < 2e-2, err

    print("KERNEL_OK")
</pallas_src>

<mosaic_0001>
module attributes {stable_mosaic.version = 11 : i64} {
  func.func @_generator_kernel(%arg0: memref<16x64xf32, #tpu.memory_space<vmem>>, %arg1: memref<64x256xbf16, #tpu.memory_space<vmem>>, %arg2: memref<8x1024xf32, #tpu.memory_space<vmem>>, %arg3: memref<256x512xbf16, #tpu.memory_space<any>>, %arg4: memref<512x1024xbf16, #tpu.memory_space<any>>, %arg5: memref<1024x896xbf16, #tpu.memory_space<any>>, %arg6: memref<16x896xbf16, #tpu.memory_space<vmem>>, %arg7: memref<256x512xbf16, #tpu.memory_space<vmem>>, %arg8: memref<512x1024xbf16, #tpu.memory_space<vmem>>, %arg9: memref<1024x896xbf16, #tpu.memory_space<vmem>>, %arg10: memref<3x!tpu.dma_semaphore, #tpu.memory_space<semaphore_mem>>) attributes {dimension_semantics = [], scalar_prefetch = 0 : i64, scratch_operands = 4 : i64, tpu.core_type = #tpu.core_type<tc>} {
    %c0_i32 = arith.constant 0 : i32
    %0 = tpu.memref_slice %arg10[%c0_i32] : memref<3x!tpu.dma_semaphore, #tpu.memory_space<semaphore_mem>> -> memref<1x!tpu.dma_semaphore, #tpu.memory_space<semaphore_mem>>
    %1 = tpu.memref_squeeze %0 : memref<1x!tpu.dma_semaphore, #tpu.memory_space<semaphore_mem>> -> memref<!tpu.dma_semaphore, #tpu.memory_space<semaphore_mem>>
    tpu.enqueue_dma source(%arg3 : memref<256x512xbf16, #tpu.memory_space<any>>) target(%arg7 : memref<256x512xbf16, #tpu.memory_space<vmem>>) target_semaphore(%1 : memref<!tpu.dma_semaphore, #tpu.memory_space<semaphore_mem>>)
    %c1_i32 = arith.constant 1 : i32
    %2 = tpu.memref_slice %arg10[%c1_i32] : memref<3x!tpu.dma_semaphore, #tpu.memory_space<semaphore_mem>> -> memref<1x!tpu.dma_semaphore, #tpu.memory_space<semaphore_mem>>
    %3 = tpu.memref_squeeze %2 : memref<1x!tpu.dma_semaphore, #tpu.memory_space<semaphore_mem>> -> memref<!tpu.dma_semaphore, #tpu.memory_space<semaphore_mem>>
    tpu.enqueue_dma source(%arg4 : memref<512x1024xbf16, #tpu.memory_space<any>>) target(%arg8 : memref<512x1024xbf16, #tpu.memory_space<vmem>>) target_semaphore(%3 : memref<!tpu.dma_semaphore, #tpu.memory_space<semaphore_mem>>)
    %c2_i32 = arith.constant 2 : i32
    %4 = tpu.memref_slice %arg10[%c2_i32] : memref<3x!tpu.dma_semaphore, #tpu.memory_space<semaphore_mem>> -> memref<1x!tpu.dma_semaphore, #tpu.memory_space<semaphore_mem>>
    %5 = tpu.memref_squeeze %4 : memref<1x!tpu.dma_semaphore, #tpu.memory_space<semaphore_mem>> -> memref<!tpu.dma_semaphore, #tpu.memory_space<semaphore_mem>>
    tpu.enqueue_dma source(%arg5 : memref<1024x896xbf16, #tpu.memory_space<any>>) target(%arg9 : memref<1024x896xbf16, #tpu.memory_space<vmem>>) target_semaphore(%5 : memref<!tpu.dma_semaphore, #tpu.memory_space<semaphore_mem>>)
    %c0 = arith.constant 0 : index
    %c0_0 = arith.constant 0 : index
    %6 = vector.load %arg2[%c0, %c0_0] : memref<8x1024xf32, #tpu.memory_space<vmem>>, vector<8x1024xf32>
    %c0_1 = arith.constant 0 : index
    %c0_2 = arith.constant 0 : index
    %7 = vector.load %arg0[%c0_1, %c0_2] : memref<16x64xf32, #tpu.memory_space<vmem>>, vector<16x64xf32>
    %c0_3 = arith.constant 0 : index
    %c0_4 = arith.constant 0 : index
    %8 = vector.load %arg1[%c0_3, %c0_4] : memref<64x256xbf16, #tpu.memory_space<vmem>>, vector<64x256xbf16>
    %9 = vector.extract_strided_slice %6 {offsets = [0, 0], sizes = [1, 256], strides = [1, 1]} : vector<8x1024xf32> to vector<1x256xf32>
    %10 = vector.extract_strided_slice %6 {offsets = [4, 0], sizes = [1, 256], strides = [1, 1]} : vector<8x1024xf32> to vector<1x256xf32>
    %11 = arith.truncf %7 : vector<16x64xf32> to vector<16x64xbf16>
    %cst = arith.constant dense<0.000000e+00> : vector<16x256xf32>
    %12 = tpu.matmul %11, %8, %cst {dimension_numbers = #tpu.dot_dimension_numbers<[1], [0], [0], [1], [0, 0, 1, 1], [], []>} : vector<16x64xbf16>, vector<64x256xbf16>, vector<16x256xf32> -> vector<16x256xf32>
    %cst_5 = arith.constant dense<0.000000e+00> : vector<256xf32>
    %13 = vector.multi_reduction <add>, %12, %cst_5 [0] : vector<16x256xf32> to vector<256xf32>
    %14 = vector.shape_cast %13 : vector<256xf32> to vector<1x256xf32>
    %cst_6 = arith.constant 1.600000e+01 : f32
    %15 = vector.broadcast %cst_6 : f32 to vector<1x256xf32>
    %16 = arith.divf %14, %15 : vector<1x256xf32>
    %17 = vector.broadcast %16 : vector<1x256xf32> to vector<16x256xf32>
    %18 = arith.subf %12, %17 : vector<16x256xf32>
    %19 = arith.mulf %18, %18 : vector<16x256xf32>
    %cst_7 = arith.constant dense<0.000000e+00> : vector<256xf32>
    %20 = vector.multi_reduction <add>, %19, %cst_7 [0] : vector<16x256xf32> to vector<256xf32>
    %21 = vector.shape_cast %20 : vector<256xf32> to vector<1x256xf32>
    %cst_8 = arith.constant 1.600000e+01 : f32
    %22 = vector.broadcast %cst_8 : f32 to vector<1x256xf32>
    %23 = arith.divf %21, %22 : vector<1x256xf32>
    %cst_9 = arith.constant 9.99999974E-6 : f32
    %24 = vector.broadcast %cst_9 : f32 to vector<1x256xf32>
    %25 = arith.addf %23, %24 : vector<1x256xf32>
    %26 = math.rsqrt %25 : vector<1x256xf32>
    %27 = arith.mulf %9, %26 : vector<1x256xf32>
    %28 = vector.broadcast %27 : vector<1x256xf32> to vector<16x256xf32>
    %29 = arith.mulf %18, %28 : vector<16x256xf32>
    %30 = vector.broadcast %10 : vector<1x256xf32> to vector<16x256xf32>
    %31 = arith.addf %29, %30 : vector<16x256xf32>
    %cst_10 = arith.constant 0.000000e+00 : f32
    %32 = vector.broadcast %cst_10 : f32 to vector<16x256xf32>
    %33 = arith.maximumf %31, %32 : vector<16x256xf32>
    %c0_i32_11 = arith.constant 0 : i32
    %34 = tpu.memref_slice %arg10[%c0_i32_11] : memref<3x!tpu.dma_semaphore, #tpu.memory_space<semaphore_mem>> -> memref<1x!tpu.dma_semaphore, #tpu.memory_space<semaphore_mem>>
    %35 = tpu.memref_squeeze %34 : memref<1x!tpu.dma_semaphore, #tpu.memory_space<semaphore_mem>> -> memref<!tpu.dma_semaphore, #tpu.memory_space<semaphore_mem>>
    tpu.wait_dma2 semaphore(%35 : memref<!tpu.dma_semaphore, #tpu.memory_space<semaphore_mem>>) src(%arg3 : memref<256x512xbf16, #tpu.memory_space<any>>) dst(%arg7 : memref<256x512xbf16, #tpu.memory_space<vmem>>)
    %c0_12 = arith.constant 0 : index
    %c0_13 = arith.constant 0 : index
    %36 = vector.load %arg7[%c0_12, %c0_13] : memref<256x512xbf16, #tpu.memory_space<vmem>>, vector<256x512xbf16>
    %37 = vector.extract_strided_slice %6 {offsets = [1, 0], sizes = [1, 512], strides = [1, 1]} : vector<8x1024xf32> to vector<1x512xf32>
    %38 = vector.extract_strided_slice %6 {offsets = [5, 0], sizes = [1, 512], strides = [1, 1]} : vector<8x1024xf32> to vector<1x512xf32>
    %39 = arith.truncf %33 : vector<16x256xf32> to vector<16x256xbf16>
    %cst_14 = arith.constant dense<0.000000e+00> : vector<16x512xf32>
    %40 = tpu.matmul %39, %36, %cst_14 {dimension_numbers = #tpu.dot_dimension_numbers<[1], [0], [0], [1], [0, 0, 1, 1], [], []>} : vector<16x256xbf16>, vector<256x512xbf16>, vector<16x512xf32> -> vector<16x512xf32>
    %cst_15 = arith.constant dense<0.000000e+00> : vector<512xf32>
    %41 = vector.multi_reduction <add>, %40, %cst_15 [0] : vector<16x512xf32> to vector<512xf32>
    %42 = vector.shape_cast %41 : vector<512xf32> to vector<1x512xf32>
    %cst_16 = arith.constant 1.600000e+01 : f32
    %43 = vector.broadcast %cst_16 : f32 to vector<1x512xf32>
    %44 = arith.divf %42, %43 : vector<1x512xf32>
    %45 = vector.broadcast %44 : vector<1x512xf32> to vector<16x512xf32>
    %46 = arith.subf %40, %45 : vector<16x512xf32>
    %47 = arith.mulf %46, %46 : vector<16x512xf32>
    %cst_17 = arith.constant dense<0.000000e+00> : vector<512xf32>
    %48 = vector.multi_reduction <add>, %47, %cst_17 [0] : vector<16x512xf32> to vector<512xf32>
    %49 = vector.shape_cast %48 : vector<512xf32> to vector<1x512xf32>
    %cst_18 = arith.constant 1.600000e+01 : f32
    %50 = vector.broadcast %cst_18 : f32 to vector<1x512xf32>
    %51 = arith.divf %49, %50 : vector<1x512xf32>
    %cst_19 = arith.constant 9.99999974E-6 : f32
    %52 = vector.broadcast %cst_19 : f32 to vector<1x512xf32>
    %53 = arith.addf %51, %52 : vector<1x512xf32>
    %54 = math.rsqrt %53 : vector<1x512xf32>
    %55 = arith.mulf %37, %54 : vector<1x512xf32>
    %56 = vector.broadcast %55 : vector<1x512xf32> to vector<16x512xf32>
    %57 = arith.mulf %46, %56 : vector<16x512xf32>
    %58 = vector.broadcast %38 : vector<1x512xf32> to vector<16x512xf32>
    %59 = arith.addf %57, %58 : vector<16x512xf32>
    %cst_20 = arith.constant 0.000000e+00 : f32
    %60 = vector.broadcast %cst_20 : f32 to vector<16x512xf32>
    %61 = arith.maximumf %59, %60 : vector<16x512xf32>
    %c1_i32_21 = arith.constant 1 : i32
    %62 = tpu.memref_slice %arg10[%c1_i32_21] : memref<3x!tpu.dma_semaphore, #tpu.memory_space<semaphore_mem>> -> memref<1x!tpu.dma_semaphore, #tpu.memory_space<semaphore_mem>>
    %63 = tpu.memref_squeeze %62 : memref<1x!tpu.dma_semaphore, #tpu.memory_space<semaphore_mem>> -> memref<!tpu.dma_semaphore, #tpu.memory_space<semaphore_mem>>
    tpu.wait_dma2 semaphore(%63 : memref<!tpu.dma_semaphore, #tpu.memory_space<semaphore_mem>>) src(%arg4 : memref<512x1024xbf16, #tpu.memory_space<any>>) dst(%arg8 : memref<512x1024xbf16, #tpu.memory_space<vmem>>)
    %c0_22 = arith.constant 0 : index
    %c0_23 = arith.constant 0 : index
    %64 = vector.load %arg8[%c0_22, %c0_23] : memref<512x1024xbf16, #tpu.memory_space<vmem>>, vector<512x1024xbf16>
    %65 = vector.extract_strided_slice %6 {offsets = [2, 0], sizes = [1, 1024], strides = [1, 1]} : vector<8x1024xf32> to vector<1x1024xf32>
    %66 = vector.extract_strided_slice %6 {offsets = [6, 0], sizes = [1, 1024], strides = [1, 1]} : vector<8x1024xf32> to vector<1x1024xf32>
    %67 = arith.truncf %61 : vector<16x512xf32> to vector<16x512xbf16>
    %cst_24 = arith.constant dense<0.000000e+00> : vector<16x1024xf32>
    %68 = tpu.matmul %67, %64, %cst_24 {dimension_numbers = #tpu.dot_dimension_numbers<[1], [0], [0], [1], [0, 0, 1, 1], [], []>} : vector<16x512xbf16>, vector<512x1024xbf16>, vector<16x1024xf32> -> vector<16x1024xf32>
    %cst_25 = arith.constant dense<0.000000e+00> : vector<1024xf32>
    %69 = vector.multi_reduction <add>, %68, %cst_25 [0] : vector<16x1024xf32> to vector<1024xf32>
    %70 = vector.shape_cast %69 : vector<1024xf32> to vector<1x1024xf32>
    %cst_26 = arith.constant 1.600000e+01 : f32
    %71 = vector.broadcast %cst_26 : f32 to vector<1x1024xf32>
    %72 = arith.divf %70, %71 : vector<1x1024xf32>
    %73 = vector.broadcast %72 : vector<1x1024xf32> to vector<16x1024xf32>
    %74 = arith.subf %68, %73 : vector<16x1024xf32>
    %75 = arith.mulf %74, %74 : vector<16x1024xf32>
    %cst_27 = arith.constant dense<0.000000e+00> : vector<1024xf32>
    %76 = vector.multi_reduction <add>, %75, %cst_27 [0] : vector<16x1024xf32> to vector<1024xf32>
    %77 = vector.shape_cast %76 : vector<1024xf32> to vector<1x1024xf32>
    %cst_28 = arith.constant 1.600000e+01 : f32
    %78 = vector.broadcast %cst_28 : f32 to vector<1x1024xf32>
    %79 = arith.divf %77, %78 : vector<1x1024xf32>
    %cst_29 = arith.constant 9.99999974E-6 : f32
    %80 = vector.broadcast %cst_29 : f32 to vector<1x1024xf32>
    %81 = arith.addf %79, %80 : vector<1x1024xf32>
    %82 = math.rsqrt %81 : vector<1x1024xf32>
    %83 = arith.mulf %65, %82 : vector<1x1024xf32>
    %84 = vector.broadcast %83 : vector<1x1024xf32> to vector<16x1024xf32>
    %85 = arith.mulf %74, %84 : vector<16x1024xf32>
    %86 = vector.broadcast %66 : vector<1x1024xf32> to vector<16x1024xf32>
    %87 = arith.addf %85, %86 : vector<16x1024xf32>
    %cst_30 = arith.constant 0.000000e+00 : f32
    %88 = vector.broadcast %cst_30 : f32 to vector<16x1024xf32>
    %89 = arith.maximumf %87, %88 : vector<16x1024xf32>
    %c2_i32_31 = arith.constant 2 : i32
    %90 = tpu.memref_slice %arg10[%c2_i32_31] : memref<3x!tpu.dma_semaphore, #tpu.memory_space<semaphore_mem>> -> memref<1x!tpu.dma_semaphore, #tpu.memory_space<semaphore_mem>>
    %91 = tpu.memref_squeeze %90 : memref<1x!tpu.dma_semaphore, #tpu.memory_space<semaphore_mem>> -> memref<!tpu.dma_semaphore, #tpu.memory_space<semaphore_mem>>
    tpu.wait_dma2 semaphore(%91 : memref<!tpu.dma_semaphore, #tpu.memory_space<semaphore_mem>>) src(%arg5 : memref<1024x896xbf16, #tpu.memory_space<any>>) dst(%arg9 : memref<1024x896xbf16, #tpu.memory_space<vmem>>)
    %c0_32 = arith.constant 0 : index
    %c0_33 = arith.constant 0 : index
    %92 = vector.load %arg9[%c0_32, %c0_33] : memref<1024x896xbf16, #tpu.memory_space<vmem>>, vector<1024x896xbf16>
    %93 = vector.extract_strided_slice %6 {offsets = [3, 0], sizes = [1, 896], strides = [1, 1]} : vector<8x1024xf32> to vector<1x896xf32>
    %94 = vector.extract_strided_slice %6 {offsets = [7, 0], sizes = [1, 896], strides = [1, 1]} : vector<8x1024xf32> to vector<1x896xf32>
    %95 = arith.truncf %89 : vector<16x1024xf32> to vector<16x1024xbf16>
    %cst_34 = arith.constant dense<0.000000e+00> : vector<16x896xf32>
    %96 = tpu.matmul %95, %92, %cst_34 {dimension_numbers = #tpu.dot_dimension_numbers<[1], [0], [0], [1], [0, 0, 1, 1], [], []>} : vector<16x1024xbf16>, vector<1024x896xbf16>, vector<16x896xf32> -> vector<16x896xf32>
    %cst_35 = arith.constant dense<0.000000e+00> : vector<896xf32>
    %97 = vector.multi_reduction <add>, %96, %cst_35 [0] : vector<16x896xf32> to vector<896xf32>
    %98 = vector.shape_cast %97 : vector<896xf32> to vector<1x896xf32>
    %cst_36 = arith.constant 1.600000e+01 : f32
    %99 = vector.broadcast %cst_36 : f32 to vector<1x896xf32>
    %100 = arith.divf %98, %99 : vector<1x896xf32>
    %101 = vector.broadcast %100 : vector<1x896xf32> to vector<16x896xf32>
    %102 = arith.subf %96, %101 : vector<16x896xf32>
    %103 = arith.mulf %102, %102 : vector<16x896xf32>
    %cst_37 = arith.constant dense<0.000000e+00> : vector<896xf32>
    %104 = vector.multi_reduction <add>, %103, %cst_37 [0] : vector<16x896xf32> to vector<896xf32>
    %105 = vector.shape_cast %104 : vector<896xf32> to vector<1x896xf32>
    %cst_38 = arith.constant 1.600000e+01 : f32
    %106 = vector.broadcast %cst_38 : f32 to vector<1x896xf32>
    %107 = arith.divf %105, %106 : vector<1x896xf32>
    %cst_39 = arith.constant 9.99999974E-6 : f32
    %108 = vector.broadcast %cst_39 : f32 to vector<1x896xf32>
    %109 = arith.addf %107, %108 : vector<1x896xf32>
    %110 = math.rsqrt %109 : vector<1x896xf32>
    %111 = arith.mulf %93, %110 : vector<1x896xf32>
    %112 = vector.broadcast %111 : vector<1x896xf32> to vector<16x896xf32>
    %113 = arith.mulf %102, %112 : vector<16x896xf32>
    %114 = vector.broadcast %94 : vector<1x896xf32> to vector<16x896xf32>
    %115 = arith.addf %113, %114 : vector<16x896xf32>
    %116 = arith.negf %115 : vector<16x896xf32>
    %117 = math.exp %116 : vector<16x896xf32>
    %cst_40 = arith.constant 1.000000e+00 : f32
    %118 = vector.broadcast %cst_40 : f32 to vector<16x896xf32>
    %119 = arith.addf %118, %117 : vector<16x896xf32>
    %120 = arith.divf %118, %119 : vector<16x896xf32>
    %121 = arith.truncf %120 : vector<16x896xf32> to vector<16x896xbf16>
    %c0_41 = arith.constant 0 : index
    %c0_42 = arith.constant 0 : index
    %122 = vector.load %arg6[%c0_41, %c0_42] : memref<16x896xbf16, #tpu.memory_space<vmem>>, vector<16x896xbf16>
    tpu.vector_store %arg6[%c0_41, %c0_42], %121 {strides = array<i32>} : memref<16x896xbf16, #tpu.memory_space<vmem>>, vector<16x896xbf16>,
    return
  }
}

</mosaic_0001>

<bundles_post_ra>
// kernel: tpu_custom_call.1
= control target key start
LH: loop header
LB: loop body
LE: loop exit
PB: predicated region body
PF: predicated region fallthrough
CT: control target
= control target key end

     0   :  { %11 = vsyncpa [#allocation7], 0  ;;  %s9333_s0 = inlined_call_operand.hbm [shape: f32[16,64], index: 0, kind: input, shape index: {}]   ;;  %s9334_s1 = inlined_call_operand.hbm [shape: bf16[64,256], index: 1, kind: input, shape index: {}]   ;;  %s9335_s2 = inlined_call_operand.hbm [shape: f32[8,1024], index: 2, kind: input, shape index: {}]   ;;  %s9336_s3 = inlined_call_operand.hbm [shape: bf16[256,512], index: 3, kind: input, shape index: {}]   ;;  %s9337_s4 = inlined_call_operand.hbm [shape: bf16[512,1024], index: 4, kind: input, shape index: {}]   ;;  %s9338_s5 = inlined_call_operand.hbm [shape: bf16[1024,896], index: 5, kind: input, shape index: {}]   ;;  %s9339_s6 = inlined_call_operand.hbm [shape: bf16[16,896], index: 6, kind: output, shape index: {}]  }
   0x1   :  { %12 = vsyncpa [#allocation10], 0 }
   0x2   :  { %13 = vsyncpa [#allocation8], 0  ;;  %s8917_s21 = smov [#allocation9]   ;;  %s8918_s23 = smov [#allocation6]  }
   0x3   :  { %s31_s22 = sshll.u32 %s8917_s21, 4  ;;  %s19_s24 = sshll.u32 %s8918_s23, 4  ;;  %s32_s22 = int_to_ptr.vmem [resolvable:$true] %s31_s22  ;;  %s20_s24 = int_to_ptr.vmem [resolvable:$true] %s19_s24 }
   0x4   :  { %s8773_s25 = scalar_lea.vmem %s32_s22, 1024  ;;  %p8778_p1 = scmp.lt.s32.totalorder %s32_s22, %s32_s22 }
   0x5   :  { %p8774_p0 = scmp.ne.s32.totalorder %s32_s22, %s8773_s25  ;;  %p8779_p2 = scmp.lt.s32.totalorder %s8773_s25, %s8773_s25 }
   0x7   :  { %p8780_p3 = por %p8779_p2, %p8778_p1 }
   0x9   :  { %p8781_p4 = pnand %p8780_p3, %p8774_p0 }
   0xb   :  { %8784 = shalt.err (!%p8781_p4)
}
   0xc   :  { %s8919_s26 = smov 128   ;;  %s8920_s27 = smov 8  }
   0xd   :  { %37 = dma.hbm_to_vmem [thread:$0]  %s9334_s1, 1024, %s32_s22, [#allocation10], %s8919_s26, %s8919_s26, %s8920_s27  }
   0xe   :  { %s8793_s30 = scalar_lea.vmem %s20_s24, 256  ;;  %p8798_p6 = scmp.lt.s32.totalorder %s20_s24, %s20_s24 }
   0xf   :  { %p8794_p5 = scmp.ne.s32.totalorder %s20_s24, %s8793_s30  ;;  %p8799_p7 = scmp.lt.s32.totalorder %s8793_s30, %s8793_s30 }
  0x11   :  { %p8800_p8 = por %p8799_p7, %p8798_p6 }
  0x13   :  { %p8801_p9 = pnand %p8800_p8, %p8794_p5 }
  0x15   :  { %8804 = shalt.err (!%p8801_p9)
}
  0x16   :  { %25 = dma.hbm_to_vmem [thread:$0]  %s9333_s0, 256, %s20_s24, [#allocation7], %s8919_s26, %s8919_s26, %s8920_s27  }
  0x17   :  { %s8921_s9 = smov [#allocation11]  }
  0x18   :  { %s44_s10 = sshll.u32 %s8921_s9, 4  ;;  %s45_s10 = int_to_ptr.vmem [resolvable:$true] %s44_s10 }
  0x19   :  { %s8813_s11 = scalar_lea.vmem %s45_s10, 1024  ;;  %p8818_p11 = scmp.lt.s32.totalorder %s45_s10, %s45_s10 }
  0x1a   :  { %p8814_p10 = scmp.ne.s32.totalorder %s45_s10, %s8813_s11  ;;  %p8819_p12 = scmp.lt.s32.totalorder %s8813_s11, %s8813_s11 }
  0x1c   :  { %p8820_p13 = por %p8819_p12, %p8818_p11 }
  0x1e   :  { %p8821_p0 = pnand %p8820_p13, %p8814_p10 }
  0x20   :  { %8824 = shalt.err (!%p8821_p0)
}
  0x21   :  { %47 = dma.hbm_to_vmem [thread:$0]  %s9335_s2, 1024, %s45_s10, [#allocation10]  }
  0x22   :  { %8905 = dma.done.wait [#allocation7], 256  }
  0x23   :  { %8906 = vsyncadd [#allocation7], 4294967040 }
  0x24   :  { %8907 = dma.done.wait [#allocation10], 2048  }
  0x25   :  { %8908 = vsyncadd [#allocation10], 4294965248  ;;  %v8922_v0 = vmov 0   ;;  %v8973_v1 = vld [vmem:[#allocation11 + $0x10] sm:$0xff]  ;;  %v8975_v2 = vld [vmem:[#allocation11 + $0x18] sm:$0xff]  ;;  %vm152_vm0 = vcmask 523264  }
  0x26   :  { %188 = vmatprep.mubr.bf16.mxu0 %v8922_v0  ;;  %v8977_v3 = vld [vmem:[#allocation11 + $0x20] sm:$0xff]  ;;  %v8979_v4 = vld [vmem:[#allocation11 + $0x28] sm:$0xff]  ;;  %v8981_v5 = vld [vmem:[#allocation11 + $0x30] sm:$0xff]  ;;  %s8923_s0 = smov [#allocation2]   ;;  %s8924_s13 = smov [#allocation3]  }
  0x27   :  { %v8983_v6 = vld [vmem:[#allocation11 + $0x38] sm:$0xff]  ;;  %v7922_v9 = vld [vmem:[#allocation9 + $0x24] ss:$8 sps:$4 sm:$0xff]   ;;  %v7924_v10 = vld [vmem:[#allocation9 + $0x20] ss:$8 sps:$4 sm:$0xff]   ;;  %s65_s2 = sshll.u32 %s8923_s0, 4  ;;  %s66_s2 = int_to_ptr.vmem [resolvable:$true] %s65_s2 }
  0x28   :  { %v7919_v7 = vld [vmem:[#allocation9 + $0x34] ss:$8 sps:$4 sm:$0xff]   ;;  %v7921_v8 = vld [vmem:[#allocation9 + $0x30] ss:$8 sps:$4 sm:$0xff]   ;;  %v7928_v13 = vld [vmem:[#allocation9 + $0x4] ss:$8 sps:$4 sm:$0xff]   ;;  %p8838_p2 = scmp.lt.s32.totalorder %s66_s2, %s66_s2 }
  0x29   :  { %164 = vmatprep.subr.bf16.mxu0 %v7919_v7  ;;  %v7925_v11 = vld [vmem:[#allocation9 + $0x14] ss:$8 sps:$4 sm:$0xff]   ;;  %v7927_v12 = vld [vmem:[#allocation9 + $0x10] ss:$8 sps:$4 sm:$0xff]   ;;  %v7930_v14 = vld [vmem:[#allocation9] ss:$8 sps:$4 sm:$0xff]  }
  0x2a   :  { %165 = vmatpush1.bf16.msra.mxu0 %v7921_v8  ;;  %v101_v15 = vld [vmem:[#allocation6] sm:$0xff]  ;;  %v102_v16 = vld [vmem:[#allocation6 + $0x8] sm:$0xff]  ;;  %s77_s14 = sshll.u32 %s8924_s13, 4  ;;  %s8833_s15 = scalar_lea.vmem %s66_s2, 8192  ;;  %s78_s14 = int_to_ptr.vmem [resolvable:$true] %s77_s14 }
  0x2b   :  { %166 = vmatprep.subr.bf16.mxu0 %v7922_v9  ;;  %v111_v17 = vpack.c.bf16 %v102_v16, %v101_v15  ;;  %p8834_p1 = scmp.ne.s32.totalorder %s66_s2, %s8833_s15  ;;  %p8839_p3 = scmp.lt.s32.totalorder %s8833_s15, %s8833_s15 }
  0x2d   :  { %p8840_p4 = por %p8839_p3, %p8838_p2 }
  0x2e   :  { %167 = vmatpush1.bf16.msra.mxu0 %v7924_v10 }
  0x2f   :  { %168 = vmatprep.subr.bf16.mxu0 %v7925_v11  ;;  %p8841_p5 = pnand %p8840_p4, %p8834_p1 }
  0x32   :  { %169 = vmatpush1.bf16.msra.mxu0 %v7927_v12 }
  0x33   :  { %170 = vmatprep.subr.bf16.mxu0 %v7928_v13 }
  0x36   :  { %171 = vmatpush1.bf16.msra.mxu0 %v7930_v14 }
  0x39   :  { %7017 = vmatmul.mubr.msk.bf16.vlgmr.msra.gmra.mxu0 %vm152_vm0, %v111_v17 }
  0x3a   :  { %8844 = shalt.err (!%p8841_p5)  }
  0x3b   :  { %68 = dma.hbm_to_vmem [thread:$0]  %s9336_s3, 8192, %s66_s2, [#allocation5] }
  0x3c   :  { %s8853_s18 = scalar_lea.vmem %s78_s14, 32768  ;;  %p8858_p7 = scmp.lt.s32.totalorder %s78_s14, %s78_s14 }
  0x3d   :  { %p8854_p6 = scmp.ne.s32.totalorder %s78_s14, %s8853_s18  ;;  %p8859_p8 = scmp.lt.s32.totalorder %s8853_s18, %s8853_s18 }
  0x3f   :  { %p8860_p9 = por %p8859_p8, %p8858_p7 }
  0x41   :  { %p8861_p10 = pnand %p8860_p9, %p8854_p6 }
  0x43   :  { %8864 = shalt.err (!%p8861_p10)  }
  0x44   :  { %80 = dma.hbm_to_vmem [thread:$0]  %s9337_s4, 32768, %s78_s14, [#allocation5 + $0x1] }
  0x45   :  { %s8925_s21 = smov [#allocation4]  }
  0x46   :  { %s89_s22 = sshll.u32 %s8925_s21, 4  ;;  %s90_s22 = int_to_ptr.vmem [resolvable:$true] %s89_s22 }
  0x47   :  { %s8873_s23 = scalar_lea.vmem %s90_s22, 57344  ;;  %p8878_p12 = scmp.lt.s32.totalorder %s90_s22, %s90_s22 }
  0x48   :  { %p8874_p11 = scmp.ne.s32.totalorder %s90_s22, %s8873_s23  ;;  %p8879_p13 = scmp.lt.s32.totalorder %s8873_s23, %s8873_s23 }
  0x4a   :  { %p8880_p0 = por %p8879_p13, %p8878_p12 }
  0x4c   :  { %p8881_p1 = pnand %p8880_p0, %p8874_p11 }
  0x4e   :  { %8884 = shalt.err (!%p8881_p1)  }
  0x4f   :  { %92 = dma.hbm_to_vmem [thread:$0]  %s9338_s5, 57344, %s90_s22, [#allocation5 + $0x2]  ;;  %v246_v0 = vlaneseq  ;;  %v8996_v8 = vld [vmem:[#allocation11] sm:$0xff]  ;;  %v9000_v12 = vld [vmem:[#allocation11 + $0x8] sm:$0xff] }
  0x51   :  { %v8994_v7 = vshrl.u32 %v246_v0, 7 }
  0x53   :  { %v248_v9 = vsub.s32 0, %v8994_v7  ;;  %v260_v10 = vsub.s32 4, %v8994_v7 }
  0x55   :  { %v261_v16 = vrot.slane %v8996_v8, %v260_v10 }
  0xf9   :  { %v190_v18 = vpop.f32.mrf.mxu0 }
  0xfb   :  { %v192_v19 = vpop.f32.mrf.mxu0 }
  0xfd   :  { %v194_v20 = vpop.f32.mrf.mxu0 }
  0xfe   :  { %v199_v21 = vadd.f32 %v194_v20, %v190_v18 }
  0xff   :  { %v196_v22 = vpop.f32.mrf.mxu0 }
 0x100   :  { %v200_v23 = vrot.slane %v199_v21, 4  ;;  %v206_v24 = vadd.f32 %v196_v22, %v192_v19 }
 0x102   :  { %v201_v25 = vadd.f32 %v200_v23, %v199_v21  ;;  %v207_v26 = vrot.slane %v206_v24, 4  ;;  %v265_v21 = vrot.slane %v9000_v12, %v260_v10 }
 0x104   :  { %v202_v27 = vrot.slane %v201_v25, 2  ;;  %v208_v28 = vadd.f32 %v207_v26, %v206_v24 }
 0x106   :  { %v203_v29 = vadd.f32 %v202_v27, %v201_v25  ;;  %v209_v30 = vrot.slane %v208_v28, 2 }
 0x108   :  { %v204_v31 = vrot.slane %v203_v29, 1  ;;  %v210_v32 = vadd.f32 %v209_v30, %v208_v28 }
 0x10a   :  { %v205_v33 = vadd.f32 %v204_v31, %v203_v29  ;;  %v211_v34 = vrot.slane %v210_v32, 1 }
 0x10c   :  { %v214_v35 = vmul.f32 0.0625, %v205_v33  ;;  %v212_v36 = vadd.f32 %v211_v34, %v210_v32 }
 0x10e   :  { %v216_v37 = vsub.f32 %v190_v18, %v214_v35  ;;  %v218_v38 = vsub.f32 %v194_v20, %v214_v35  ;;  %v215_v39 = vmul.f32 0.0625, %v212_v36 }
 0x110   :  { %v220_v40 = vmul.f32 %v216_v37, %v216_v37  ;;  %v222_v41 = vmul.f32 %v218_v38, %v218_v38  ;;  %v217_v42 = vsub.f32 %v192_v19, %v215_v39  ;;  %v219_v43 = vsub.f32 %v196_v22, %v215_v39 }
 0x112   :  { %v224_v44 = vadd.f32 %v222_v41, %v220_v40  ;;  %v221_v45 = vmul.f32 %v217_v42, %v217_v42  ;;  %v223_v46 = vmul.f32 %v219_v43, %v219_v43 }
 0x114   :  { %v225_v47 = vrot.slane %v224_v44, 4  ;;  %v231_v48 = vadd.f32 %v223_v46, %v221_v45 }
 0x116   :  { %v226_v49 = vadd.f32 %v225_v47, %v224_v44  ;;  %v232_v50 = vrot.slane %v231_v48, 4 }
 0x118   :  { %v227_v51 = vrot.slane %v226_v49, 2  ;;  %v233_v52 = vadd.f32 %v232_v50, %v231_v48 }
 0x11a   :  { %v228_v53 = vadd.f32 %v227_v51, %v226_v49  ;;  %v234_v54 = vrot.slane %v233_v52, 2 }
 0x11c   :  { %v229_v55 = vrot.slane %v228_v53, 1  ;;  %v235_v56 = vadd.f32 %v234_v54, %v233_v52 }
 0x11e   :  { %v230_v57 = vadd.f32 %v229_v55, %v228_v53  ;;  %v236_v58 = vrot.slane %v235_v56, 1 }
 0x120   :  { %v238_v59 = vmul.f32 0.0625, %v230_v57  ;;  %v237_v60 = vadd.f32 %v236_v58, %v235_v56 }
 0x122   :  { %v240_v61 = vadd.f32 1e-05, %v238_v59  ;;  %v239_v62 = vmul.f32 0.0625, %v237_v60 }
 0x124   :  { %7931 = vrsqrt.f32 %v240_v61  ;;  %v241_v63 = vadd.f32 1e-05, %v239_v62 }
 0x126   :  { %7933 = vrsqrt.f32 %v241_v63 }
 0x131   :  { %v7932_v11 = vpop.eup %7931 }
 0x132   :  { %v244_v13 = vmul.f32 %v7932_v11, %v8996_v8 }
 0x133   :  { %v7934_v14 = vpop.eup %7933 }
 0x134   :  { %v249_v15 = vrot.slane %v244_v13, %v248_v9  ;;  %v245_v17 = vmul.f32 %v7934_v14, %v9000_v12 }
 0x136   :  { %v254_v18 = vmul.f32 %v249_v15, %v216_v37  ;;  %v256_v19 = vmul.f32 %v249_v15, %v218_v38  ;;  %v253_v20 = vrot.slane %v245_v17, %v248_v9 }
 0x138   :  { %v9006_v22 = vadd.f32 %v261_v16, %v254_v18  ;;  %v9008_v23 = vadd.f32 %v261_v16, %v256_v19  ;;  %v255_v24 = vmul.f32 %v253_v20, %v217_v42  ;;  %v257_v25 = vmul.f32 %v253_v20, %v219_v43 }
 0x13a   :  { %v270_v26 = vmax.f32 %v9006_v22, 0.0  ;;  %v272_v27 = vmax.f32 %v9008_v23, 0.0  ;;  %v267_v28 = vadd.f32 %v265_v21, %v255_v24  ;;  %v269_v29 = vadd.f32 %v265_v21, %v257_v25 }
 0x13c   :  { %v271_v30 = vmax.f32 %v267_v28, 0.0  ;;  %v273_v31 = vmax.f32 %v269_v29, 0.0 }
 0x13d   :  { %8909 = dma.done.wait [#allocation5], 8192 }
 0x13e   :  { %8910 = vsyncadd [#allocation5], 4294959104  ;;  %v343_v32 = vpack.c.bf16 %v273_v31, %v271_v30  ;;  %v7935_v33 = vld [vmem:[#allocation2 + $0xe4] ss:$16 sps:$4 sm:$0xff]   ;;  %v7937_v34 = vld [vmem:[#allocation2 + $0xec] ss:$16 sps:$4 sm:$0xff]  }
 0x13f   :  { %664 = vmatprep.subr.bf16.mxu1 %v7935_v33  ;;  %v7939_v35 = vld [vmem:[#allocation2 + $0xe0] ss:$16 sps:$4 sm:$0xff]   ;;  %v7940_v36 = vld [vmem:[#allocation2 + $0xe8] ss:$16 sps:$4 sm:$0xff]   ;;  %707 = vmatprep.subr.bf16.mxu0 %v7937_v34  ;;  %v7941_v37 = vld [vmem:[#allocation2 + $0xc4] ss:$16 sps:$4 sm:$0xff]  }
 0x140   :  { %696 = vmatprep.mubr.bf16.mxu1 %v343_v32  ;;  %739 = vmatprep.mubr.bf16.mxu0 %v343_v32  ;;  %v7943_v38 = vld [vmem:[#allocation2 + $0xcc] ss:$16 sps:$4 sm:$0xff]   ;;  %v7945_v39 = vld [vmem:[#allocation2 + $0xc0] ss:$16 sps:$4 sm:$0xff]   ;;  %v7946_v40 = vld [vmem:[#allocation2 + $0xc8] ss:$16 sps:$4 sm:$0xff]  }
 0x141   :  { %665 = vmatpush1.bf16.msra.mxu1 %v7939_v35  ;;  %708 = vmatpush1.bf16.msra.mxu0 %v7940_v36  ;;  %v7947_v41 = vld [vmem:[#allocation2 + $0xa4] ss:$16 sps:$4 sm:$0xff]   ;;  %v7949_v42 = vld [vmem:[#allocation2 + $0xac] ss:$16 sps:$4 sm:$0xff]   ;;  %v7951_v43 = vld [vmem:[#allocation2 + $0xa0] ss:$16 sps:$4 sm:$0xff]  }
 0x142   :  { %666 = vmatprep.subr.bf16.mxu1 %v7941_v37  ;;  %709 = vmatprep.subr.bf16.mxu0 %v7943_v38  ;;  %v7952_v44 = vld [vmem:[#allocation2 + $0xa8] ss:$16 sps:$4 sm:$0xff]   ;;  %v7953_v45 = vld [vmem:[#allocation2 + $0x84] ss:$16 sps:$4 sm:$0xff]   ;;  %v7955_v46 = vld [vmem:[#allocation2 + $0x8c] ss:$16 sps:$4 sm:$0xff]  }
 0x143   :  { %v7957_v47 = vld [vmem:[#allocation2 + $0x80] ss:$16 sps:$4 sm:$0xff]   ;;  %v7958_v48 = vld [vmem:[#allocation2 + $0x88] ss:$16 sps:$4 sm:$0xff]   ;;  %v7959_v49 = vld [vmem:[#allocation2 + $0x64] ss:$16 sps:$4 sm:$0xff]  }
 0x144   :  { %v7961_v50 = vld [vmem:[#allocation2 + $0x6c] ss:$16 sps:$4 sm:$0xff]   ;;  %v7963_v51 = vld [vmem:[#allocation2 + $0x60] ss:$16 sps:$4 sm:$0xff]   ;;  %v7964_v52 = vld [vmem:[#allocation2 + $0x68] ss:$16 sps:$4 sm:$0xff]  }
 0x145   :  { %667 = vmatpush1.bf16.msra.mxu1 %v7945_v39  ;;  %710 = vmatpush1.bf16.msra.mxu0 %v7946_v40  ;;  %v7965_v53 = vld [vmem:[#allocation2 + $0x44] ss:$16 sps:$4 sm:$0xff]   ;;  %v7967_v54 = vld [vmem:[#allocation2 + $0x4c] ss:$16 sps:$4 sm:$0xff]   ;;  %v7969_v55 = vld [vmem:[#allocation2 + $0x40] ss:$16 sps:$4 sm:$0xff]  }
 0x146   :  { %668 = vmatprep.subr.bf16.mxu1 %v7947_v41  ;;  %711 = vmatprep.subr.bf16.mxu0 %v7949_v42  ;;  %v7970_v56 = vld [vmem:[#allocation2 + $0x48] ss:$16 sps:$4 sm:$0xff]   ;;  %v7971_v57 = vld [vmem:[#allocation2 + $0x24] ss:$16 sps:$4 sm:$0xff]   ;;  %v7973_v58 = vld [vmem:[#allocation2 + $0x2c] ss:$16 sps:$4 sm:$0xff]  }
 0x147   :  { %v7975_v59 = vld [vmem:[#allocation2 + $0x20] ss:$16 sps:$4 sm:$0xff]   ;;  %v7976_v60 = vld [vmem:[#allocation2 + $0x28] ss:$16 sps:$4 sm:$0xff]   ;;  %v7977_v61 = vld [vmem:[#allocation2 + $0x4] ss:$16 sps:$4 sm:$0xff]  }
 0x148   :  { %v7979_v62 = vld [vmem:[#allocation2 + $0xc] ss:$16 sps:$4 sm:$0xff]   ;;  %v7981_v63 = vld [vmem:[#allocation2] ss:$16 sps:$4 sm:$0xff]   ;;  %v7982_v0 = vld [vmem:[#allocation2 + $0x8] ss:$16 sps:$4 sm:$0xff]  }
 0x149   :  { %669 = vmatpush1.bf16.msra.mxu1 %v7951_v43  ;;  %712 = vmatpush1.bf16.msra.mxu0 %v7952_v44  ;;  %v7983_v9 = vld [vmem:[#allocation2 + $0x1e4] ss:$16 sps:$4 sm:$0xff]   ;;  %v7985_v10 = vld [vmem:[#allocation2 + $0x1ec] ss:$16 sps:$4 sm:$0xff]   ;;  %v7987_v11 = vld [vmem:[#allocation2 + $0x1e0] ss:$16 sps:$4 sm:$0xff]  }
 0x14a   :  { %670 = vmatprep.subr.bf16.mxu1 %v7953_v45  ;;  %713 = vmatprep.subr.bf16.mxu0 %v7955_v46  ;;  %v7988_v13 = vld [vmem:[#allocation2 + $0x1e8] ss:$16 sps:$4 sm:$0xff]   ;;  %v7989_v14 = vld [vmem:[#allocation2 + $0x1c4] ss:$16 sps:$4 sm:$0xff]   ;;  %v7991_v15 = vld [vmem:[#allocation2 + $0x1cc] ss:$16 sps:$4 sm:$0xff]   ;;  %v342_v46 = vpack.c.bf16 %v272_v27, %v270_v26 }
 0x14b   :  { %v7993_v16 = vld [vmem:[#allocation2 + $0x1c0] ss:$16 sps:$4 sm:$0xff]   ;;  %v7994_v17 = vld [vmem:[#allocation2 + $0x1c8] ss:$16 sps:$4 sm:$0xff]   ;;  %v7995_v18 = vld [vmem:[#allocation2 + $0x1a4] ss:$16 sps:$4 sm:$0xff]  }
 0x14c   :  { %v7997_v19 = vld [vmem:[#allocation2 + $0x1ac] ss:$16 sps:$4 sm:$0xff]   ;;  %v7999_v20 = vld [vmem:[#allocation2 + $0x1a0] ss:$16 sps:$4 sm:$0xff]   ;;  %v8000_v21 = vld [vmem:[#allocation2 + $0x1a8] ss:$16 sps:$4 sm:$0xff]  }
 0x14d   :  { %671 = vmatpush1.bf16.msra.mxu1 %v7957_v47  ;;  %714 = vmatpush1.bf16.msra.mxu0 %v7958_v48  ;;  %v8001_v24 = vld [vmem:[#allocation2 + $0x184] ss:$16 sps:$4 sm:$0xff]   ;;  %v8003_v25 = vld [vmem:[#allocation2 + $0x18c] ss:$16 sps:$4 sm:$0xff]   ;;  %v8005_v28 = vld [vmem:[#allocation2 + $0x180] ss:$16 sps:$4 sm:$0xff]  }
 0x14e   :  { %672 = vmatprep.subr.bf16.mxu1 %v7959_v49  ;;  %715 = vmatprep.subr.bf16.mxu0 %v7961_v50  ;;  %v8006_v29 = vld [vmem:[#allocation2 + $0x188] ss:$16 sps:$4 sm:$0xff]   ;;  %v8007_v30 = vld [vmem:[#allocation2 + $0x164] ss:$16 sps:$4 sm:$0xff]   ;;  %v8009_v31 = vld [vmem:[#allocation2 + $0x16c] ss:$16 sps:$4 sm:$0xff]  }
 0x14f   :  { %v8011_v32 = vld [vmem:[#allocation2 + $0x160] ss:$16 sps:$4 sm:$0xff]   ;;  %v8012_v33 = vld [vmem:[#allocation2 + $0x168] ss:$16 sps:$4 sm:$0xff]   ;;  %v8013_v34 = vld [vmem:[#allocation2 + $0x144] ss:$16 sps:$4 sm:$0xff]  }
 0x150   :  { %v8015_v35 = vld [vmem:[#allocation2 + $0x14c] ss:$16 sps:$4 sm:$0xff]   ;;  %v8017_v36 = vld [vmem:[#allocation2 + $0x140] ss:$16 sps:$4 sm:$0xff]   ;;  %v8018_v37 = vld [vmem:[#allocation2 + $0x148] ss:$16 sps:$4 sm:$0xff]  }
 0x151   :  { %673 = vmatpush1.bf16.msra.mxu1 %v7963_v51  ;;  %716 = vmatpush1.bf16.msra.mxu0 %v7964_v52  ;;  %v8019_v38 = vld [vmem:[#allocation2 + $0x124] ss:$16 sps:$4 sm:$0xff]   ;;  %v8021_v39 = vld [vmem:[#allocation2 + $0x12c] ss:$16 sps:$4 sm:$0xff]   ;;  %v8023_v40 = vld [vmem:[#allocation2 + $0x120] ss:$16 sps:$4 sm:$0xff]  }
 0x152   :  { %674 = vmatprep.subr.bf16.mxu1 %v7965_v53  ;;  %717 = vmatprep.subr.bf16.mxu0 %v7967_v54  ;;  %v8024_v41 = vld [vmem:[#allocation2 + $0x128] ss:$16 sps:$4 sm:$0xff]   ;;  %v8025_v42 = vld [vmem:[#allocation2 + $0x104] ss:$16 sps:$4 sm:$0xff]   ;;  %v8027_v43 = vld [vmem:[#allocation2 + $0x10c] ss:$16 sps:$4 sm:$0xff]  }
 0x153   :  { %v8029_v44 = vld [vmem:[#allocation2 + $0x100] ss:$16 sps:$4 sm:$0xff]   ;;  %v8030_v45 = vld [vmem:[#allocation2 + $0x108] ss:$16 sps:$4 sm:$0xff]  }
 0x155   :  { %675 = vmatpush1.bf16.msra.mxu1 %v7969_v55  ;;  %718 = vmatpush1.bf16.msra.mxu0 %v7970_v56 }
 0x156   :  { %676 = vmatprep.subr.bf16.mxu1 %v7971_v57  ;;  %719 = vmatprep.subr.bf16.mxu0 %v7973_v58 }
 0x159   :  { %677 = vmatpush1.bf16.msra.mxu1 %v7975_v59  ;;  %720 = vmatpush1.bf16.msra.mxu0 %v7976_v60 }
 0x15a   :  { %678 = vmatprep.subr.bf16.mxu1 %v7977_v61  ;;  %721 = vmatprep.subr.bf16.mxu0 %v7979_v62 }
 0x15d   :  { %679 = vmatpush1.bf16.msra.mxu1 %v7981_v63  ;;  %722 = vmatpush1.bf16.msra.mxu0 %v7982_v0 }
 0x15e   :  { %680 = vmatprep.subr.bf16.mxu1 %v7983_v9  ;;  %723 = vmatprep.subr.bf16.mxu0 %v7985_v10 }
 0x161   :  { %681 = vmatpush2.bf16.msra.mxu1 %v7987_v11  ;;  %724 = vmatpush2.bf16.msra.mxu0 %v7988_v13 }
 0x162   :  { %682 = vmatprep.subr.bf16.mxu1 %v7989_v14  ;;  %725 = vmatprep.subr.bf16.mxu0 %v7991_v15 }
 0x165   :  { %683 = vmatpush2.bf16.msra.mxu1 %v7993_v16  ;;  %726 = vmatpush2.bf16.msra.mxu0 %v7994_v17 }
 0x166   :  { %684 = vmatprep.subr.bf16.mxu1 %v7995_v18  ;;  %727 = vmatprep.subr.bf16.mxu0 %v7997_v19 }
 0x169   :  { %685 = vmatpush2.bf16.msra.mxu1 %v7999_v20  ;;  %728 = vmatpush2.bf16.msra.mxu0 %v8000_v21 }
 0x16a   :  { %686 = vmatprep.subr.bf16.mxu1 %v8001_v24  ;;  %729 = vmatprep.subr.bf16.mxu0 %v8003_v25 }
 0x16d   :  { %687 = vmatpush2.bf16.msra.mxu1 %v8005_v28  ;;  %730 = vmatpush2.bf16.msra.mxu0 %v8006_v29 }
 0x16e   :  { %688 = vmatprep.subr.bf16.mxu1 %v8007_v30  ;;  %731 = vmatprep.subr.bf16.mxu0 %v8009_v31 }
 0x171   :  { %689 = vmatpush2.bf16.msra.mxu1 %v8011_v32  ;;  %732 = vmatpush2.bf16.msra.mxu0 %v8012_v33 }
 0x172   :  { %690 = vmatprep.subr.bf16.mxu1 %v8013_v34  ;;  %733 = vmatprep.subr.bf16.mxu0 %v8015_v35 }
 0x175   :  { %691 = vmatpush2.bf16.msra.mxu1 %v8017_v36  ;;  %734 = vmatpush2.bf16.msra.mxu0 %v8018_v37 }
 0x176   :  { %692 = vmatprep.subr.bf16.mxu1 %v8019_v38  ;;  %735 = vmatprep.subr.bf16.mxu0 %v8021_v39 }
 0x179   :  { %693 = vmatpush2.bf16.msra.mxu1 %v8023_v40  ;;  %736 = vmatpush2.bf16.msra.mxu0 %v8024_v41 }
 0x17a   :  { %694 = vmatprep.subr.bf16.mxu1 %v8025_v42  ;;  %737 = vmatprep.subr.bf16.mxu0 %v8027_v43 }
 0x17d   :  { %695 = vmatpush2.bf16.msra.mxu1 %v8029_v44  ;;  %738 = vmatpush2.bf16.msra.mxu0 %v8030_v45 }
 0x180   :  { %697 = vmatmul.mubr.bf16.vlgmr.msra.gmra.mxu1 %v342_v46  ;;  %740 = vmatmul.mubr.bf16.vlgmr.msra.gmra.mxu0 %v342_v46 }
 0x240   :  { %v698_v47 = vpop.f32.mrf.mxu1  ;;  %v741_v48 = vpop.f32.mrf.mxu0 }
 0x242   :  { %v700_v49 = vpop.f32.mrf.mxu1  ;;  %v743_v50 = vpop.f32.mrf.mxu0 }
 0x244   :  { %v702_v51 = vpop.f32.mrf.mxu1  ;;  %v745_v52 = vpop.f32.mrf.mxu0 }
 0x245   :  { %v750_v53 = vadd.f32 %v702_v51, %v698_v47  ;;  %v764_v54 = vadd.f32 %v745_v52, %v741_v48 }
 0x246   :  { %v704_v55 = vpop.f32.mrf.mxu1  ;;  %v747_v56 = vpop.f32.mrf.mxu0 }
 0x247   :  { %v751_v57 = vrot.slane %v750_v53, 4  ;;  %v765_v58 = vrot.slane %v764_v54, 4  ;;  %v757_v22 = vadd.f32 %v704_v55, %v700_v49  ;;  %v771_v59 = vadd.f32 %v747_v56, %v743_v50 }
 0x249   :  { %v752_v23 = vadd.f32 %v751_v57, %v750_v53  ;;  %v766_v26 = vadd.f32 %v765_v58, %v764_v54  ;;  %v758_v27 = vrot.slane %v757_v22, 4  ;;  %v772_v60 = vrot.slane %v771_v59, 4 }
 0x24b   :  { %v753_v61 = vrot.slane %v752_v23, 2  ;;  %v767_v62 = vrot.slane %v766_v26, 2  ;;  %v759_v63 = vadd.f32 %v758_v27, %v757_v22  ;;  %v773_v0 = vadd.f32 %v772_v60, %v771_v59 }
 0x24d   :  { %v754_v9 = vadd.f32 %v753_v61, %v752_v23  ;;  %v768_v10 = vadd.f32 %v767_v62, %v766_v26  ;;  %v760_v11 = vrot.slane %v759_v63, 2  ;;  %v774_v13 = vrot.slane %v773_v0, 2 }
 0x24f   :  { %v755_v14 = vrot.slane %v754_v9, 1  ;;  %v769_v15 = vrot.slane %v768_v10, 1  ;;  %v761_v16 = vadd.f32 %v760_v11, %v759_v63  ;;  %v775_v17 = vadd.f32 %v774_v13, %v773_v0 }
 0x251   :  { %v756_v18 = vadd.f32 %v755_v14, %v754_v9  ;;  %v770_v19 = vadd.f32 %v769_v15, %v768_v10  ;;  %v762_v20 = vrot.slane %v761_v16, 1  ;;  %v776_v21 = vrot.slane %v775_v17, 1 }
 0x253   :  { %v778_v24 = vmul.f32 0.0625, %v756_v18  ;;  %v780_v25 = vmul.f32 0.0625, %v770_v19  ;;  %v763_v28 = vadd.f32 %v762_v20, %v761_v16  ;;  %v777_v29 = vadd.f32 %v776_v21, %v775_v17 }
 0x255   :  { %v9016_v30 = vsub.f32 %v698_v47, %v778_v24  ;;  %v9018_v31 = vsub.f32 %v702_v51, %v778_v24  ;;  %v9020_v32 = vsub.f32 %v741_v48, %v780_v25  ;;  %v9022_v33 = vsub.f32 %v745_v52, %v780_v25 }
 0x256   :  { %v779_v34 = vmul.f32 0.0625, %v763_v28  ;;  %v781_v35 = vmul.f32 0.0625, %v777_v29  ;;  %v844_v29 = vsub.s32 1, %v8994_v7 }
 0x257   :  { %v790_v36 = vmul.f32 %v9016_v30, %v9016_v30  ;;  %v794_v37 = vmul.f32 %v9018_v31, %v9018_v31  ;;  %v792_v38 = vmul.f32 %v9020_v32, %v9020_v32  ;;  %v796_v39 = vmul.f32 %v9022_v33, %v9022_v33 }
 0x258   :  { %v9032_v40 = vsub.f32 %v700_v49, %v779_v34  ;;  %v9034_v41 = vsub.f32 %v704_v55, %v779_v34  ;;  %v9036_v42 = vsub.f32 %v743_v50, %v781_v35  ;;  %v9038_v43 = vsub.f32 %v747_v56, %v781_v35 }
 0x259   :  { %v798_v44 = vadd.f32 %v794_v37, %v790_v36  ;;  %v812_v45 = vadd.f32 %v796_v39, %v792_v38  ;;  %v868_v34 = vsub.s32 5, %v8994_v7 }
 0x25a   :  { %v791_v46 = vmul.f32 %v9032_v40, %v9032_v40  ;;  %v795_v47 = vmul.f32 %v9034_v41, %v9034_v41  ;;  %v793_v48 = vmul.f32 %v9036_v42, %v9036_v42  ;;  %v797_v49 = vmul.f32 %v9038_v43, %v9038_v43 }
 0x25b   :  { %v799_v51 = vrot.slane %v798_v44, 4  ;;  %v813_v52 = vrot.slane %v812_v45, 4 }
 0x25c   :  { %v805_v50 = vadd.f32 %v795_v47, %v791_v46  ;;  %v819_v53 = vadd.f32 %v797_v49, %v793_v48  ;;  %v877_v48 = vrot.slane %v8973_v1, %v868_v34 }
 0x25d   :  { %v800_v54 = vadd.f32 %v799_v51, %v798_v44  ;;  %v814_v55 = vadd.f32 %v813_v52, %v812_v45  ;;  %v869_v45 = vrot.slane %v8996_v8, %v868_v34 }
 0x25e   :  { %v806_v56 = vrot.slane %v805_v50, 4  ;;  %v820_v57 = vrot.slane %v819_v53, 4 }
 0x25f   :  { %v801_v58 = vrot.slane %v800_v54, 2  ;;  %v815_v22 = vrot.slane %v814_v55, 2 }
 0x260   :  { %v807_v59 = vadd.f32 %v806_v56, %v805_v50  ;;  %v821_v23 = vadd.f32 %v820_v57, %v819_v53  ;;  %v873_v56 = vrot.slane %v9000_v12, %v868_v34 }
 0x261   :  { %v802_v26 = vadd.f32 %v801_v58, %v800_v54  ;;  %v816_v27 = vadd.f32 %v815_v22, %v814_v55 }
 0x262   :  { %v808_v60 = vrot.slane %v807_v59, 2  ;;  %v822_v61 = vrot.slane %v821_v23, 2 }
 0x263   :  { %v803_v62 = vrot.slane %v802_v26, 1  ;;  %v817_v63 = vrot.slane %v816_v27, 1 }
 0x264   :  { %v809_v0 = vadd.f32 %v808_v60, %v807_v59  ;;  %v823_v9 = vadd.f32 %v822_v61, %v821_v23  ;;  %v881_v59 = vrot.slane %v8975_v2, %v868_v34 }
 0x265   :  { %v804_v10 = vadd.f32 %v803_v62, %v802_v26  ;;  %v818_v11 = vadd.f32 %v817_v63, %v816_v27 }
 0x266   :  { %v810_v13 = vrot.slane %v809_v0, 1  ;;  %v824_v14 = vrot.slane %v823_v9, 1 }
 0x267   :  { %v826_v15 = vmul.f32 0.0625, %v804_v10  ;;  %v828_v16 = vmul.f32 0.0625, %v818_v11 }
 0x268   :  { %v811_v17 = vadd.f32 %v810_v13, %v809_v0  ;;  %v825_v18 = vadd.f32 %v824_v14, %v823_v9 }
 0x269   :  { %v830_v19 = vadd.f32 1e-05, %v826_v15  ;;  %v832_v20 = vadd.f32 1e-05, %v828_v16 }
 0x26a   :  { %v827_v21 = vmul.f32 0.0625, %v811_v17  ;;  %v829_v24 = vmul.f32 0.0625, %v825_v18 }
 0x26b   :  { %8031 = vrsqrt.f32 %v830_v19 }
 0x26c   :  { %8033 = vrsqrt.f32 %v832_v20  ;;  %v831_v25 = vadd.f32 1e-05, %v827_v21  ;;  %v833_v28 = vadd.f32 1e-05, %v829_v24 }
 0x26e   :  { %8035 = vrsqrt.f32 %v831_v25 }
 0x26f   :  { %8037 = vrsqrt.f32 %v833_v28 }
 0x278   :  { %v8032_v35 = vpop.eup %8031 }
 0x279   :  { %v8034_v36 = vpop.eup %8033  ;;  %v838_v37 = vmul.f32 %v8032_v35, %v8996_v8 }
 0x27a   :  { %v840_v38 = vmul.f32 %v8034_v36, %v8973_v1 }
 0x27b   :  { %v8036_v39 = vpop.eup %8035  ;;  %v845_v44 = vrot.slane %v838_v37, %v844_v29 }
 0x27c   :  { %v8038_v46 = vpop.eup %8037  ;;  %v853_v47 = vrot.slane %v840_v38, %v844_v29  ;;  %v839_v49 = vmul.f32 %v8036_v39, %v9000_v12 }
 0x27d   :  { %v858_v51 = vmul.f32 %v845_v44, %v9016_v30  ;;  %v862_v52 = vmul.f32 %v845_v44, %v9018_v31  ;;  %v841_v50 = vmul.f32 %v8038_v46, %v8975_v2 }
 0x27e   :  { %v860_v53 = vmul.f32 %v853_v47, %v9020_v32  ;;  %v864_v54 = vmul.f32 %v853_v47, %v9022_v33  ;;  %v849_v55 = vrot.slane %v839_v49, %v844_v29 }
 0x27f   :  { %v9061_v57 = vadd.f32 %v869_v45, %v858_v51  ;;  %v9063_v58 = vadd.f32 %v869_v45, %v862_v52  ;;  %v857_v22 = vrot.slane %v841_v50, %v844_v29 }
 0x280   :  { %v9066_v23 = vadd.f32 %v877_v48, %v860_v53  ;;  %v9068_v30 = vadd.f32 %v877_v48, %v864_v54  ;;  %v859_v31 = vmul.f32 %v849_v55, %v9032_v40  ;;  %v863_v32 = vmul.f32 %v849_v55, %v9034_v41 }
 0x281   :  { %v890_v33 = vmax.f32 %v9061_v57, 0.0  ;;  %v894_v26 = vmax.f32 %v9063_v58, 0.0  ;;  %v861_v27 = vmul.f32 %v857_v22, %v9036_v42  ;;  %v865_v60 = vmul.f32 %v857_v22, %v9038_v43 }
 0x282   :  { %v892_v61 = vmax.f32 %v9066_v23, 0.0  ;;  %v896_v62 = vmax.f32 %v9068_v30, 0.0  ;;  %v883_v63 = vadd.f32 %v873_v56, %v859_v31  ;;  %v887_v0 = vadd.f32 %v873_v56, %v863_v32 }
 0x283   :  { %v885_v9 = vadd.f32 %v881_v59, %v861_v27  ;;  %v889_v10 = vadd.f32 %v881_v59, %v865_v60 }
 0x284   :  { %v891_v11 = vmax.f32 %v883_v63, 0.0  ;;  %v895_v40 = vmax.f32 %v887_v0, 0.0 }
 0x285   :  { %v893_v13 = vmax.f32 %v885_v9, 0.0  ;;  %v897_v41 = vmax.f32 %v889_v10, 0.0 }
 0x286   :  { %8911 = dma.done.wait [#allocation5 + $0x1], 32768 }
 0x287   :  { %8912 = vsyncadd [#allocation5 + $0x1], 4294934528  ;;  %v9078_v14 = vpack.c.bf16 %v895_v40, %v891_v11  ;;  %v9080_v15 = vpack.c.bf16 %v897_v41, %v893_v13  ;;  %v958_v42 = vld [vmem:[#allocation3 + $0x1c0] sm:$0xff]  ;;  %v947_v58 = vld [vmem:[#allocation3 + $0x168] sm:$0xff] }
 0x288   :  { %v962_v43 = vld [vmem:[#allocation3 + $0x1e0] sm:$0xff] }
 0x289   :  { %2474 = vmatprep.mubr.bf16.mxu1 %v9078_v14  ;;  %2517 = vmatprep.mubr.bf16.mxu0 %v9080_v15  ;;  %v1086_v16 = vld [vmem:[#allocation3 + $0x5c0] sm:$0xff]  ;;  %v7139_v17 = vcombine.high %v958_v42, %v962_v43  ;;  %v7138_v19 = vcombine.low %v958_v42, %v962_v43 }
 0x28a   :  { %v1090_v18 = vld [vmem:[#allocation3 + $0x5e0] sm:$0xff] }
 0x28b   :  { %v950_v20 = vld [vmem:[#allocation3 + $0x180] sm:$0xff]  ;;  %v7267_v24 = vcombine.high %v1086_v16, %v1090_v18  ;;  %v7266_v25 = vcombine.low %v1086_v16, %v1090_v18  ;;  %2442 = vmatprep.subr.bf16.mxu1 %v7139_v17 }
 0x28c   :  { %v954_v21 = vld [vmem:[#allocation3 + $0x1a0] sm:$0xff]  ;;  %2443 = vmatpush1.bf16.msra.mxu1 %v7138_v19 }
 0x28d   :  { %v7131_v28 = vcombine.high %v950_v20, %v954_v21  ;;  %v1078_v29 = vld [vmem:[#allocation3 + $0x580] sm:$0xff]  ;;  %2485 = vmatprep.subr.bf16.mxu0 %v7267_v24  ;;  %v7130_v44 = vcombine.low %v950_v20, %v954_v21 }
 0x28e   :  { %v1082_v34 = vld [vmem:[#allocation3 + $0x5a0] sm:$0xff]  ;;  %2486 = vmatpush1.bf16.msra.mxu0 %v7266_v25 }
 0x28f   :  { %v942_v35 = vld [vmem:[#allocation3 + $0x140] sm:$0xff]  ;;  %v7259_v36 = vcombine.high %v1078_v29, %v1082_v34  ;;  %2444 = vmatprep.subr.bf16.mxu1 %v7131_v28  ;;  %v7258_v45 = vcombine.low %v1078_v29, %v1082_v34 }
 0x290   :  { %v946_v37 = vld [vmem:[#allocation3 + $0x160] sm:$0xff]  ;;  %2445 = vmatpush1.bf16.msra.mxu1 %v7130_v44 }
 0x291   :  { %v1070_v38 = vld [vmem:[#allocation3 + $0x540] sm:$0xff]  ;;  %v7123_v46 = vcombine.high %v942_v35, %v946_v37  ;;  %2487 = vmatprep.subr.bf16.mxu0 %v7259_v36  ;;  %v7122_v50 = vcombine.low %v942_v35, %v946_v37 }
 0x292   :  { %v1074_v39 = vld [vmem:[#allocation3 + $0x560] sm:$0xff]  ;;  %2488 = vmatpush1.bf16.msra.mxu0 %v7258_v45 }
 0x293   :  { %v7251_v47 = vcombine.high %v1070_v38, %v1074_v39  ;;  %v934_v48 = vld [vmem:[#allocation3 + $0x100] sm:$0xff]  ;;  %2446 = vmatprep.subr.bf16.mxu1 %v7123_v46  ;;  %v7250_v53 = vcombine.low %v1070_v38, %v1074_v39 }
 0x294   :  { %v938_v49 = vld [vmem:[#allocation3 + $0x120] sm:$0xff]  ;;  %2447 = vmatpush1.bf16.msra.mxu1 %v7122_v50 }
 0x295   :  { %v1062_v51 = vld [vmem:[#allocation3 + $0x500] sm:$0xff]  ;;  %v7115_v54 = vcombine.high %v934_v48, %v938_v49  ;;  %2489 = vmatprep.subr.bf16.mxu0 %v7251_v47  ;;  %v7114_v32 = vcombine.low %v934_v48, %v938_v49 }
 0x296   :  { %v1066_v52 = vld [vmem:[#allocation3 + $0x520] sm:$0xff]  ;;  %2490 = vmatpush1.bf16.msra.mxu0 %v7250_v53 }
 0x297   :  { %v7243_v55 = vcombine.high %v1062_v51, %v1066_v52  ;;  %v926_v56 = vld [vmem:[#allocation3 + $0xc0] sm:$0xff]  ;;  %2448 = vmatprep.subr.bf16.mxu1 %v7115_v54  ;;  %v7242_v27 = vcombine.low %v1062_v51, %v1066_v52 }
 0x298   :  { %v930_v22 = vld [vmem:[#allocation3 + $0xe0] sm:$0xff]  ;;  %2449 = vmatpush1.bf16.msra.mxu1 %v7114_v32 }
 0x299   :  { %v1054_v59 = vld [vmem:[#allocation3 + $0x4c0] sm:$0xff]  ;;  %v7107_v60 = vcombine.high %v926_v56, %v930_v22  ;;  %2491 = vmatprep.subr.bf16.mxu0 %v7243_v55  ;;  %v7106_v40 = vcombine.low %v926_v56, %v930_v22 }
 0x29a   :  { %v1058_v31 = vld [vmem:[#allocation3 + $0x4e0] sm:$0xff]  ;;  %2492 = vmatpush1.bf16.msra.mxu0 %v7242_v27 }
 0x29b   :  { %v7235_v63 = vcombine.high %v1054_v59, %v1058_v31  ;;  %v918_v0 = vld [vmem:[#allocation3 + $0x80] sm:$0xff]  ;;  %2450 = vmatprep.subr.bf16.mxu1 %v7107_v60  ;;  %v7234_v13 = vcombine.low %v1054_v59, %v1058_v31 }
 0x29c   :  { %v922_v9 = vld [vmem:[#allocation3 + $0xa0] sm:$0xff]  ;;  %2451 = vmatpush1.bf16.msra.mxu1 %v7106_v40 }
 0x29d   :  { %v1046_v10 = vld [vmem:[#allocation3 + $0x480] sm:$0xff]  ;;  %v7099_v41 = vcombine.high %v918_v0, %v922_v9  ;;  %2493 = vmatprep.subr.bf16.mxu0 %v7235_v63  ;;  %v7098_v19 = vcombine.low %v918_v0, %v922_v9 }
 0x29e   :  { %v1050_v11 = vld [vmem:[#allocation3 + $0x4a0] sm:$0xff]  ;;  %2494 = vmatpush1.bf16.msra.mxu0 %v7234_v13 }
 0x29f   :  { %v7227_v42 = vcombine.high %v1046_v10, %v1050_v11  ;;  %v910_v43 = vld [vmem:[#allocation3 + $0x40] sm:$0xff]  ;;  %2452 = vmatprep.subr.bf16.mxu1 %v7099_v41  ;;  %v7226_v20 = vcombine.low %v1046_v10, %v1050_v11 }
 0x2a0   :  { %v914_v16 = vld [vmem:[#allocation3 + $0x60] sm:$0xff]  ;;  %2453 = vmatpush1.bf16.msra.mxu1 %v7098_v19 }
 0x2a1   :  { %v1038_v17 = vld [vmem:[#allocation3 + $0x440] sm:$0xff]  ;;  %v7091_v21 = vcombine.high %v910_v43, %v914_v16  ;;  %2495 = vmatprep.subr.bf16.mxu0 %v7227_v42  ;;  %v7090_v35 = vcombine.low %v910_v43, %v914_v16 }
 0x2a2   :  { %v1042_v18 = vld [vmem:[#allocation3 + $0x460] sm:$0xff]  ;;  %2496 = vmatpush1.bf16.msra.mxu0 %v7226_v20 }
 0x2a3   :  { %v7219_v24 = vcombine.high %v1038_v17, %v1042_v18  ;;  %v902_v25 = vld [vmem:[#allocation3] sm:$0xff]  ;;  %2454 = vmatprep.subr.bf16.mxu1 %v7091_v21  ;;  %v7218_v36 = vcombine.low %v1038_v17, %v1042_v18 }
 0x2a4   :  { %v906_v28 = vld [vmem:[#allocation3 + $0x20] sm:$0xff]  ;;  %2455 = vmatpush1.bf16.msra.mxu1 %v7090_v35 }
 0x2a5   :  { %v1030_v29 = vld [vmem:[#allocation3 + $0x400] sm:$0xff]  ;;  %v7083_v37 = vcombine.high %v902_v25, %v906_v28  ;;  %2497 = vmatprep.subr.bf16.mxu0 %v7219_v24  ;;  %v7082_v47 = vcombine.low %v902_v25, %v906_v28 }
 0x2a6   :  { %v1034_v34 = vld [vmem:[#allocation3 + $0x420] sm:$0xff]  ;;  %2498 = vmatpush1.bf16.msra.mxu0 %v7218_v36 }
 0x2a7   :  { %v7211_v38 = vcombine.high %v1030_v29, %v1034_v34  ;;  %v1022_v39 = vld [vmem:[#allocation3 + $0x3c0] sm:$0xff]  ;;  %2456 = vmatprep.subr.bf16.mxu1 %v7083_v37  ;;  %v7210_v48 = vcombine.low %v1030_v29, %v1034_v34 }
 0x2a8   :  { %v1026_v44 = vld [vmem:[#allocation3 + $0x3e0] sm:$0xff]  ;;  %2457 = vmatpush1.bf16.msra.mxu1 %v7082_v47 }
 0x2a9   :  { %v1150_v45 = vld [vmem:[#allocation3 + $0x7c0] sm:$0xff]  ;;  %v7203_v49 = vcombine.high %v1022_v39, %v1026_v44  ;;  %2499 = vmatprep.subr.bf16.mxu0 %v7211_v38  ;;  %v7202_v55 = vcombine.low %v1022_v39, %v1026_v44 }
 0x2aa   :  { %v1154_v46 = vld [vmem:[#allocation3 + $0x7e0] sm:$0xff]  ;;  %2500 = vmatpush1.bf16.msra.mxu0 %v7210_v48 }
 0x2ab   :  { %v7331_v51 = vcombine.high %v1150_v45, %v1154_v46  ;;  %v1014_v52 = vld [vmem:[#allocation3 + $0x380] sm:$0xff]  ;;  %2458 = vmatprep.subr.bf16.mxu1 %v7203_v49  ;;  %v7330_v56 = vcombine.low %v1150_v45, %v1154_v46 }
 0x2ac   :  { %v1018_v50 = vld [vmem:[#allocation3 + $0x3a0] sm:$0xff]  ;;  %2459 = vmatpush2.bf16.msra.mxu1 %v7202_v55 }
 0x2ad   :  { %v1142_v53 = vld [vmem:[#allocation3 + $0x780] sm:$0xff]  ;;  %v7195_v22 = vcombine.high %v1014_v52, %v1018_v50  ;;  %2501 = vmatprep.subr.bf16.mxu0 %v7331_v51  ;;  %v7194_v63 = vcombine.low %v1014_v52, %v1018_v50 }
 0x2ae   :  { %v1146_v54 = vld [vmem:[#allocation3 + $0x7a0] sm:$0xff]  ;;  %2502 = vmatpush2.bf16.msra.mxu0 %v7330_v56 }
 0x2af   :  { %v7323_v59 = vcombine.high %v1142_v53, %v1146_v54  ;;  %v1006_v31 = vld [vmem:[#allocation3 + $0x340] sm:$0xff]  ;;  %2460 = vmatprep.subr.bf16.mxu1 %v7195_v22  ;;  %v7322_v0 = vcombine.low %v1142_v53, %v1146_v54 }
 0x2b0   :  { %v1010_v32 = vld [vmem:[#allocation3 + $0x360] sm:$0xff]  ;;  %2461 = vmatpush2.bf16.msra.mxu1 %v7194_v63  ;;  %v963_v63 = vld [vmem:[#allocation3 + $0x1e8] sm:$0xff] }
 0x2b1   :  { %v1134_v27 = vld [vmem:[#allocation3 + $0x740] sm:$0xff]  ;;  %v7187_v9 = vcombine.high %v1006_v31, %v1010_v32  ;;  %2503 = vmatprep.subr.bf16.mxu0 %v7323_v59  ;;  %v7186_v42 = vcombine.low %v1006_v31, %v1010_v32 }
 0x2b2   :  { %v1138_v60 = vld [vmem:[#allocation3 + $0x760] sm:$0xff]  ;;  %2504 = vmatpush2.bf16.msra.mxu0 %v7322_v0  ;;  %v1087_v0 = vld [vmem:[#allocation3 + $0x5c8] sm:$0xff] }
 0x2b3   :  { %v7315_v10 = vcombine.high %v1134_v27, %v1138_v60  ;;  %v998_v11 = vld [vmem:[#allocation3 + $0x300] sm:$0xff]  ;;  %2462 = vmatprep.subr.bf16.mxu1 %v7187_v9  ;;  %v7314_v43 = vcombine.low %v1134_v27, %v1138_v60  ;;  %v959_v60 = vld [vmem:[#allocation3 + $0x1c8] sm:$0xff] }
 0x2b4   :  { %v1002_v40 = vld [vmem:[#allocation3 + $0x320] sm:$0xff]  ;;  %2463 = vmatpush2.bf16.msra.mxu1 %v7186_v42  ;;  %v1091_v9 = vld [vmem:[#allocation3 + $0x5e8] sm:$0xff] }
 0x2b5   :  { %v1126_v13 = vld [vmem:[#allocation3 + $0x700] sm:$0xff]  ;;  %v7179_v16 = vcombine.high %v998_v11, %v1002_v40  ;;  %2505 = vmatprep.subr.bf16.mxu0 %v7315_v10  ;;  %v7178_v24 = vcombine.low %v998_v11, %v1002_v40  ;;  %v7141_v40 = vcombine.high %v959_v60, %v963_v63  ;;  %v955_v42 = vld [vmem:[#allocation3 + $0x1a8] sm:$0xff] }
 0x2b6   :  { %v1130_v41 = vld [vmem:[#allocation3 + $0x720] sm:$0xff]  ;;  %2506 = vmatpush2.bf16.msra.mxu0 %v7314_v43  ;;  %v9088_v43 = vpack.c.bf16 %v894_v26, %v890_v33  ;;  %v1071_v33 = vld [vmem:[#allocation3 + $0x548] sm:$0xff] }
 0x2b7   :  { %v7307_v17 = vcombine.high %v1126_v13, %v1130_v41  ;;  %v990_v18 = vld [vmem:[#allocation3 + $0x2c0] sm:$0xff]  ;;  %2464 = vmatprep.subr.bf16.mxu1 %v7179_v16  ;;  %v7306_v25 = vcombine.low %v1126_v13, %v1130_v41  ;;  %v7269_v13 = vcombine.high %v1087_v0, %v1091_v9  ;;  %v951_v41 = vld [vmem:[#allocation3 + $0x188] sm:$0xff] }
 0x2b8   :  { %v994_v19 = vld [vmem:[#allocation3 + $0x2e0] sm:$0xff]  ;;  %2465 = vmatpush2.bf16.msra.mxu1 %v7178_v24  ;;  %v1079_v16 = vld [vmem:[#allocation3 + $0x588] sm:$0xff]  ;;  %v7132_v23 = vcombine.low %v951_v41, %v955_v42 }
 0x2b9   :  { %v1118_v20 = vld [vmem:[#allocation3 + $0x6c0] sm:$0xff]  ;;  %v7171_v28 = vcombine.high %v990_v18, %v994_v19  ;;  %2507 = vmatprep.subr.bf16.mxu0 %v7307_v17  ;;  %v7170_v38 = vcombine.low %v990_v18, %v994_v19  ;;  %v1083_v17 = vld [vmem:[#allocation3 + $0x5a8] sm:$0xff]  ;;  %v9094_v18 = vpack.c.bf16 %v896_v62, %v892_v61  ;;  %v7140_v19 = vcombine.low %v959_v60, %v963_v63 }
 0x2ba   :  { %v1122_v21 = vld [vmem:[#allocation3 + $0x6e0] sm:$0xff]  ;;  %2508 = vmatpush2.bf16.msra.mxu0 %v7306_v25  ;;  %v7261_v57 = vcombine.high %v1079_v16, %v1083_v17  ;;  %v943_v24 = vld [vmem:[#allocation3 + $0x148] sm:$0xff]  ;;  %v7260_v30 = vcombine.low %v1079_v16, %v1083_v17 }
 0x2bb   :  { %v7299_v29 = vcombine.high %v1118_v20, %v1122_v21  ;;  %v982_v34 = vld [vmem:[#allocation3 + $0x280] sm:$0xff]  ;;  %2466 = vmatprep.subr.bf16.mxu1 %v7171_v28  ;;  %v7298_v39 = vcombine.low %v1118_v20, %v1122_v21  ;;  %v7268_v20 = vcombine.low %v1087_v0, %v1091_v9  ;;  %v7133_v21 = vcombine.high %v951_v41, %v955_v42  ;;  %v1075_v26 = vld [vmem:[#allocation3 + $0x568] sm:$0xff] }
 0x2bc   :  { %v986_v35 = vld [vmem:[#allocation3 + $0x2a0] sm:$0xff]  ;;  %2467 = vmatpush2.bf16.msra.mxu1 %v7170_v38  ;;  %v7125_v61 = vcombine.high %v943_v24, %v947_v58  ;;  %v7253_v62 = vcombine.high %v1071_v33, %v1075_v26  ;;  %v935_v25 = vld [vmem:[#allocation3 + $0x108] sm:$0xff] }
 0x2bd   :  { %v1110_v36 = vld [vmem:[#allocation3 + $0x680] sm:$0xff]  ;;  %v7163_v44 = vcombine.high %v982_v34, %v986_v35  ;;  %2509 = vmatprep.subr.bf16.mxu0 %v7299_v29  ;;  %v7162_v51 = vcombine.low %v982_v34, %v986_v35  ;;  %v939_v28 = vld [vmem:[#allocation3 + $0x128] sm:$0xff]  ;;  %v7124_v35 = vcombine.low %v943_v24, %v947_v58 }
 0x2be   :  { %v1114_v37 = vld [vmem:[#allocation3 + $0x6a0] sm:$0xff]  ;;  %2510 = vmatpush2.bf16.msra.mxu0 %v7298_v39  ;;  %v1063_v29 = vld [vmem:[#allocation3 + $0x508] sm:$0xff] }
 0x2bf   :  { %v7291_v45 = vcombine.high %v1110_v36, %v1114_v37  ;;  %v974_v46 = vld [vmem:[#allocation3 + $0x240] sm:$0xff]  ;;  %2468 = vmatprep.subr.bf16.mxu1 %v7163_v44  ;;  %v7290_v52 = vcombine.low %v1110_v36, %v1114_v37  ;;  %v1067_v34 = vld [vmem:[#allocation3 + $0x528] sm:$0xff]  ;;  %v7252_v36 = vcombine.low %v1071_v33, %v1075_v26  ;;  %v7117_v37 = vcombine.high %v935_v25, %v939_v28 }
 0x2c0   :  { %v978_v47 = vld [vmem:[#allocation3 + $0x260] sm:$0xff]  ;;  %2469 = vmatpush2.bf16.msra.mxu1 %v7162_v51  ;;  %v7245_v38 = vcombine.high %v1063_v29, %v1067_v34  ;;  %v927_v39 = vld [vmem:[#allocation3 + $0xc8] sm:$0xff] }
 0x2c1   :  { %v1102_v48 = vld [vmem:[#allocation3 + $0x640] sm:$0xff]  ;;  %v7155_v50 = vcombine.high %v974_v46, %v978_v47  ;;  %2511 = vmatprep.subr.bf16.mxu0 %v7291_v45  ;;  %v7154_v59 = vcombine.low %v974_v46, %v978_v47  ;;  %v931_v44 = vld [vmem:[#allocation3 + $0xe8] sm:$0xff]  ;;  %v7116_v47 = vcombine.low %v935_v25, %v939_v28 }
 0x2c2   :  { %v1106_v49 = vld [vmem:[#allocation3 + $0x660] sm:$0xff]  ;;  %2512 = vmatpush2.bf16.msra.mxu0 %v7290_v52  ;;  %v1055_v45 = vld [vmem:[#allocation3 + $0x4c8] sm:$0xff] }
 0x2c3   :  { %v7283_v53 = vcombine.high %v1102_v48, %v1106_v49  ;;  %v966_v54 = vld [vmem:[#allocation3 + $0x200] sm:$0xff]  ;;  %2470 = vmatprep.subr.bf16.mxu1 %v7155_v50  ;;  %v7282_v31 = vcombine.low %v1102_v48, %v1106_v49  ;;  %v1059_v46 = vld [vmem:[#allocation3 + $0x4e8] sm:$0xff]  ;;  %v7244_v48 = vcombine.low %v1063_v29, %v1067_v34  ;;  %v7109_v49 = vcombine.high %v927_v39, %v931_v44 }
 0x2c4   :  { %v970_v55 = vld [vmem:[#allocation3 + $0x220] sm:$0xff]  ;;  %2471 = vmatpush2.bf16.msra.mxu1 %v7154_v59  ;;  %v7237_v51 = vcombine.high %v1055_v45, %v1059_v46  ;;  %v919_v52 = vld [vmem:[#allocation3 + $0x88] sm:$0xff] }
 0x2c5   :  { %v1094_v56 = vld [vmem:[#allocation3 + $0x600] sm:$0xff]  ;;  %v7147_v32 = vcombine.high %v966_v54, %v970_v55  ;;  %2513 = vmatprep.subr.bf16.mxu0 %v7283_v53  ;;  %v7146_v10 = vcombine.low %v966_v54, %v970_v55  ;;  %v923_v50 = vld [vmem:[#allocation3 + $0xa8] sm:$0xff]  ;;  %v7108_v55 = vcombine.low %v927_v39, %v931_v44 }
 0x2c6   :  { %v1098_v22 = vld [vmem:[#allocation3 + $0x620] sm:$0xff]  ;;  %2514 = vmatpush2.bf16.msra.mxu0 %v7282_v31  ;;  %v1047_v53 = vld [vmem:[#allocation3 + $0x488] sm:$0xff]  ;;  %v7100_v63 = vcombine.low %v919_v52, %v923_v50 }
 0x2c7   :  { %v7275_v27 = vcombine.high %v1094_v56, %v1098_v22  ;;  %2472 = vmatprep.subr.bf16.mxu1 %v7147_v32  ;;  %v7274_v11 = vcombine.low %v1094_v56, %v1098_v22  ;;  %v1051_v54 = vld [vmem:[#allocation3 + $0x4a8] sm:$0xff]  ;;  %v7236_v56 = vcombine.low %v1055_v45, %v1059_v46  ;;  %v7101_v22 = vcombine.high %v919_v52, %v923_v50 }
 0x2c8   :  { %2473 = vmatpush2.bf16.msra.mxu1 %v7146_v10  ;;  %v7229_v59 = vcombine.high %v1047_v53, %v1051_v54  ;;  %v911_v31 = vld [vmem:[#allocation3 + $0x48] sm:$0xff]  ;;  %v7228_v0 = vcombine.low %v1047_v53, %v1051_v54 }
 0x2c9   :  { %2515 = vmatprep.subr.bf16.mxu0 %v7275_v27  ;;  %2528 = vmatprep.subr.bf16.mxu1 %v7141_v40  ;;  %v915_v32 = vld [vmem:[#allocation3 + $0x68] sm:$0xff] }
 0x2ca   :  { %2516 = vmatpush2.bf16.msra.mxu0 %v7274_v11  ;;  %v1039_v27 = vld [vmem:[#allocation3 + $0x448] sm:$0xff]  ;;  %v7093_v9 = vcombine.high %v911_v31, %v915_v32  ;;  %v7092_v42 = vcombine.low %v911_v31, %v915_v32 }
 0x2cb   :  { %2571 = vmatprep.subr.bf16.mxu0 %v7269_v13  ;;  %2475 = vmatmul.mubr.bf16.vlgmr.msra.gmra.mxu1 %v9088_v43  ;;  %v1043_v60 = vld [vmem:[#allocation3 + $0x468] sm:$0xff] }
 0x2cc   :  { %2529 = vmatpush1.bf16.msra.mxu1 %v7140_v19  ;;  %2560 = vmatprep.mubr.bf16.mxu1 %v9078_v14  ;;  %v7221_v10 = vcombine.high %v1039_v27, %v1043_v60  ;;  %v903_v11 = vld [vmem:[#allocation3 + $0x8] sm:$0xff]  ;;  %v7220_v16 = vcombine.low %v1039_v27, %v1043_v60 }
 0x2cd   :  { %2518 = vmatmul.mubr.bf16.vlgmr.msra.gmra.mxu0 %v9094_v18  ;;  %2530 = vmatprep.subr.bf16.mxu1 %v7133_v21  ;;  %v907_v40 = vld [vmem:[#allocation3 + $0x28] sm:$0xff] }
 0x2ce   :  { %2572 = vmatpush1.bf16.msra.mxu0 %v7268_v20  ;;  %2603 = vmatprep.mubr.bf16.mxu0 %v9080_v15  ;;  %v1031_v13 = vld [vmem:[#allocation3 + $0x408] sm:$0xff]  ;;  %v7085_v17 = vcombine.high %v903_v11, %v907_v40  ;;  %v7084_v58 = vcombine.low %v903_v11, %v907_v40 }
 0x2cf   :  { %2573 = vmatprep.subr.bf16.mxu0 %v7261_v57  ;;  %v1035_v41 = vld [vmem:[#allocation3 + $0x428] sm:$0xff] }
 0x2d0   :  { %2531 = vmatpush1.bf16.msra.mxu1 %v7132_v23  ;;  %v7213_v19 = vcombine.high %v1031_v13, %v1035_v41  ;;  %v1023_v20 = vld [vmem:[#allocation3 + $0x3c8] sm:$0xff]  ;;  %v7212_v33 = vcombine.low %v1031_v13, %v1035_v41 }
 0x2d1   :  { %2532 = vmatprep.subr.bf16.mxu1 %v7125_v61  ;;  %v1027_v21 = vld [vmem:[#allocation3 + $0x3e8] sm:$0xff] }
 0x2d2   :  { %2574 = vmatpush1.bf16.msra.mxu0 %v7260_v30  ;;  %v1151_v57 = vld [vmem:[#allocation3 + $0x7c8] sm:$0xff]  ;;  %v7205_v26 = vcombine.high %v1023_v20, %v1027_v21  ;;  %v7204_v28 = vcombine.low %v1023_v20, %v1027_v21 }
 0x2d3   :  { %2575 = vmatprep.subr.bf16.mxu0 %v7253_v62  ;;  %v1155_v24 = vld [vmem:[#allocation3 + $0x7e8] sm:$0xff] }
 0x2d4   :  { %2533 = vmatpush1.bf16.msra.mxu1 %v7124_v35  ;;  %v7333_v23 = vcombine.high %v1151_v57, %v1155_v24  ;;  %v1015_v30 = vld [vmem:[#allocation3 + $0x388] sm:$0xff]  ;;  %v7332_v29 = vcombine.low %v1151_v57, %v1155_v24 }
 0x2d5   :  { %2534 = vmatprep.subr.bf16.mxu1 %v7117_v37  ;;  %v1019_v61 = vld [vmem:[#allocation3 + $0x3a8] sm:$0xff] }
 0x2d6   :  { %2576 = vmatpush1.bf16.msra.mxu0 %v7252_v36  ;;  %v1143_v62 = vld [vmem:[#allocation3 + $0x788] sm:$0xff]  ;;  %v7197_v34 = vcombine.high %v1015_v30, %v1019_v61  ;;  %v7196_v44 = vcombine.low %v1015_v30, %v1019_v61 }
 0x2d7   :  { %2577 = vmatprep.subr.bf16.mxu0 %v7245_v38  ;;  %v1147_v25 = vld [vmem:[#allocation3 + $0x7a8] sm:$0xff] }
 0x2d8   :  { %2535 = vmatpush1.bf16.msra.mxu1 %v7116_v47  ;;  %v7325_v35 = vcombine.high %v1143_v62, %v1147_v25  ;;  %v1007_v36 = vld [vmem:[#allocation3 + $0x348] sm:$0xff]  ;;  %v7324_v45 = vcombine.low %v1143_v62, %v1147_v25 }
 0x2d9   :  { %2536 = vmatprep.subr.bf16.mxu1 %v7109_v49  ;;  %v1011_v37 = vld [vmem:[#allocation3 + $0x368] sm:$0xff] }
 0x2da   :  { %2578 = vmatpush1.bf16.msra.mxu0 %v7244_v48  ;;  %v1135_v38 = vld [vmem:[#allocation3 + $0x748] sm:$0xff]  ;;  %v7189_v46 = vcombine.high %v1007_v36, %v1011_v37  ;;  %v7188_v50 = vcombine.low %v1007_v36, %v1011_v37  ;;  %v1092_v36 = vld [vmem:[#allocation3 + $0x5f0] sm:$0xff] }
 0x2db   :  { %2579 = vmatprep.subr.bf16.mxu0 %v7237_v51  ;;  %v1139_v39 = vld [vmem:[#allocation3 + $0x768] sm:$0xff] }
 0x2dc   :  { %2537 = vmatpush1.bf16.msra.mxu1 %v7108_v55  ;;  %v7317_v47 = vcombine.high %v1135_v38, %v1139_v39  ;;  %v999_v48 = vld [vmem:[#allocation3 + $0x308] sm:$0xff]  ;;  %v7316_v53 = vcombine.low %v1135_v38, %v1139_v39 }
 0x2dd   :  { %2538 = vmatprep.subr.bf16.mxu1 %v7101_v22  ;;  %v1003_v49 = vld [vmem:[#allocation3 + $0x328] sm:$0xff] }
 0x2de   :  { %2580 = vmatpush1.bf16.msra.mxu0 %v7236_v56  ;;  %v1127_v51 = vld [vmem:[#allocation3 + $0x708] sm:$0xff]  ;;  %v7181_v54 = vcombine.high %v999_v48, %v1003_v49  ;;  %v7180_v32 = vcombine.low %v999_v48, %v1003_v49  ;;  %v1084_v48 = vld [vmem:[#allocation3 + $0x5b0] sm:$0xff] }
 0x2df   :  { %2581 = vmatprep.subr.bf16.mxu0 %v7229_v59  ;;  %v1131_v52 = vld [vmem:[#allocation3 + $0x728] sm:$0xff] }
 0x2e0   :  { %2539 = vmatpush1.bf16.msra.mxu1 %v7100_v63  ;;  %v7309_v55 = vcombine.high %v1127_v51, %v1131_v52  ;;  %v991_v56 = vld [vmem:[#allocation3 + $0x2c8] sm:$0xff]  ;;  %v7308_v27 = vcombine.low %v1127_v51, %v1131_v52 }
 0x2e1   :  { %2540 = vmatprep.subr.bf16.mxu1 %v7093_v9  ;;  %v995_v22 = vld [vmem:[#allocation3 + $0x2e8] sm:$0xff] }
 0x2e2   :  { %2582 = vmatpush1.bf16.msra.mxu0 %v7228_v0  ;;  %v1119_v59 = vld [vmem:[#allocation3 + $0x6c8] sm:$0xff]  ;;  %v7173_v60 = vcombine.high %v991_v56, %v995_v22  ;;  %v7172_v40 = vcombine.low %v991_v56, %v995_v22  ;;  %v1076_v56 = vld [vmem:[#allocation3 + $0x570] sm:$0xff] }
 0x2e3   :  { %2583 = vmatprep.subr.bf16.mxu0 %v7221_v10  ;;  %v1123_v31 = vld [vmem:[#allocation3 + $0x6e8] sm:$0xff] }
 0x2e4   :  { %2541 = vmatpush1.bf16.msra.mxu1 %v7092_v42  ;;  %v7301_v63 = vcombine.high %v1119_v59, %v1123_v31  ;;  %v983_v0 = vld [vmem:[#allocation3 + $0x288] sm:$0xff]  ;;  %v7300_v13 = vcombine.low %v1119_v59, %v1123_v31 }
 0x2e5   :  { %2542 = vmatprep.subr.bf16.mxu1 %v7085_v17  ;;  %v987_v9 = vld [vmem:[#allocation3 + $0x2a8] sm:$0xff] }
 0x2e6   :  { %2584 = vmatpush1.bf16.msra.mxu0 %v7220_v16  ;;  %v1111_v10 = vld [vmem:[#allocation3 + $0x688] sm:$0xff]  ;;  %v7165_v41 = vcombine.high %v983_v0, %v987_v9  ;;  %v7164_v21 = vcombine.low %v983_v0, %v987_v9  ;;  %v1068_v0 = vld [vmem:[#allocation3 + $0x530] sm:$0xff] }
 0x2e7   :  { %2585 = vmatprep.subr.bf16.mxu0 %v7213_v19  ;;  %v1115_v11 = vld [vmem:[#allocation3 + $0x6a8] sm:$0xff] }
 0x2e8   :  { %2543 = vmatpush1.bf16.msra.mxu1 %v7084_v58  ;;  %v7293_v42 = vcombine.high %v1111_v10, %v1115_v11  ;;  %v975_v16 = vld [vmem:[#allocation3 + $0x248] sm:$0xff]  ;;  %v7292_v57 = vcombine.low %v1111_v10, %v1115_v11 }
 0x2e9   :  { %2544 = vmatprep.subr.bf16.mxu1 %v7205_v26  ;;  %v979_v17 = vld [vmem:[#allocation3 + $0x268] sm:$0xff] }
 0x2ea   :  { %2586 = vmatpush1.bf16.msra.mxu0 %v7212_v33  ;;  %v1103_v19 = vld [vmem:[#allocation3 + $0x648] sm:$0xff]  ;;  %v7157_v24 = vcombine.high %v975_v16, %v979_v17  ;;  %v7156_v61 = vcombine.low %v975_v16, %v979_v17  ;;  %v1060_v16 = vld [vmem:[#allocation3 + $0x4f0] sm:$0xff] }
 0x2eb   :  { %2587 = vmatprep.subr.bf16.mxu0 %v7333_v23  ;;  %v1107_v20 = vld [vmem:[#allocation3 + $0x668] sm:$0xff] }
 0x2ec   :  { %2545 = vmatpush2.bf16.msra.mxu1 %v7204_v28  ;;  %v7285_v58 = vcombine.high %v1103_v19, %v1107_v20  ;;  %v967_v33 = vld [vmem:[#allocation3 + $0x208] sm:$0xff]  ;;  %v7284_v62 = vcombine.low %v1103_v19, %v1107_v20 }
 0x2ed   :  { %2546 = vmatprep.subr.bf16.mxu1 %v7197_v34  ;;  %v971_v26 = vld [vmem:[#allocation3 + $0x228] sm:$0xff]  ;;  %v964_v34 = vld [vmem:[#allocation3 + $0x1f0] sm:$0xff] }
 0x2ee   :  { %2588 = vmatpush2.bf16.msra.mxu0 %v7332_v29  ;;  %v1095_v23 = vld [vmem:[#allocation3 + $0x608] sm:$0xff]  ;;  %v7149_v25 = vcombine.high %v967_v33, %v971_v26  ;;  %v960_v29 = vld [vmem:[#allocation3 + $0x1d0] sm:$0xff]  ;;  %v7148_v37 = vcombine.low %v967_v33, %v971_v26 }
 0x2ef   :  { %2589 = vmatprep.subr.bf16.mxu0 %v7325_v35  ;;  %v1099_v30 = vld [vmem:[#allocation3 + $0x628] sm:$0xff]  ;;  %v1088_v35 = vld [vmem:[#allocation3 + $0x5d0] sm:$0xff]  ;;  %v7143_v39 = vcombine.high %v960_v29, %v964_v34  ;;  %v7142_v49 = vcombine.low %v960_v29, %v964_v34 }
 0x2f0   :  { %2547 = vmatpush2.bf16.msra.mxu1 %v7196_v44  ;;  %v7277_v28 = vcombine.high %v1095_v23, %v1099_v30  ;;  %v7276_v38 = vcombine.low %v1095_v23, %v1099_v30  ;;  %v7271_v44 = vcombine.high %v1088_v35, %v1092_v36  ;;  %v7270_v51 = vcombine.low %v1088_v35, %v1092_v36  ;;  %v1052_v33 = vld [vmem:[#allocation3 + $0x4b0] sm:$0xff] }
 0x2f1   :  { %2548 = vmatprep.subr.bf16.mxu1 %v7189_v46  ;;  %v956_v46 = vld [vmem:[#allocation3 + $0x1b0] sm:$0xff] }
 0x2f2   :  { %2590 = vmatpush2.bf16.msra.mxu0 %v7324_v45  ;;  %v952_v45 = vld [vmem:[#allocation3 + $0x190] sm:$0xff] }
 0x2f3   :  { %2591 = vmatprep.subr.bf16.mxu0 %v7317_v47  ;;  %v1080_v47 = vld [vmem:[#allocation3 + $0x590] sm:$0xff]  ;;  %v7135_v52 = vcombine.high %v952_v45, %v956_v46  ;;  %v7134_v22 = vcombine.low %v952_v45, %v956_v46 }
 0x2f4   :  { %2549 = vmatpush2.bf16.msra.mxu1 %v7188_v50  ;;  %v7263_v50 = vcombine.high %v1080_v47, %v1084_v48  ;;  %v7262_v59 = vcombine.low %v1080_v47, %v1084_v48  ;;  %v1044_v29 = vld [vmem:[#allocation3 + $0x470] sm:$0xff] }
 0x2f5   :  { %2550 = vmatprep.subr.bf16.mxu1 %v7181_v54  ;;  %v948_v54 = vld [vmem:[#allocation3 + $0x170] sm:$0xff] }
 0x2f6   :  { %2592 = vmatpush2.bf16.msra.mxu0 %v7316_v53  ;;  %v944_v53 = vld [vmem:[#allocation3 + $0x150] sm:$0xff] }
 0x2f7   :  { %2593 = vmatprep.subr.bf16.mxu0 %v7309_v55  ;;  %v1072_v55 = vld [vmem:[#allocation3 + $0x550] sm:$0xff]  ;;  %v7127_v31 = vcombine.high %v944_v53, %v948_v54  ;;  %v7126_v9 = vcombine.low %v944_v53, %v948_v54 }
 0x2f8   :  { %2551 = vmatpush2.bf16.msra.mxu1 %v7180_v32  ;;  %v7255_v32 = vcombine.high %v1072_v55, %v1076_v56  ;;  %v7254_v10 = vcombine.low %v1072_v55, %v1076_v56  ;;  %v1036_v45 = vld [vmem:[#allocation3 + $0x430] sm:$0xff] }
 0x2f9   :  { %2552 = vmatprep.subr.bf16.mxu1 %v7173_v60  ;;  %v940_v60 = vld [vmem:[#allocation3 + $0x130] sm:$0xff] }
 0x2fa   :  { %2594 = vmatpush2.bf16.msra.mxu0 %v7308_v27  ;;  %v936_v27 = vld [vmem:[#allocation3 + $0x110] sm:$0xff] }
 0x2fb   :  { %2595 = vmatprep.subr.bf16.mxu0 %v7301_v63  ;;  %v1064_v63 = vld [vmem:[#allocation3 + $0x510] sm:$0xff]  ;;  %v7119_v11 = vcombine.high %v936_v27, %v940_v60  ;;  %v7118_v17 = vcombine.low %v936_v27, %v940_v60 }
 0x2fc   :  { %2553 = vmatpush2.bf16.msra.mxu1 %v7172_v40  ;;  %v7247_v40 = vcombine.high %v1064_v63, %v1068_v0  ;;  %v7246_v19 = vcombine.low %v1064_v63, %v1068_v0  ;;  %v1156_v53 = vld [vmem:[#allocation3 + $0x7f0] sm:$0xff] }
 0x2fd   :  { %2554 = vmatprep.subr.bf16.mxu1 %v7165_v41  ;;  %v932_v41 = vld [vmem:[#allocation3 + $0xf0] sm:$0xff] }
 0x2fe   :  { %2596 = vmatpush2.bf16.msra.mxu0 %v7300_v13  ;;  %v928_v13 = vld [vmem:[#allocation3 + $0xd0] sm:$0xff] }
 0x2ff   :  { %2597 = vmatprep.subr.bf16.mxu0 %v7293_v42  ;;  %v1056_v42 = vld [vmem:[#allocation3 + $0x4d0] sm:$0xff]  ;;  %v7111_v20 = vcombine.high %v928_v13, %v932_v41  ;;  %v7110_v26 = vcombine.low %v928_v13, %v932_v41 }
 0x300   :  { %2555 = vmatpush2.bf16.msra.mxu1 %v7164_v21  ;;  %v7239_v21 = vcombine.high %v1056_v42, %v1060_v16  ;;  %v7238_v23 = vcombine.low %v1056_v42, %v1060_v16  ;;  %v1148_v27 = vld [vmem:[#allocation3 + $0x7b0] sm:$0xff] }
 0x301   :  { %2556 = vmatprep.subr.bf16.mxu1 %v7157_v24  ;;  %v924_v24 = vld [vmem:[#allocation3 + $0xb0] sm:$0xff] }
 0x302   :  { %2598 = vmatpush2.bf16.msra.mxu0 %v7292_v57  ;;  %v920_v57 = vld [vmem:[#allocation3 + $0x90] sm:$0xff] }
 0x303   :  { %2599 = vmatprep.subr.bf16.mxu0 %v7285_v58  ;;  %v1048_v58 = vld [vmem:[#allocation3 + $0x490] sm:$0xff]  ;;  %v7103_v30 = vcombine.high %v920_v57, %v924_v24  ;;  %v7102_v34 = vcombine.low %v920_v57, %v924_v24 }
 0x304   :  { %2557 = vmatpush2.bf16.msra.mxu1 %v7156_v61  ;;  %v7231_v61 = vcombine.high %v1048_v58, %v1052_v33  ;;  %v7230_v35 = vcombine.low %v1048_v58, %v1052_v33  ;;  %v1140_v13 = vld [vmem:[#allocation3 + $0x770] sm:$0xff] }
 0x305   :  { %2558 = vmatprep.subr.bf16.mxu1 %v7149_v25  ;;  %v916_v25 = vld [vmem:[#allocation3 + $0x70] sm:$0xff] }
 0x306   :  { %2600 = vmatpush2.bf16.msra.mxu0 %v7284_v62  ;;  %v912_v62 = vld [vmem:[#allocation3 + $0x50] sm:$0xff] }
 0x307   :  { %2601 = vmatprep.subr.bf16.mxu0 %v7277_v28  ;;  %v1040_v28 = vld [vmem:[#allocation3 + $0x450] sm:$0xff]  ;;  %v7095_v36 = vcombine.high %v912_v62, %v916_v25  ;;  %v7094_v46 = vcombine.low %v912_v62, %v916_v25 }
 0x308   :  { %2559 = vmatpush2.bf16.msra.mxu1 %v7148_v37  ;;  %v7223_v37 = vcombine.high %v1040_v28, %v1044_v29  ;;  %v7222_v47 = vcombine.low %v1040_v28, %v1044_v29  ;;  %v1132_v57 = vld [vmem:[#allocation3 + $0x730] sm:$0xff] }
 0x309   :  { %2614 = vmatprep.subr.bf16.mxu1 %v7143_v39  ;;  %v908_v39 = vld [vmem:[#allocation3 + $0x30] sm:$0xff] }
 0x30a   :  { %2602 = vmatpush2.bf16.msra.mxu0 %v7276_v38  ;;  %v904_v38 = vld [vmem:[#allocation3 + $0x10] sm:$0xff] }
 0x30b   :  { %2657 = vmatprep.subr.bf16.mxu0 %v7271_v44  ;;  %2561 = vmatmul.mubr.bf16.vlgmr.msra.gmra.mxu1 %v9088_v43  ;;  %v1032_v44 = vld [vmem:[#allocation3 + $0x410] sm:$0xff]  ;;  %v7087_v48 = vcombine.high %v904_v38, %v908_v39  ;;  %v7086_v54 = vcombine.low %v904_v38, %v908_v39 }
 0x30c   :  { %2615 = vmatpush1.bf16.msra.mxu1 %v7142_v49  ;;  %2646 = vmatprep.mubr.bf16.mxu1 %v9078_v14  ;;  %v7215_v49 = vcombine.high %v1032_v44, %v1036_v45  ;;  %v7214_v55 = vcombine.low %v1032_v44, %v1036_v45  ;;  %v1124_v62 = vld [vmem:[#allocation3 + $0x6f0] sm:$0xff] }
 0x30d   :  { %2604 = vmatmul.mubr.bf16.vlgmr.msra.gmra.mxu0 %v9094_v18  ;;  %2616 = vmatprep.subr.bf16.mxu1 %v7135_v52  ;;  %v1028_v52 = vld [vmem:[#allocation3 + $0x3f0] sm:$0xff] }
 0x30e   :  { %2658 = vmatpush1.bf16.msra.mxu0 %v7270_v51  ;;  %2689 = vmatprep.mubr.bf16.mxu0 %v9080_v15  ;;  %v1024_v51 = vld [vmem:[#allocation3 + $0x3d0] sm:$0xff] }
 0x30f   :  { %2659 = vmatprep.subr.bf16.mxu0 %v7263_v50  ;;  %v1152_v50 = vld [vmem:[#allocation3 + $0x7d0] sm:$0xff]  ;;  %v7207_v56 = vcombine.high %v1024_v51, %v1028_v52  ;;  %v7206_v60 = vcombine.low %v1024_v51, %v1028_v52 }
 0x310   :  { %2617 = vmatpush1.bf16.msra.mxu1 %v7134_v22  ;;  %v7335_v22 = vcombine.high %v1152_v50, %v1156_v53  ;;  %v7334_v63 = vcombine.low %v1152_v50, %v1156_v53  ;;  %v1116_v38 = vld [vmem:[#allocation3 + $0x6b0] sm:$0xff] }
 0x311   :  { %2618 = vmatprep.subr.bf16.mxu1 %v7127_v31  ;;  %v1020_v31 = vld [vmem:[#allocation3 + $0x3b0] sm:$0xff] }
 0x312   :  { %2660 = vmatpush1.bf16.msra.mxu0 %v7262_v59  ;;  %v1016_v59 = vld [vmem:[#allocation3 + $0x390] sm:$0xff] }
 0x313   :  { %2661 = vmatprep.subr.bf16.mxu0 %v7255_v32  ;;  %v1144_v32 = vld [vmem:[#allocation3 + $0x790] sm:$0xff]  ;;  %v7199_v0 = vcombine.high %v1016_v59, %v1020_v31  ;;  %v7198_v41 = vcombine.low %v1016_v59, %v1020_v31 }
 0x314   :  { %2619 = vmatpush1.bf16.msra.mxu1 %v7126_v9  ;;  %v7327_v9 = vcombine.high %v1144_v32, %v1148_v27  ;;  %v7326_v42 = vcombine.low %v1144_v32, %v1148_v27  ;;  %v1108_v51 = vld [vmem:[#allocation3 + $0x670] sm:$0xff] }
 0x315   :  { %2620 = vmatprep.subr.bf16.mxu1 %v7119_v11  ;;  %v1012_v11 = vld [vmem:[#allocation3 + $0x370] sm:$0xff] }
 0x316   :  { %2662 = vmatpush1.bf16.msra.mxu0 %v7254_v10  ;;  %v1008_v10 = vld [vmem:[#allocation3 + $0x350] sm:$0xff] }
 0x317   :  { %2663 = vmatprep.subr.bf16.mxu0 %v7247_v40  ;;  %v1136_v40 = vld [vmem:[#allocation3 + $0x750] sm:$0xff]  ;;  %v7191_v16 = vcombine.high %v1008_v10, %v1012_v11  ;;  %v7190_v24 = vcombine.low %v1008_v10, %v1012_v11  ;;  %v1093_v10 = vld [vmem:[#allocation3 + $0x5f8] sm:$0xff] }
 0x318   :  { %2621 = vmatpush1.bf16.msra.mxu1 %v7118_v17  ;;  %v7319_v17 = vcombine.high %v1136_v40, %v1140_v13  ;;  %v7318_v58 = vcombine.low %v1136_v40, %v1140_v13  ;;  %v1100_v59 = vld [vmem:[#allocation3 + $0x630] sm:$0xff] }
 0x319   :  { %2622 = vmatprep.subr.bf16.mxu1 %v7111_v20  ;;  %v1004_v20 = vld [vmem:[#allocation3 + $0x330] sm:$0xff] }
 0x31a   :  { %2664 = vmatpush1.bf16.msra.mxu0 %v7246_v19  ;;  %v1000_v19 = vld [vmem:[#allocation3 + $0x310] sm:$0xff] }
 0x31b   :  { %2665 = vmatprep.subr.bf16.mxu0 %v7239_v21  ;;  %v1128_v21 = vld [vmem:[#allocation3 + $0x710] sm:$0xff]  ;;  %v7183_v33 = vcombine.high %v1000_v19, %v1004_v20  ;;  %v7182_v25 = vcombine.low %v1000_v19, %v1004_v20  ;;  %v1085_v19 = vld [vmem:[#allocation3 + $0x5b8] sm:$0xff] }
 0x31c   :  { %2623 = vmatpush1.bf16.msra.mxu1 %v7110_v26  ;;  %v7311_v26 = vcombine.high %v1128_v21, %v1132_v57  ;;  %v7310_v28 = vcombine.low %v1128_v21, %v1132_v57 }
 0x31d   :  { %2624 = vmatprep.subr.bf16.mxu1 %v7103_v30  ;;  %v996_v30 = vld [vmem:[#allocation3 + $0x2f0] sm:$0xff] }
 0x31e   :  { %2666 = vmatpush1.bf16.msra.mxu0 %v7238_v23  ;;  %v992_v23 = vld [vmem:[#allocation3 + $0x2d0] sm:$0xff] }
 0x31f   :  { %2667 = vmatprep.subr.bf16.mxu0 %v7231_v61  ;;  %v1120_v61 = vld [vmem:[#allocation3 + $0x6d0] sm:$0xff]  ;;  %v7175_v29 = vcombine.high %v992_v23, %v996_v30  ;;  %v7174_v39 = vcombine.low %v992_v23, %v996_v30  ;;  %v1077_v23 = vld [vmem:[#allocation3 + $0x578] sm:$0xff] }
 0x320   :  { %2625 = vmatpush1.bf16.msra.mxu1 %v7102_v34  ;;  %v7303_v34 = vcombine.high %v1120_v61, %v1124_v62  ;;  %v7302_v44 = vcombine.low %v1120_v61, %v1124_v62 }
 0x321   :  { %2626 = vmatprep.subr.bf16.mxu1 %v7095_v36  ;;  %v988_v36 = vld [vmem:[#allocation3 + $0x2b0] sm:$0xff] }
 0x322   :  { %2668 = vmatpush1.bf16.msra.mxu0 %v7230_v35  ;;  %v984_v35 = vld [vmem:[#allocation3 + $0x290] sm:$0xff] }
 0x323   :  { %2669 = vmatprep.subr.bf16.mxu0 %v7223_v37  ;;  %v1112_v37 = vld [vmem:[#allocation3 + $0x690] sm:$0xff]  ;;  %v7167_v45 = vcombine.high %v984_v35, %v988_v36  ;;  %v7166_v52 = vcombine.low %v984_v35, %v988_v36  ;;  %v1069_v35 = vld [vmem:[#allocation3 + $0x538] sm:$0xff] }
 0x324   :  { %2627 = vmatpush1.bf16.msra.mxu1 %v7094_v46  ;;  %v7295_v46 = vcombine.high %v1112_v37, %v1116_v38  ;;  %v7294_v50 = vcombine.low %v1112_v37, %v1116_v38 }
 0x325   :  { %2628 = vmatprep.subr.bf16.mxu1 %v7087_v48  ;;  %v980_v48 = vld [vmem:[#allocation3 + $0x270] sm:$0xff] }
 0x326   :  { %2670 = vmatpush1.bf16.msra.mxu0 %v7222_v47  ;;  %v976_v47 = vld [vmem:[#allocation3 + $0x250] sm:$0xff] }
 0x327   :  { %2671 = vmatprep.subr.bf16.mxu0 %v7215_v49  ;;  %v1104_v49 = vld [vmem:[#allocation3 + $0x650] sm:$0xff]  ;;  %v7159_v53 = vcombine.high %v976_v47, %v980_v48  ;;  %v7158_v31 = vcombine.low %v976_v47, %v980_v48  ;;  %v1061_v47 = vld [vmem:[#allocation3 + $0x4f8] sm:$0xff] }
 0x328   :  { %2629 = vmatpush1.bf16.msra.mxu1 %v7086_v54  ;;  %v7287_v54 = vcombine.high %v1104_v49, %v1108_v51  ;;  %v7286_v32 = vcombine.low %v1104_v49, %v1108_v51  ;;  %v921_v51 = vld [vmem:[#allocation3 + $0x98] sm:$0xff] }
 0x329   :  { %2630 = vmatprep.subr.bf16.mxu1 %v7207_v56  ;;  %v972_v56 = vld [vmem:[#allocation3 + $0x230] sm:$0xff] }
 0x32a   :  { %2672 = vmatpush1.bf16.msra.mxu0 %v7214_v55  ;;  %v968_v55 = vld [vmem:[#allocation3 + $0x210] sm:$0xff] }
 0x32b   :  { %2673 = vmatprep.subr.bf16.mxu0 %v7335_v22  ;;  %v1096_v22 = vld [vmem:[#allocation3 + $0x610] sm:$0xff]  ;;  %v7151_v27 = vcombine.high %v968_v55, %v972_v56  ;;  %v7150_v11 = vcombine.low %v968_v55, %v972_v56 }
 0x32c   :  { %2631 = vmatpush2.bf16.msra.mxu1 %v7206_v60  ;;  %v7279_v60 = vcombine.high %v1096_v22, %v1100_v59  ;;  %v7278_v40 = vcombine.low %v1096_v22, %v1100_v59  ;;  %v913_v59 = vld [vmem:[#allocation3 + $0x58] sm:$0xff] }
 0x32d   :  { %2632 = vmatprep.subr.bf16.mxu1 %v7199_v0  ;;  %v965_v0 = vld [vmem:[#allocation3 + $0x1f8] sm:$0xff] }
 0x32e   :  { %2674 = vmatpush2.bf16.msra.mxu0 %v7334_v63  ;;  %v961_v63 = vld [vmem:[#allocation3 + $0x1d8] sm:$0xff] }
 0x32f   :  { %2675 = vmatprep.subr.bf16.mxu0 %v7327_v9  ;;  %v1089_v9 = vld [vmem:[#allocation3 + $0x5d8] sm:$0xff]  ;;  %v7145_v13 = vcombine.high %v961_v63, %v965_v0  ;;  %v7144_v20 = vcombine.low %v961_v63, %v965_v0 }
 0x330   :  { %2633 = vmatpush2.bf16.msra.mxu1 %v7198_v41  ;;  %v7273_v41 = vcombine.high %v1089_v9, %v1093_v10  ;;  %v7272_v21 = vcombine.low %v1089_v9, %v1093_v10  ;;  %v905_v10 = vld [vmem:[#allocation3 + $0x18] sm:$0xff] }
 0x331   :  { %2634 = vmatprep.subr.bf16.mxu1 %v7191_v16  ;;  %v957_v16 = vld [vmem:[#allocation3 + $0x1b8] sm:$0xff] }
 0x332   :  { %2676 = vmatpush2.bf16.msra.mxu0 %v7326_v42  ;;  %v953_v42 = vld [vmem:[#allocation3 + $0x198] sm:$0xff] }
 0x333   :  { %2677 = vmatprep.subr.bf16.mxu0 %v7319_v17  ;;  %v1081_v17 = vld [vmem:[#allocation3 + $0x598] sm:$0xff]  ;;  %v7137_v57 = vcombine.high %v953_v42, %v957_v16  ;;  %v7136_v30 = vcombine.low %v953_v42, %v957_v16 }
 0x334   :  { %2635 = vmatpush2.bf16.msra.mxu1 %v7190_v24  ;;  %v7265_v24 = vcombine.high %v1081_v17, %v1085_v19  ;;  %v7264_v61 = vcombine.low %v1081_v17, %v1085_v19  ;;  %v1025_v19 = vld [vmem:[#allocation3 + $0x3d8] sm:$0xff] }
 0x335   :  { %2636 = vmatprep.subr.bf16.mxu1 %v7183_v33  ;;  %v949_v33 = vld [vmem:[#allocation3 + $0x178] sm:$0xff] }
 0x336   :  { %2678 = vmatpush2.bf16.msra.mxu0 %v7318_v58  ;;  %v945_v58 = vld [vmem:[#allocation3 + $0x158] sm:$0xff] }
 0x337   :  { %2679 = vmatprep.subr.bf16.mxu0 %v7311_v26  ;;  %v1073_v26 = vld [vmem:[#allocation3 + $0x558] sm:$0xff]  ;;  %v7129_v62 = vcombine.high %v945_v58, %v949_v33  ;;  %v7128_v36 = vcombine.low %v945_v58, %v949_v33 }
 0x338   :  { %2637 = vmatpush2.bf16.msra.mxu1 %v7182_v25  ;;  %v7257_v25 = vcombine.high %v1073_v26, %v1077_v23  ;;  %v7256_v37 = vcombine.low %v1073_v26, %v1077_v23  ;;  %v1017_v23 = vld [vmem:[#allocation3 + $0x398] sm:$0xff] }
 0x339   :  { %2638 = vmatprep.subr.bf16.mxu1 %v7175_v29  ;;  %v941_v29 = vld [vmem:[#allocation3 + $0x138] sm:$0xff] }
 0x33a   :  { %2680 = vmatpush2.bf16.msra.mxu0 %v7310_v28  ;;  %v937_v28 = vld [vmem:[#allocation3 + $0x118] sm:$0xff] }
 0x33b   :  { %2681 = vmatprep.subr.bf16.mxu0 %v7303_v34  ;;  %v1065_v34 = vld [vmem:[#allocation3 + $0x518] sm:$0xff]  ;;  %v7121_v38 = vcombine.high %v937_v28, %v941_v29  ;;  %v7120_v48 = vcombine.low %v937_v28, %v941_v29 }
 0x33c   :  { %2639 = vmatpush2.bf16.msra.mxu1 %v7174_v39  ;;  %v7249_v39 = vcombine.high %v1065_v34, %v1069_v35 }
 0x33d   :  { %2640 = vmatprep.subr.bf16.mxu1 %v7167_v45  ;;  %v933_v45 = vld [vmem:[#allocation3 + $0xf8] sm:$0xff] }
 0x33e   :  { %2682 = vmatpush2.bf16.msra.mxu0 %v7302_v44  ;;  %v929_v44 = vld [vmem:[#allocation3 + $0xd8] sm:$0xff] }
 0x33f   :  { %2683 = vmatprep.subr.bf16.mxu0 %v7295_v46  ;;  %v1057_v46 = vld [vmem:[#allocation3 + $0x4d8] sm:$0xff]  ;;  %v7113_v49 = vcombine.high %v929_v44, %v933_v45 }
 0x340   :  { %2641 = vmatpush2.bf16.msra.mxu1 %v7166_v52  ;;  %v925_v52 = vld [vmem:[#allocation3 + $0xb8] sm:$0xff]  ;;  %v7240_v55 = vcombine.low %v1057_v46, %v1061_v47 }
 0x341   :  { %2642 = vmatprep.subr.bf16.mxu1 %v7159_v53  ;;  %v1053_v53 = vld [vmem:[#allocation3 + $0x4b8] sm:$0xff]  ;;  %v7105_v56 = vcombine.high %v921_v51, %v925_v52 }
 0x342   :  { %2684 = vmatpush2.bf16.msra.mxu0 %v7294_v50  ;;  %v1049_v50 = vld [vmem:[#allocation3 + $0x498] sm:$0xff] }
 0x343   :  { %2685 = vmatprep.subr.bf16.mxu0 %v7287_v54  ;;  %v7112_v54 = vcombine.low %v929_v44, %v933_v45  ;;  %v7233_v22 = vcombine.high %v1049_v50, %v1053_v53  ;;  %v7232_v63 = vcombine.low %v1049_v50, %v1053_v53  ;;  %v993_v53 = vld [vmem:[#allocation3 + $0x2d8] sm:$0xff] }
 0x344   :  { %2643 = vmatpush2.bf16.msra.mxu1 %v7158_v31  ;;  %v917_v31 = vld [vmem:[#allocation3 + $0x78] sm:$0xff] }
 0x345   :  { %2644 = vmatprep.subr.bf16.mxu1 %v7151_v27  ;;  %v1045_v27 = vld [vmem:[#allocation3 + $0x478] sm:$0xff]  ;;  %v7097_v0 = vcombine.high %v913_v59, %v917_v31 }
 0x346   :  { %2686 = vmatpush2.bf16.msra.mxu0 %v7286_v32  ;;  %v1041_v32 = vld [vmem:[#allocation3 + $0x458] sm:$0xff] }
 0x347   :  { %2687 = vmatprep.subr.bf16.mxu0 %v7279_v60  ;;  %v7104_v60 = vcombine.low %v921_v51, %v925_v52  ;;  %v7225_v9 = vcombine.high %v1041_v32, %v1045_v27  ;;  %v7224_v42 = vcombine.low %v1041_v32, %v1045_v27  ;;  %v985_v27 = vld [vmem:[#allocation3 + $0x298] sm:$0xff] }
 0x348   :  { %2645 = vmatpush2.bf16.msra.mxu1 %v7150_v11  ;;  %v909_v11 = vld [vmem:[#allocation3 + $0x38] sm:$0xff] }
 0x349   :  { %2700 = vmatprep.subr.bf16.mxu1 %v7145_v13  ;;  %v1037_v13 = vld [vmem:[#allocation3 + $0x438] sm:$0xff]  ;;  %v7089_v16 = vcombine.high %v905_v10, %v909_v11 }
 0x34a   :  { %2688 = vmatpush2.bf16.msra.mxu0 %v7278_v40  ;;  %v1033_v40 = vld [vmem:[#allocation3 + $0x418] sm:$0xff] }
 0x34b   :  { %2743 = vmatprep.subr.bf16.mxu0 %v7273_v41  ;;  %2647 = vmatmul.mubr.bf16.vlgmr.msra.gmra.mxu1 %v9088_v43  ;;  %v7096_v41 = vcombine.low %v913_v59, %v917_v31  ;;  %v7217_v17 = vcombine.high %v1033_v40, %v1037_v13  ;;  %v7216_v58 = vcombine.low %v1033_v40, %v1037_v13  ;;  %v977_v13 = vld [vmem:[#allocation3 + $0x258] sm:$0xff] }
 0x34c   :  { %2701 = vmatpush1.bf16.msra.mxu1 %v7144_v20  ;;  %2732 = vmatprep.mubr.bf16.mxu1 %v9078_v14  ;;  %v7248_v14 = vcombine.low %v1065_v34, %v1069_v35  ;;  %v1029_v20 = vld [vmem:[#allocation3 + $0x3f8] sm:$0xff] }
 0x34d   :  { %2690 = vmatmul.mubr.bf16.vlgmr.msra.gmra.mxu0 %v9094_v18  ;;  %2702 = vmatprep.subr.bf16.mxu1 %v7137_v57  ;;  %v1157_v57 = vld [vmem:[#allocation3 + $0x7f8] sm:$0xff]  ;;  %v7209_v33 = vcombine.high %v1025_v19, %v1029_v20 }
 0x34e   :  { %2744 = vmatpush1.bf16.msra.mxu0 %v7272_v21  ;;  %2775 = vmatprep.mubr.bf16.mxu0 %v9080_v15  ;;  %v7241_v15 = vcombine.high %v1057_v46, %v1061_v47  ;;  %v1153_v21 = vld [vmem:[#allocation3 + $0x7d8] sm:$0xff] }
 0x34f   :  { %2745 = vmatprep.subr.bf16.mxu0 %v7265_v24  ;;  %v7088_v24 = vcombine.low %v905_v10, %v909_v11  ;;  %v7337_v26 = vcombine.high %v1153_v21, %v1157_v57  ;;  %v7336_v28 = vcombine.low %v1153_v21, %v1157_v57  ;;  %v1009_v35 = vld [vmem:[#allocation3 + $0x358] sm:$0xff] }
 0x350   :  { %2703 = vmatpush1.bf16.msra.mxu1 %v7136_v30  ;;  %v1021_v30 = vld [vmem:[#allocation3 + $0x3b8] sm:$0xff] }
 0x351   :  { %2704 = vmatprep.subr.bf16.mxu1 %v7129_v62  ;;  %v1149_v62 = vld [vmem:[#allocation3 + $0x7b8] sm:$0xff]  ;;  %v7201_v29 = vcombine.high %v1017_v23, %v1021_v30 }
 0x352   :  { %2746 = vmatpush1.bf16.msra.mxu0 %v7264_v61  ;;  %v1145_v61 = vld [vmem:[#allocation3 + $0x798] sm:$0xff] }
 0x353   :  { %2747 = vmatprep.subr.bf16.mxu0 %v7257_v25  ;;  %v7208_v25 = vcombine.low %v1025_v19, %v1029_v20  ;;  %v7329_v34 = vcombine.high %v1145_v61, %v1149_v62  ;;  %v7328_v44 = vcombine.low %v1145_v61, %v1149_v62  ;;  %v1001_v47 = vld [vmem:[#allocation3 + $0x318] sm:$0xff] }
 0x354   :  { %2705 = vmatpush1.bf16.msra.mxu1 %v7128_v36  ;;  %v1013_v36 = vld [vmem:[#allocation3 + $0x378] sm:$0xff] }
 0x355   :  { %2706 = vmatprep.subr.bf16.mxu1 %v7121_v38  ;;  %v1141_v38 = vld [vmem:[#allocation3 + $0x778] sm:$0xff]  ;;  %v7193_v45 = vcombine.high %v1009_v35, %v1013_v36 }
 0x356   :  { %2748 = vmatpush1.bf16.msra.mxu0 %v7256_v37  ;;  %v1137_v37 = vld [vmem:[#allocation3 + $0x758] sm:$0xff] }
 0x357   :  { %2749 = vmatprep.subr.bf16.mxu0 %v7249_v39  ;;  %v7200_v39 = vcombine.low %v1017_v23, %v1021_v30  ;;  %v7321_v46 = vcombine.high %v1137_v37, %v1141_v38  ;;  %v7320_v51 = vcombine.low %v1137_v37, %v1141_v38  ;;  %v969_v57 = vld [vmem:[#allocation3 + $0x218] sm:$0xff] }
 0x358   :  { %2707 = vmatpush1.bf16.msra.mxu1 %v7120_v48  ;;  %v1005_v48 = vld [vmem:[#allocation3 + $0x338] sm:$0xff] }
 0x359   :  { %2708 = vmatprep.subr.bf16.mxu1 %v7113_v49  ;;  %v1133_v49 = vld [vmem:[#allocation3 + $0x738] sm:$0xff]  ;;  %v7185_v52 = vcombine.high %v1001_v47, %v1005_v48 }
 0x35a   :  { %2750 = vmatpush1.bf16.msra.mxu0 %v7248_v14  ;;  %v1129_v14 = vld [vmem:[#allocation3 + $0x718] sm:$0xff] }
 0x35b   :  { %2751 = vmatprep.subr.bf16.mxu0 %v7241_v15  ;;  %v7192_v15 = vcombine.low %v1009_v35, %v1013_v36  ;;  %v7313_v50 = vcombine.high %v1129_v14, %v1133_v49  ;;  %v7312_v59 = vcombine.low %v1129_v14, %v1133_v49 }
 0x35c   :  { %2709 = vmatpush1.bf16.msra.mxu1 %v7112_v54  ;;  %v997_v54 = vld [vmem:[#allocation3 + $0x2f8] sm:$0xff] }
 0x35d   :  { %2710 = vmatprep.subr.bf16.mxu1 %v7105_v56  ;;  %v1125_v56 = vld [vmem:[#allocation3 + $0x6f8] sm:$0xff]  ;;  %v7177_v31 = vcombine.high %v993_v53, %v997_v54 }
 0x35e   :  { %2752 = vmatpush1.bf16.msra.mxu0 %v7240_v55  ;;  %v1121_v55 = vld [vmem:[#allocation3 + $0x6d8] sm:$0xff] }
 0x35f   :  { %2753 = vmatprep.subr.bf16.mxu0 %v7233_v22  ;;  %v7184_v22 = vcombine.low %v1001_v47, %v1005_v48  ;;  %v7305_v32 = vcombine.high %v1121_v55, %v1125_v56  ;;  %v7304_v10 = vcombine.low %v1121_v55, %v1125_v56 }
 0x360   :  { %2711 = vmatpush1.bf16.msra.mxu1 %v7104_v60  ;;  %v989_v60 = vld [vmem:[#allocation3 + $0x2b8] sm:$0xff] }
 0x361   :  { %2712 = vmatprep.subr.bf16.mxu1 %v7097_v0  ;;  %v1117_v0 = vld [vmem:[#allocation3 + $0x6b8] sm:$0xff]  ;;  %v7169_v11 = vcombine.high %v985_v27, %v989_v60 }
 0x362   :  { %2754 = vmatpush1.bf16.msra.mxu0 %v7232_v63  ;;  %v1113_v63 = vld [vmem:[#allocation3 + $0x698] sm:$0xff] }
 0x363   :  { %2755 = vmatprep.subr.bf16.mxu0 %v7225_v9  ;;  %v7176_v9 = vcombine.low %v993_v53, %v997_v54  ;;  %v7297_v40 = vcombine.high %v1113_v63, %v1117_v0  ;;  %v7296_v19 = vcombine.low %v1113_v63, %v1117_v0 }
 0x364   :  { %2713 = vmatpush1.bf16.msra.mxu1 %v7096_v41  ;;  %v981_v41 = vld [vmem:[#allocation3 + $0x278] sm:$0xff] }
 0x365   :  { %2714 = vmatprep.subr.bf16.mxu1 %v7089_v16  ;;  %v1109_v16 = vld [vmem:[#allocation3 + $0x678] sm:$0xff]  ;;  %v7161_v20 = vcombine.high %v977_v13, %v981_v41 }
 0x366   :  { %2756 = vmatpush1.bf16.msra.mxu0 %v7224_v42  ;;  %v1105_v42 = vld [vmem:[#allocation3 + $0x658] sm:$0xff] }
 0x367   :  { %2757 = vmatprep.subr.bf16.mxu0 %v7217_v17  ;;  %v7168_v17 = vcombine.low %v985_v27, %v989_v60  ;;  %v7289_v21 = vcombine.high %v1105_v42, %v1109_v16  ;;  %v7288_v23 = vcombine.low %v1105_v42, %v1109_v16 }
 0x368   :  { %2715 = vmatpush1.bf16.msra.mxu1 %v7088_v24  ;;  %v973_v24 = vld [vmem:[#allocation3 + $0x238] sm:$0xff] }
 0x369   :  { %2716 = vmatprep.subr.bf16.mxu1 %v7209_v33  ;;  %v1101_v33 = vld [vmem:[#allocation3 + $0x638] sm:$0xff]  ;;  %v7153_v30 = vcombine.high %v969_v57, %v973_v24  ;;  %v7152_v62 = vcombine.low %v969_v57, %v973_v24 }
 0x36a   :  { %2758 = vmatpush1.bf16.msra.mxu0 %v7216_v58  ;;  %v1097_v58 = vld [vmem:[#allocation3 + $0x618] sm:$0xff] }
 0x36b   :  { %2759 = vmatprep.subr.bf16.mxu0 %v7337_v26  ;;  %v7160_v26 = vcombine.low %v977_v13, %v981_v41  ;;  %v7281_v61 = vcombine.high %v1097_v58, %v1101_v33 }
 0x36c   :  { %2717 = vmatpush2.bf16.msra.mxu1 %v7208_v25  ;;  %v7280_v25 = vcombine.low %v1097_v58, %v1101_v33 }
 0x36d   :  { %2718 = vmatprep.subr.bf16.mxu1 %v7201_v29 }
 0x36e   :  { %2760 = vmatpush2.bf16.msra.mxu0 %v7336_v28 }
 0x36f   :  { %2761 = vmatprep.subr.bf16.mxu0 %v7329_v34 }
 0x370   :  { %2719 = vmatpush2.bf16.msra.mxu1 %v7200_v39 }
 0x371   :  { %2720 = vmatprep.subr.bf16.mxu1 %v7193_v45 }
 0x372   :  { %2762 = vmatpush2.bf16.msra.mxu0 %v7328_v44 }
 0x373   :  { %2763 = vmatprep.subr.bf16.mxu0 %v7321_v46 }
 0x374   :  { %2721 = vmatpush2.bf16.msra.mxu1 %v7192_v15 }
 0x375   :  { %2722 = vmatprep.subr.bf16.mxu1 %v7185_v52 }
 0x376   :  { %2764 = vmatpush2.bf16.msra.mxu0 %v7320_v51 }
 0x377   :  { %2765 = vmatprep.subr.bf16.mxu0 %v7313_v50 }
 0x378   :  { %2723 = vmatpush2.bf16.msra.mxu1 %v7184_v22 }
 0x379   :  { %2724 = vmatprep.subr.bf16.mxu1 %v7177_v31 }
 0x37a   :  { %2766 = vmatpush2.bf16.msra.mxu0 %v7312_v59 }
 0x37b   :  { %2767 = vmatprep.subr.bf16.mxu0 %v7305_v32 }
 0x37c   :  { %2725 = vmatpush2.bf16.msra.mxu1 %v7176_v9 }
 0x37d   :  { %2726 = vmatprep.subr.bf16.mxu1 %v7169_v11 }
 0x37e   :  { %2768 = vmatpush2.bf16.msra.mxu0 %v7304_v10 }
 0x37f   :  { %2769 = vmatprep.subr.bf16.mxu0 %v7297_v40 }
 0x380   :  { %2727 = vmatpush2.bf16.msra.mxu1 %v7168_v17 }
 0x381   :  { %2728 = vmatprep.subr.bf16.mxu1 %v7161_v20 }
 0x382   :  { %2770 = vmatpush2.bf16.msra.mxu0 %v7296_v19 }
 0x383   :  { %2771 = vmatprep.subr.bf16.mxu0 %v7289_v21 }
 0x384   :  { %2729 = vmatpush2.bf16.msra.mxu1 %v7160_v26 }
 0x385   :  { %2730 = vmatprep.subr.bf16.mxu1 %v7153_v30 }
 0x386   :  { %2772 = vmatpush2.bf16.msra.mxu0 %v7288_v23 }
 0x387   :  { %2773 = vmatprep.subr.bf16.mxu0 %v7281_v61 }
 0x388   :  { %2731 = vmatpush2.bf16.msra.mxu1 %v7152_v62 }
 0x38a   :  { %2774 = vmatpush2.bf16.msra.mxu0 %v7280_v25  ;;  %v9111_v25 = vsub.s32 2, %v8994_v7 }
 0x38b   :  { %v2476_v28 = vpop.f32.mrf.mxu1  ;;  %2733 = vmatmul.mubr.bf16.vlgmr.msra.gmra.mxu1 %v9088_v43 }
 0x38d   :  { %v2519_v29 = vpop.f32.mrf.mxu0  ;;  %2776 = vmatmul.mubr.bf16.vlgmr.msra.gmra.mxu0 %v9094_v18  ;;  %v2478_v34 = vpop.f32.mrf.mxu1 }
 0x38e   :  { %v2520_v38 = vadd.f32 %v2519_v29, %v2476_v28  ;;  %v9114_v28 = vsub.s32 6, %v8994_v7 }
 0x38f   :  { %v2521_v35 = vpop.f32.mrf.mxu0  ;;  %v2480_v36 = vpop.f32.mrf.mxu1 }
 0x390   :  { %v2522_v46 = vadd.f32 %v2521_v35, %v2478_v34 }
 0x391   :  { %v2523_v37 = vpop.f32.mrf.mxu0  ;;  %v2482_v44 = vpop.f32.mrf.mxu1 }
 0x392   :  { %v2524_v39 = vadd.f32 %v2523_v37, %v2480_v36  ;;  %v3021_v37 = vrot.slane %v8996_v8, %v9114_v28 }
 0x393   :  { %v2525_v45 = vpop.f32.mrf.mxu0 }
 0x394   :  { %v2786_v47 = vadd.f32 %v2524_v39, %v2520_v38  ;;  %v2526_v48 = vadd.f32 %v2525_v45, %v2482_v44 }
 0x396   :  { %v2787_v14 = vrot.slane %v2786_v47, 4  ;;  %v2793_v49 = vadd.f32 %v2526_v48, %v2522_v46 }
 0x398   :  { %v2788_v15 = vadd.f32 %v2787_v14, %v2786_v47  ;;  %v2794_v51 = vrot.slane %v2793_v49, 4 }
 0x39a   :  { %v2789_v52 = vrot.slane %v2788_v15, 2  ;;  %v2795_v43 = vadd.f32 %v2794_v51, %v2793_v49 }
 0x39c   :  { %v2790_v50 = vadd.f32 %v2789_v52, %v2788_v15  ;;  %v2796_v53 = vrot.slane %v2795_v43, 2 }
 0x39e   :  { %v2791_v18 = vrot.slane %v2790_v50, 1  ;;  %v2797_v54 = vadd.f32 %v2796_v53, %v2795_v43 }
 0x3a0   :  { %v2792_v55 = vadd.f32 %v2791_v18, %v2790_v50  ;;  %v2798_v56 = vrot.slane %v2797_v54, 1 }
 0x3a2   :  { %v2842_v22 = vmul.f32 0.0625, %v2792_v55  ;;  %v2799_v59 = vadd.f32 %v2798_v56, %v2797_v54 }
 0x3a4   :  { %v2850_v31 = vsub.f32 %v2520_v38, %v2842_v22  ;;  %v2858_v32 = vsub.f32 %v2524_v39, %v2842_v22  ;;  %v2843_v27 = vmul.f32 0.0625, %v2799_v59 }
 0x3a6   :  { %v2866_v60 = vmul.f32 %v2850_v31, %v2850_v31  ;;  %v2874_v63 = vmul.f32 %v2858_v32, %v2858_v32  ;;  %v2851_v0 = vsub.f32 %v2522_v46, %v2843_v27  ;;  %v2859_v9 = vsub.f32 %v2526_v48, %v2843_v27 }
 0x3a7   :  { %v3025_v46 = vrot.slane %v9000_v12, %v9114_v28 }
 0x3a8   :  { %v2882_v10 = vadd.f32 %v2874_v63, %v2866_v60  ;;  %v2867_v11 = vmul.f32 %v2851_v0, %v2851_v0  ;;  %v2875_v40 = vmul.f32 %v2859_v9, %v2859_v9 }
 0x3aa   :  { %v2883_v13 = vrot.slane %v2882_v10, 4  ;;  %v2889_v41 = vadd.f32 %v2875_v40, %v2867_v11 }
 0x3ac   :  { %v2884_v42 = vadd.f32 %v2883_v13, %v2882_v10  ;;  %v2890_v16 = vrot.slane %v2889_v41, 4 }
 0x3ae   :  { %v2885_v17 = vrot.slane %v2884_v42, 2  ;;  %v2891_v19 = vadd.f32 %v2890_v16, %v2889_v41 }
 0x3b0   :  { %v2886_v20 = vadd.f32 %v2885_v17, %v2884_v42  ;;  %v2892_v21 = vrot.slane %v2891_v19, 2 }
 0x3b2   :  { %v2887_v57 = vrot.slane %v2886_v20, 1  ;;  %v2893_v24 = vadd.f32 %v2892_v21, %v2891_v19 }
 0x3b4   :  { %v2888_v58 = vadd.f32 %v2887_v57, %v2886_v20  ;;  %v2894_v33 = vrot.slane %v2893_v24, 1 }
 0x3b6   :  { %v2938_v26 = vmul.f32 0.0625, %v2888_v58  ;;  %v2895_v23 = vadd.f32 %v2894_v33, %v2893_v24 }
 0x3b8   :  { %v2946_v30 = vadd.f32 1e-05, %v2938_v26  ;;  %v2939_v61 = vmul.f32 0.0625, %v2895_v23 }
 0x3ba   :  { %8039 = vrsqrt.f32 %v2946_v30  ;;  %v2947_v62 = vadd.f32 1e-05, %v2939_v61 }
 0x3bc   :  { %8041 = vrsqrt.f32 %v2947_v62 }
 0x3c7   :  { %v8040_v29 = vpop.eup %8039 }
 0x3c8   :  { %v2962_v34 = vmul.f32 %v8040_v29, %v8996_v8 }
 0x3c9   :  { %v8042_v35 = vpop.eup %8041 }
 0x3ca   :  { %v2973_v36 = vrot.slane %v2962_v34, %v9111_v25  ;;  %v2963_v38 = vmul.f32 %v8042_v35, %v9000_v12 }
 0x3cb   :  { %v2562_v47 = vpop.f32.mrf.mxu1 }
 0x3cc   :  { %v3002_v39 = vmul.f32 %v2973_v36, %v2850_v31  ;;  %v3010_v44 = vmul.f32 %v2973_v36, %v2858_v32  ;;  %v2977_v45 = vrot.slane %v2963_v38, %v9111_v25 }
 0x3cd   :  { %v2605_v48 = vpop.f32.mrf.mxu0  ;;  %v2564_v52 = vpop.f32.mrf.mxu1 }
 0x3ce   :  { %v9124_v14 = vadd.f32 %v3021_v37, %v3002_v39  ;;  %v9126_v49 = vadd.f32 %v3021_v37, %v3010_v44  ;;  %v3003_v15 = vmul.f32 %v2977_v45, %v2851_v0  ;;  %v3011_v51 = vmul.f32 %v2977_v45, %v2859_v9 }
 0x3cf   :  { %v2607_v43 = vpop.f32.mrf.mxu0  ;;  %v2566_v55 = vpop.f32.mrf.mxu1  ;;  %v2606_v31 = vadd.f32 %v2605_v48, %v2562_v47 }
 0x3d0   :  { %v3066_v50 = vmax.f32 %v9124_v14, 0.0  ;;  %v3074_v53 = vmax.f32 %v9126_v49, 0.0  ;;  %v9130_v18 = vadd.f32 %v3025_v46, %v3003_v15  ;;  %v9132_v54 = vadd.f32 %v3025_v46, %v3011_v51 }
 0x3d1   :  { %v2609_v56 = vpop.f32.mrf.mxu0  ;;  %v2568_v27 = vpop.f32.mrf.mxu1  ;;  %v2608_v63 = vadd.f32 %v2607_v43, %v2564_v52 }
 0x3d2   :  { %v3067_v22 = vmax.f32 %v9130_v18, 0.0  ;;  %v3075_v59 = vmax.f32 %v9132_v54, 0.0  ;;  %v2610_v32 = vadd.f32 %v2609_v56, %v2566_v55 }
 0x3d3   :  { %v2611_v60 = vpop.f32.mrf.mxu0 }
 0x3d4   :  { %v2800_v0 = vadd.f32 %v2610_v32, %v2606_v31  ;;  %v2612_v9 = vadd.f32 %v2611_v60, %v2568_v27 }
 0x3d6   :  { %v2801_v10 = vrot.slane %v2800_v0, 4  ;;  %v2807_v11 = vadd.f32 %v2612_v9, %v2608_v63 }
 0x3d8   :  { %v2802_v40 = vadd.f32 %v2801_v10, %v2800_v0  ;;  %v2808_v13 = vrot.slane %v2807_v11, 4  ;;  %v3029_v10 = vrot.slane %v8973_v1, %v9114_v28 }
 0x3da   :  { %v2803_v41 = vrot.slane %v2802_v40, 2  ;;  %v2809_v42 = vadd.f32 %v2808_v13, %v2807_v11 }
 0x3dc   :  { %v2804_v16 = vadd.f32 %v2803_v41, %v2802_v40  ;;  %v2810_v17 = vrot.slane %v2809_v42, 2 }
 0x3de   :  { %v2805_v19 = vrot.slane %v2804_v16, 1  ;;  %v2811_v20 = vadd.f32 %v2810_v17, %v2809_v42  ;;  %v3033_v42 = vrot.slane %v8975_v2, %v9114_v28 }
 0x3e0   :  { %v2806_v21 = vadd.f32 %v2805_v19, %v2804_v16  ;;  %v2812_v57 = vrot.slane %v2811_v20, 1 }
 0x3e2   :  { %v2844_v24 = vmul.f32 0.0625, %v2806_v21  ;;  %v2813_v58 = vadd.f32 %v2812_v57, %v2811_v20 }
 0x3e4   :  { %v2852_v33 = vsub.f32 %v2606_v31, %v2844_v24  ;;  %v2860_v26 = vsub.f32 %v2610_v32, %v2844_v24  ;;  %v2845_v23 = vmul.f32 0.0625, %v2813_v58 }
 0x3e6   :  { %v2868_v30 = vmul.f32 %v2852_v33, %v2852_v33  ;;  %v2876_v61 = vmul.f32 %v2860_v26, %v2860_v26  ;;  %v2853_v62 = vsub.f32 %v2608_v63, %v2845_v23  ;;  %v2861_v29 = vsub.f32 %v2612_v9, %v2845_v23 }
 0x3e8   :  { %v2896_v34 = vadd.f32 %v2876_v61, %v2868_v30  ;;  %v2869_v35 = vmul.f32 %v2853_v62, %v2853_v62  ;;  %v2877_v36 = vmul.f32 %v2861_v29, %v2861_v29 }
 0x3ea   :  { %v2897_v37 = vrot.slane %v2896_v34, 4  ;;  %v2903_v38 = vadd.f32 %v2877_v36, %v2869_v35 }
 0x3ec   :  { %v2898_v39 = vadd.f32 %v2897_v37, %v2896_v34  ;;  %v2904_v44 = vrot.slane %v2903_v38, 4 }
 0x3ee   :  { %v2899_v45 = vrot.slane %v2898_v39, 2  ;;  %v2905_v46 = vadd.f32 %v2904_v44, %v2903_v38 }
 0x3f0   :  { %v2900_v47 = vadd.f32 %v2899_v45, %v2898_v39  ;;  %v2906_v48 = vrot.slane %v2905_v46, 2 }
 0x3f2   :  { %v2901_v15 = vrot.slane %v2900_v47, 1  ;;  %v2907_v51 = vadd.f32 %v2906_v48, %v2905_v46 }
 0x3f4   :  { %v2902_v52 = vadd.f32 %v2901_v15, %v2900_v47  ;;  %v2908_v43 = vrot.slane %v2907_v51, 1 }
 0x3f6   :  { %v2940_v55 = vmul.f32 0.0625, %v2902_v52  ;;  %v2909_v56 = vadd.f32 %v2908_v43, %v2907_v51 }
 0x3f8   :  { %v2948_v31 = vadd.f32 1e-05, %v2940_v55  ;;  %v2941_v32 = vmul.f32 0.0625, %v2909_v56 }
 0x3fa   :  { %8043 = vrsqrt.f32 %v2948_v31  ;;  %v2949_v27 = vadd.f32 1e-05, %v2941_v32 }
 0x3fc   :  { %8045 = vrsqrt.f32 %v2949_v27 }
 0x407   :  { %v8044_v60 = vpop.eup %8043 }
 0x408   :  { %v2964_v63 = vmul.f32 %v8044_v60, %v8973_v1 }
 0x409   :  { %v8046_v0 = vpop.eup %8045 }
 0x40a   :  { %v2981_v9 = vrot.slane %v2964_v63, %v9111_v25  ;;  %v2965_v11 = vmul.f32 %v8046_v0, %v8975_v2 }
 0x40b   :  { %v2648_v16 = vpop.f32.mrf.mxu1 }
 0x40c   :  { %v3004_v40 = vmul.f32 %v2981_v9, %v2852_v33  ;;  %v3012_v13 = vmul.f32 %v2981_v9, %v2860_v26  ;;  %v2985_v41 = vrot.slane %v2965_v11, %v9111_v25 }
 0x40d   :  { %v2691_v17 = vpop.f32.mrf.mxu0  ;;  %v2650_v24 = vpop.f32.mrf.mxu1 }
 0x40e   :  { %v9144_v19 = vadd.f32 %v3029_v10, %v3004_v40  ;;  %v9146_v20 = vadd.f32 %v3029_v10, %v3012_v13  ;;  %v3005_v21 = vmul.f32 %v2985_v41, %v2853_v62  ;;  %v3013_v57 = vmul.f32 %v2985_v41, %v2861_v29 }
 0x40f   :  { %v2693_v58 = vpop.f32.mrf.mxu0  ;;  %v2652_v61 = vpop.f32.mrf.mxu1  ;;  %v2692_v37 = vadd.f32 %v2691_v17, %v2648_v16 }
 0x410   :  { %v3068_v23 = vmax.f32 %v9144_v19, 0.0  ;;  %v3076_v33 = vmax.f32 %v9146_v20, 0.0  ;;  %v9150_v26 = vadd.f32 %v3033_v42, %v3005_v21  ;;  %v9152_v30 = vadd.f32 %v3033_v42, %v3013_v57 }
 0x411   :  { %v2695_v34 = vpop.f32.mrf.mxu0  ;;  %v2654_v62 = vpop.f32.mrf.mxu1  ;;  %v2694_v39 = vadd.f32 %v2693_v58, %v2650_v24 }
 0x412   :  { %v3069_v35 = vmax.f32 %v9150_v26, 0.0  ;;  %v3077_v36 = vmax.f32 %v9152_v30, 0.0  ;;  %v2696_v38 = vadd.f32 %v2695_v34, %v2652_v61 }
 0x413   :  { %v2697_v29 = vpop.f32.mrf.mxu0 }
 0x414   :  { %v2814_v44 = vadd.f32 %v2696_v38, %v2692_v37  ;;  %v2698_v45 = vadd.f32 %v2697_v29, %v2654_v62 }
 0x416   :  { %v2815_v46 = vrot.slane %v2814_v44, 4  ;;  %v2821_v47 = vadd.f32 %v2698_v45, %v2694_v39 }
 0x418   :  { %v2816_v48 = vadd.f32 %v2815_v46, %v2814_v44  ;;  %v2822_v15 = vrot.slane %v2821_v47, 4 }
 0x41a   :  { %v2817_v51 = vrot.slane %v2816_v48, 2  ;;  %v2823_v52 = vadd.f32 %v2822_v15, %v2821_v47 }
 0x41c   :  { %v2818_v43 = vadd.f32 %v2817_v51, %v2816_v48  ;;  %v2824_v55 = vrot.slane %v2823_v52, 2 }
 0x41e   :  { %v2819_v56 = vrot.slane %v2818_v43, 1  ;;  %v2825_v31 = vadd.f32 %v2824_v55, %v2823_v52 }
 0x420   :  { %v2820_v32 = vadd.f32 %v2819_v56, %v2818_v43  ;;  %v2826_v27 = vrot.slane %v2825_v31, 1  ;;  %v3037_v56 = vrot.slane %v8977_v3, %v9114_v28 }
 0x422   :  { %v2846_v60 = vmul.f32 0.0625, %v2820_v32  ;;  %v2827_v63 = vadd.f32 %v2826_v27, %v2825_v31 }
 0x424   :  { %v2854_v0 = vsub.f32 %v2692_v37, %v2846_v60  ;;  %v2862_v9 = vsub.f32 %v2696_v38, %v2846_v60  ;;  %v2847_v10 = vmul.f32 0.0625, %v2827_v63  ;;  %v3041_v63 = vrot.slane %v8979_v4, %v9114_v28 }
 0x426   :  { %v2870_v11 = vmul.f32 %v2854_v0, %v2854_v0  ;;  %v2878_v40 = vmul.f32 %v2862_v9, %v2862_v9  ;;  %v2855_v13 = vsub.f32 %v2694_v39, %v2847_v10  ;;  %v2863_v41 = vsub.f32 %v2698_v45, %v2847_v10 }
 0x428   :  { %v2910_v42 = vadd.f32 %v2878_v40, %v2870_v11  ;;  %v2871_v16 = vmul.f32 %v2855_v13, %v2855_v13  ;;  %v2879_v17 = vmul.f32 %v2863_v41, %v2863_v41 }
 0x42a   :  { %v2911_v21 = vrot.slane %v2910_v42, 4  ;;  %v2917_v57 = vadd.f32 %v2879_v17, %v2871_v16 }
 0x42c   :  { %v2912_v24 = vadd.f32 %v2911_v21, %v2910_v42  ;;  %v2918_v58 = vrot.slane %v2917_v57, 4 }
 0x42e   :  { %v2913_v61 = vrot.slane %v2912_v24, 2  ;;  %v2919_v34 = vadd.f32 %v2918_v58, %v2917_v57 }
 0x430   :  { %v2914_v62 = vadd.f32 %v2913_v61, %v2912_v24  ;;  %v2920_v29 = vrot.slane %v2919_v34, 2 }
 0x432   :  { %v2915_v44 = vrot.slane %v2914_v62, 1  ;;  %v2921_v46 = vadd.f32 %v2920_v29, %v2919_v34 }
 0x434   :  { %v2916_v37 = vadd.f32 %v2915_v44, %v2914_v62  ;;  %v2922_v38 = vrot.slane %v2921_v46, 1 }
 0x436   :  { %v2942_v47 = vmul.f32 0.0625, %v2916_v37  ;;  %v2923_v48 = vadd.f32 %v2922_v38, %v2921_v46 }
 0x438   :  { %v2950_v15 = vadd.f32 1e-05, %v2942_v47  ;;  %v2943_v39 = vmul.f32 0.0625, %v2923_v48 }
 0x43a   :  { %8047 = vrsqrt.f32 %v2950_v15  ;;  %v2951_v45 = vadd.f32 1e-05, %v2943_v39 }
 0x43c   :  { %8049 = vrsqrt.f32 %v2951_v45 }
 0x447   :  { %v8048_v51 = vpop.eup %8047 }
 0x448   :  { %v2966_v52 = vmul.f32 %v8048_v51, %v8977_v3 }
 0x449   :  { %v8050_v43 = vpop.eup %8049 }
 0x44a   :  { %v2989_v55 = vrot.slane %v2966_v52, %v9111_v25  ;;  %v2967_v31 = vmul.f32 %v8050_v43, %v8979_v4 }
 0x44b   :  { %v2734_v10 = vpop.f32.mrf.mxu1 }
 0x44c   :  { %v3006_v32 = vmul.f32 %v2989_v55, %v2854_v0  ;;  %v3014_v27 = vmul.f32 %v2989_v55, %v2862_v9  ;;  %v2993_v60 = vrot.slane %v2967_v31, %v9111_v25 }
 0x44d   :  { %v2777_v11 = vpop.f32.mrf.mxu0  ;;  %v2736_v21 = vpop.f32.mrf.mxu1 }
 0x44e   :  { %v9164_v40 = vadd.f32 %v3037_v56, %v3006_v32  ;;  %v9166_v42 = vadd.f32 %v3037_v56, %v3014_v27  ;;  %v3007_v16 = vmul.f32 %v2993_v60, %v2855_v13  ;;  %v3015_v17 = vmul.f32 %v2993_v60, %v2863_v41 }
 0x44f   :  { %v2779_v57 = vpop.f32.mrf.mxu0  ;;  %v2738_v61 = vpop.f32.mrf.mxu1  ;;  %v2778_v44 = vadd.f32 %v2777_v11, %v2734_v10 }
 0x450   :  { %v3070_v24 = vmax.f32 %v9164_v40, 0.0  ;;  %v3078_v0 = vmax.f32 %v9166_v42, 0.0  ;;  %v9170_v9 = vadd.f32 %v3041_v63, %v3007_v16  ;;  %v9172_v58 = vadd.f32 %v3041_v63, %v3015_v17 }
 0x451   :  { %v2781_v34 = vpop.f32.mrf.mxu0  ;;  %v2740_v13 = vpop.f32.mrf.mxu1  ;;  %v2780_v37 = vadd.f32 %v2779_v57, %v2736_v21 }
 0x452   :  { %v3071_v62 = vmax.f32 %v9170_v9, 0.0  ;;  %v3079_v29 = vmax.f32 %v9172_v58, 0.0  ;;  %v2782_v46 = vadd.f32 %v2781_v34, %v2738_v61 }
 0x453   :  { %v2783_v41 = vpop.f32.mrf.mxu0 }
 0x454   :  { %v2828_v38 = vadd.f32 %v2782_v46, %v2778_v44  ;;  %v2784_v47 = vadd.f32 %v2783_v41, %v2740_v13 }
 0x456   :  { %v2829_v48 = vrot.slane %v2828_v38, 4  ;;  %v2835_v15 = vadd.f32 %v2784_v47, %v2780_v37 }
 0x458   :  { %v2830_v39 = vadd.f32 %v2829_v48, %v2828_v38  ;;  %v2836_v45 = vrot.slane %v2835_v15, 4 }
 0x45a   :  { %v2831_v51 = vrot.slane %v2830_v39, 2  ;;  %v2837_v52 = vadd.f32 %v2836_v45, %v2835_v15 }
 0x45c   :  { %v2832_v43 = vadd.f32 %v2831_v51, %v2830_v39  ;;  %v2838_v55 = vrot.slane %v2837_v52, 2 }
 0x45e   :  { %v2833_v56 = vrot.slane %v2832_v43, 1  ;;  %v2839_v31 = vadd.f32 %v2838_v55, %v2837_v52 }
 0x460   :  { %v2834_v32 = vadd.f32 %v2833_v56, %v2832_v43  ;;  %v2840_v27 = vrot.slane %v2839_v31, 1 }
 0x462   :  { %v2848_v60 = vmul.f32 0.0625, %v2834_v32  ;;  %v2841_v63 = vadd.f32 %v2840_v27, %v2839_v31 }
 0x464   :  { %v2856_v10 = vsub.f32 %v2778_v44, %v2848_v60  ;;  %v2864_v11 = vsub.f32 %v2782_v46, %v2848_v60  ;;  %v2849_v16 = vmul.f32 0.0625, %v2841_v63 }
 0x466   :  { %v2872_v17 = vmul.f32 %v2856_v10, %v2856_v10  ;;  %v2880_v21 = vmul.f32 %v2864_v11, %v2864_v11  ;;  %v2857_v57 = vsub.f32 %v2780_v37, %v2849_v16  ;;  %v2865_v61 = vsub.f32 %v2784_v47, %v2849_v16 }
 0x468   :  { %v2924_v34 = vadd.f32 %v2880_v21, %v2872_v17  ;;  %v2873_v13 = vmul.f32 %v2857_v57, %v2857_v57  ;;  %v2881_v41 = vmul.f32 %v2865_v61, %v2865_v61  ;;  %v3045_v21 = vrot.slane %v8981_v5, %v9114_v28 }
 0x46a   :  { %v2925_v38 = vrot.slane %v2924_v34, 4  ;;  %v2931_v48 = vadd.f32 %v2881_v41, %v2873_v13 }
 0x46c   :  { %v2926_v15 = vadd.f32 %v2925_v38, %v2924_v34  ;;  %v2932_v39 = vrot.slane %v2931_v48, 4 }
 0x46e   :  { %v2927_v45 = vrot.slane %v2926_v15, 2  ;;  %v2933_v51 = vadd.f32 %v2932_v39, %v2931_v48  ;;  %v3049_v48 = vrot.slane %v8983_v6, %v9114_v28 }
 0x470   :  { %v2928_v52 = vadd.f32 %v2927_v45, %v2926_v15  ;;  %v2934_v43 = vrot.slane %v2933_v51, 2 }
 0x472   :  { %v2929_v55 = vrot.slane %v2928_v52, 1  ;;  %v2935_v56 = vadd.f32 %v2934_v43, %v2933_v51 }
 0x474   :  { %v2930_v44 = vadd.f32 %v2929_v55, %v2928_v52  ;;  %v2936_v46 = vrot.slane %v2935_v56, 1 }
 0x476   :  { %v2944_v31 = vmul.f32 0.0625, %v2930_v44  ;;  %v2937_v32 = vadd.f32 %v2936_v46, %v2935_v56 }
 0x478   :  { %v2952_v27 = vadd.f32 1e-05, %v2944_v31  ;;  %v2945_v37 = vmul.f32 0.0625, %v2937_v32 }
 0x47a   :  { %8051 = vrsqrt.f32 %v2952_v27  ;;  %v2953_v47 = vadd.f32 1e-05, %v2945_v37 }
 0x47c   :  { %8053 = vrsqrt.f32 %v2953_v47 }
 0x487   :  { %v8052_v60 = vpop.eup %8051 }
 0x488   :  { %v2968_v63 = vmul.f32 %v8052_v60, %v8981_v5 }
 0x489   :  { %v8054_v16 = vpop.eup %8053 }
 0x48a   :  { %v2997_v17 = vrot.slane %v2968_v63, %v9111_v25  ;;  %v2969_v34 = vmul.f32 %v8054_v16, %v8983_v6 }
 0x48c   :  { %v3008_v13 = vmul.f32 %v2997_v17, %v2856_v10  ;;  %v3016_v41 = vmul.f32 %v2997_v17, %v2864_v11  ;;  %v3001_v38 = vrot.slane %v2969_v34, %v9111_v25 }
 0x48e   :  { %v9184_v15 = vadd.f32 %v3045_v21, %v3008_v13  ;;  %v9186_v39 = vadd.f32 %v3045_v21, %v3016_v41  ;;  %v3009_v45 = vmul.f32 %v3001_v38, %v2857_v57  ;;  %v3017_v51 = vmul.f32 %v3001_v38, %v2865_v61 }
 0x490   :  { %v3072_v52 = vmax.f32 %v9184_v15, 0.0  ;;  %v3080_v43 = vmax.f32 %v9186_v39, 0.0  ;;  %v9190_v55 = vadd.f32 %v3049_v48, %v3009_v45  ;;  %v9192_v56 = vadd.f32 %v3049_v48, %v3017_v51 }
 0x492   :  { %v3073_v10 = vmax.f32 %v9190_v55, 0.0  ;;  %v3081_v25 = vmax.f32 %v9192_v56, 0.0 }
 0x493   :  { %8913 = dma.done.wait [#allocation5 + $0x2], 57344 }
 0x494   :  { %8914 = vsyncadd [#allocation5 + $0x2], 4294909952  ;;  %v9200_v6 = vpack.c.bf16 %v3075_v59, %v3067_v22  ;;  %v9206_v28 = vpack.c.bf16 %v3077_v36, %v3069_v35  ;;  %v8055_v11 = vld [vmem:[#allocation4 + $0x18c] ss:$28 sps:$4 sm:$0xff]   ;;  %v8061_v18 = vld [vmem:[#allocation4 + $0x154] ss:$28 sps:$4 sm:$0xff]   ;;  %v9226_v14 = vpack.c.bf16 %v3079_v29, %v3071_v62  ;;  %v9232_v49 = vpack.c.bf16 %v3081_v25, %v3073_v10 }
 0x495   :  { %v8057_v57 = vld [vmem:[#allocation4 + $0x50c] ss:$28 sps:$4 sm:$0xff]   ;;  %5910 = vmatprep.subr.bf16.mxu1 %v8055_v11  ;;  %v8063_v54 = vld [vmem:[#allocation4 + $0x4d4] ss:$28 sps:$4 sm:$0xff]   ;;  %v8067_v26 = vld [vmem:[#allocation4 + $0x11c] ss:$28 sps:$4 sm:$0xff]  }
 0x496   :  { %5942 = vmatprep.mubr.bf16.mxu1 %v9200_v6  ;;  %5985 = vmatprep.mubr.bf16.mxu0 %v9206_v28  ;;  %v8059_v61 = vld [vmem:[#allocation4 + $0x188] ss:$28 sps:$4 sm:$0xff]   ;;  %v8065_v22 = vld [vmem:[#allocation4 + $0x150] ss:$28 sps:$4 sm:$0xff]   ;;  %v8069_v30 = vld [vmem:[#allocation4 + $0x49c] ss:$28 sps:$4 sm:$0xff]  }
 0x497   :  { %v8060_v44 = vld [vmem:[#allocation4 + $0x508] ss:$28 sps:$4 sm:$0xff]   ;;  %5953 = vmatprep.subr.bf16.mxu0 %v8057_v57  ;;  %5911 = vmatpush1.bf16.msra.mxu1 %v8059_v61  ;;  %v8066_v59 = vld [vmem:[#allocation4 + $0x4d0] ss:$28 sps:$4 sm:$0xff]   ;;  %v8071_v35 = vld [vmem:[#allocation4 + $0x118] ss:$28 sps:$4 sm:$0xff]  }
 0x498   :  { %5954 = vmatpush1.bf16.msra.mxu0 %v8060_v44  ;;  %5912 = vmatprep.subr.bf16.mxu1 %v8061_v18  ;;  %v8072_v36 = vld [vmem:[#allocation4 + $0x498] ss:$28 sps:$4 sm:$0xff]   ;;  %v8073_v46 = vld [vmem:[#allocation4 + $0xe4] ss:$28 sps:$4 sm:$0xff]   ;;  %v8079_v37 = vld [vmem:[#allocation4 + $0xac] ss:$28 sps:$4 sm:$0xff]  }
 0x499   :  { %5955 = vmatprep.subr.bf16.mxu0 %v8063_v54  ;;  %v8075_v31 = vld [vmem:[#allocation4 + $0x464] ss:$28 sps:$4 sm:$0xff]   ;;  %v8081_v47 = vld [vmem:[#allocation4 + $0x42c] ss:$28 sps:$4 sm:$0xff]   ;;  %v8085_v16 = vld [vmem:[#allocation4 + $0x74] ss:$28 sps:$4 sm:$0xff]  }
 0x49a   :  { %v8077_v32 = vld [vmem:[#allocation4 + $0xe0] ss:$28 sps:$4 sm:$0xff]   ;;  %v8083_v60 = vld [vmem:[#allocation4 + $0xa8] ss:$28 sps:$4 sm:$0xff]   ;;  %v8087_v17 = vld [vmem:[#allocation4 + $0x3f4] ss:$28 sps:$4 sm:$0xff]  }
 0x49b   :  { %5913 = vmatpush1.bf16.msra.mxu1 %v8065_v22  ;;  %v8078_v27 = vld [vmem:[#allocation4 + $0x460] ss:$28 sps:$4 sm:$0xff]   ;;  %v8084_v63 = vld [vmem:[#allocation4 + $0x428] ss:$28 sps:$4 sm:$0xff]   ;;  %v8089_v21 = vld [vmem:[#allocation4 + $0x70] ss:$28 sps:$4 sm:$0xff]  }
 0x49c   :  { %5956 = vmatpush1.bf16.msra.mxu0 %v8066_v59  ;;  %5914 = vmatprep.subr.bf16.mxu1 %v8067_v26  ;;  %v8090_v34 = vld [vmem:[#allocation4 + $0x3f0] ss:$28 sps:$4 sm:$0xff]   ;;  %v8091_v13 = vld [vmem:[#allocation4 + $0x3c] ss:$28 sps:$4 sm:$0xff]   ;;  %v8097_v45 = vld [vmem:[#allocation4 + $0x4] ss:$28 sps:$4 sm:$0xff]  }
 0x49d   :  { %5957 = vmatprep.subr.bf16.mxu0 %v8069_v30  ;;  %v8093_v41 = vld [vmem:[#allocation4 + $0x3bc] ss:$28 sps:$4 sm:$0xff]   ;;  %v8099_v51 = vld [vmem:[#allocation4 + $0x384] ss:$28 sps:$4 sm:$0xff]   ;;  %v8103_v61 = vld [vmem:[#allocation4 + $0x34c] ss:$28 sps:$4 sm:$0xff]  }
 0x49e   :  { %v8095_v38 = vld [vmem:[#allocation4 + $0x38] ss:$28 sps:$4 sm:$0xff]   ;;  %v8101_v11 = vld [vmem:[#allocation4] ss:$28 sps:$4 sm:$0xff]   ;;  %v8105_v44 = vld [vmem:[#allocation4 + $0x6cc] ss:$28 sps:$4 sm:$0xff]  }
 0x49f   :  { %5915 = vmatpush1.bf16.msra.mxu1 %v8071_v35  ;;  %v8096_v48 = vld [vmem:[#allocation4 + $0x3b8] ss:$28 sps:$4 sm:$0xff]   ;;  %v8102_v57 = vld [vmem:[#allocation4 + $0x380] ss:$28 sps:$4 sm:$0xff]   ;;  %v8107_v18 = vld [vmem:[#allocation4 + $0x348] ss:$28 sps:$4 sm:$0xff]  }
 0x4a0   :  { %5958 = vmatpush1.bf16.msra.mxu0 %v8072_v36  ;;  %5916 = vmatprep.subr.bf16.mxu1 %v8073_v46  ;;  %v8108_v54 = vld [vmem:[#allocation4 + $0x6c8] ss:$28 sps:$4 sm:$0xff]   ;;  %v8109_v22 = vld [vmem:[#allocation4 + $0x314] ss:$28 sps:$4 sm:$0xff]   ;;  %v8115_v35 = vld [vmem:[#allocation4 + $0x2dc] ss:$28 sps:$4 sm:$0xff]  }
 0x4a1   :  { %5959 = vmatprep.subr.bf16.mxu0 %v8075_v31  ;;  %v8111_v59 = vld [vmem:[#allocation4 + $0x694] ss:$28 sps:$4 sm:$0xff]   ;;  %v8117_v36 = vld [vmem:[#allocation4 + $0x65c] ss:$28 sps:$4 sm:$0xff]   ;;  %v8171_v9 = vld [vmem:[#allocation4 + $0x7e4] ss:$28 sps:$4 sm:$0xff]  }
 0x4a2   :  { %v8113_v26 = vld [vmem:[#allocation4 + $0x310] ss:$28 sps:$4 sm:$0xff]   ;;  %v8119_v46 = vld [vmem:[#allocation4 + $0x2d8] ss:$28 sps:$4 sm:$0xff]   ;;  %v8174_v58 = vld [vmem:[#allocation4 + $0xb64] ss:$28 sps:$4 sm:$0xff]  }
 0x4a3   :  { %5917 = vmatpush1.bf16.msra.mxu1 %v8077_v32  ;;  %v8114_v30 = vld [vmem:[#allocation4 + $0x690] ss:$28 sps:$4 sm:$0xff]   ;;  %v8120_v31 = vld [vmem:[#allocation4 + $0x658] ss:$28 sps:$4 sm:$0xff]   ;;  %v8121_v32 = vld [vmem:[#allocation4 + $0x2a4] ss:$28 sps:$4 sm:$0xff]  }
 0x4a4   :  { %5960 = vmatpush1.bf16.msra.mxu0 %v8078_v27  ;;  %5918 = vmatprep.subr.bf16.mxu1 %v8079_v37  ;;  %v8123_v27 = vld [vmem:[#allocation4 + $0x624] ss:$28 sps:$4 sm:$0xff]   ;;  %v8165_v19 = vld [vmem:[#allocation4 + $0x81c] ss:$28 sps:$4 sm:$0xff]   ;;  %v8177_v55 = vld [vmem:[#allocation4 + $0x7ac] ss:$28 sps:$4 sm:$0xff]  }
 0x4a5   :  { %5961 = vmatprep.subr.bf16.mxu0 %v8081_v47  ;;  %v8125_v37 = vld [vmem:[#allocation4 + $0x2a0] ss:$28 sps:$4 sm:$0xff]   ;;  %v8180_v56 = vld [vmem:[#allocation4 + $0xb2c] ss:$28 sps:$4 sm:$0xff]   ;;  %v8253_v40 = vld [vmem:[#allocation4 + $0x158] ss:$28 sps:$4 sm:$0xff]  }
 0x4a6   :  { %v8126_v47 = vld [vmem:[#allocation4 + $0x620] ss:$28 sps:$4 sm:$0xff]   ;;  %v8175_v10 = vld [vmem:[#allocation4 + $0x7a8] ss:$28 sps:$4 sm:$0xff]   ;;  %v8256_v42 = vld [vmem:[#allocation4 + $0x4d8] ss:$28 sps:$4 sm:$0xff]  }
 0x4a7   :  { %5919 = vmatpush1.bf16.msra.mxu1 %v8083_v60  ;;  %v8127_v60 = vld [vmem:[#allocation4 + $0x26c] ss:$28 sps:$4 sm:$0xff]   ;;  %v8168_v20 = vld [vmem:[#allocation4 + $0xb9c] ss:$28 sps:$4 sm:$0xff]   ;;  %s8926_s4 = smov [#allocation12]  }
 0x4a8   :  { %5962 = vmatpush1.bf16.msra.mxu0 %v8084_v63  ;;  %5920 = vmatprep.subr.bf16.mxu1 %v8085_v16  ;;  %v8129_v63 = vld [vmem:[#allocation4 + $0x5ec] ss:$28 sps:$4 sm:$0xff]   ;;  %v8169_v62 = vld [vmem:[#allocation4 + $0x7e0] ss:$28 sps:$4 sm:$0xff]   ;;  %s6976_s5 = sshll.u32 %s8926_s4, 4  ;;  %s6977_s5 = int_to_ptr.vmem [resolvable:$true] %s6976_s5 }
 0x4a9   :  { %5963 = vmatprep.subr.bf16.mxu0 %v8087_v17  ;;  %v8131_v16 = vld [vmem:[#allocation4 + $0x268] ss:$28 sps:$4 sm:$0xff]   ;;  %v8172_v29 = vld [vmem:[#allocation4 + $0xb60] ss:$28 sps:$4 sm:$0xff]   ;;  %s8885_s25 = scalar_lea.vmem %s6977_s5, 896  ;;  %p8890_p3 = scmp.lt.s32.totalorder %s6977_s5, %s6977_s5 }
 0x4aa   :  { %v8132_v17 = vld [vmem:[#allocation4 + $0x5e8] ss:$28 sps:$4 sm:$0xff]   ;;  %v8259_v15 = vld [vmem:[#allocation4 + $0x120] ss:$28 sps:$4 sm:$0xff]   ;;  %p8886_p2 = scmp.ne.s32.totalorder %s6977_s5, %s8885_s25  ;;  %p8891_p4 = scmp.lt.s32.totalorder %s8885_s25, %s8885_s25 }
 0x4ab   :  { %5921 = vmatpush1.bf16.msra.mxu1 %v8089_v21  ;;  %v8133_v21 = vld [vmem:[#allocation4 + $0x234] ss:$28 sps:$4 sm:$0xff]   ;;  %v8178_v25 = vld [vmem:[#allocation4 + $0xb28] ss:$28 sps:$4 sm:$0xff]   ;;  %v8262_v39 = vld [vmem:[#allocation4 + $0x4a0] ss:$28 sps:$4 sm:$0xff]  }
 0x4ac   :  { %5964 = vmatpush1.bf16.msra.mxu0 %v8090_v34  ;;  %5922 = vmatprep.subr.bf16.mxu1 %v8091_v13  ;;  %v8135_v34 = vld [vmem:[#allocation4 + $0x5b4] ss:$28 sps:$4 sm:$0xff]   ;;  %p8892_p5 = por %p8891_p4, %p8890_p3 }
 0x4ad   :  { %5965 = vmatprep.subr.bf16.mxu0 %v8093_v41  ;;  %v8137_v13 = vld [vmem:[#allocation4 + $0x230] ss:$28 sps:$4 sm:$0xff]  }
 0x4ae   :  { %v8138_v41 = vld [vmem:[#allocation4 + $0x5b0] ss:$28 sps:$4 sm:$0xff]   ;;  %p8893_p6 = pnand %p8892_p5, %p8886_p2 }
 0x4af   :  { %5923 = vmatpush1.bf16.msra.mxu1 %v8095_v38  ;;  %v8139_v38 = vld [vmem:[#allocation4 + $0x1fc] ss:$28 sps:$4 sm:$0xff]  }
 0x4b0   :  { %5966 = vmatpush1.bf16.msra.mxu0 %v8096_v48  ;;  %5924 = vmatprep.subr.bf16.mxu1 %v8097_v45  ;;  %v8141_v48 = vld [vmem:[#allocation4 + $0x57c] ss:$28 sps:$4 sm:$0xff]  }
 0x4b1   :  { %5967 = vmatprep.subr.bf16.mxu0 %v8099_v51  ;;  %v8143_v45 = vld [vmem:[#allocation4 + $0x1f8] ss:$28 sps:$4 sm:$0xff]  }
 0x4b2   :  { %v8144_v51 = vld [vmem:[#allocation4 + $0x578] ss:$28 sps:$4 sm:$0xff]  }
 0x4b3   :  { %5925 = vmatpush1.bf16.msra.mxu1 %v8101_v11  ;;  %v8145_v11 = vld [vmem:[#allocation4 + $0x1c4] ss:$28 sps:$4 sm:$0xff]  }
 0x4b4   :  { %5968 = vmatpush1.bf16.msra.mxu0 %v8102_v57  ;;  %5926 = vmatprep.subr.bf16.mxu1 %v8103_v61  ;;  %v8147_v57 = vld [vmem:[#allocation4 + $0x544] ss:$28 sps:$4 sm:$0xff]  }
 0x4b5   :  { %5969 = vmatprep.subr.bf16.mxu0 %v8105_v44  ;;  %v8149_v61 = vld [vmem:[#allocation4 + $0x1c0] ss:$28 sps:$4 sm:$0xff]  }
 0x4b6   :  { %v8150_v44 = vld [vmem:[#allocation4 + $0x540] ss:$28 sps:$4 sm:$0xff]  }
 0x4b7   :  { %5927 = vmatpush2.bf16.msra.mxu1 %v8107_v18  ;;  %v8153_v18 = vld [vmem:[#allocation4 + $0x88c] ss:$28 sps:$4 sm:$0xff]  }
 0x4b8   :  { %5970 = vmatpush2.bf16.msra.mxu0 %v8108_v54  ;;  %5928 = vmatprep.subr.bf16.mxu1 %v8109_v22  ;;  %v8156_v54 = vld [vmem:[#allocation4 + $0xc0c] ss:$28 sps:$4 sm:$0xff]   ;;  %v9214_v22 = vpack.c.bf16 %v3074_v53, %v3066_v50 }
 0x4b9   :  { %5971 = vmatprep.subr.bf16.mxu0 %v8111_v59  ;;  %v9220_v59 = vpack.c.bf16 %v3076_v33, %v3068_v23  ;;  %v8157_v50 = vld [vmem:[#allocation4 + $0x850] ss:$28 sps:$4 sm:$0xff]   ;;  %v8163_v23 = vld [vmem:[#allocation4 + $0x818] ss:$28 sps:$4 sm:$0xff]  }
 0x4ba   :  { %v8160_v53 = vld [vmem:[#allocation4 + $0xbd0] ss:$28 sps:$4 sm:$0xff]   ;;  %v8166_v33 = vld [vmem:[#allocation4 + $0xb98] ss:$28 sps:$4 sm:$0xff]  }
 0x4bb   :  { %5929 = vmatpush2.bf16.msra.mxu1 %v8113_v26  ;;  %v8151_v26 = vld [vmem:[#allocation4 + $0x888] ss:$28 sps:$4 sm:$0xff]  }
 0x4bc   :  { %5972 = vmatpush2.bf16.msra.mxu0 %v8114_v30  ;;  %5930 = vmatprep.subr.bf16.mxu1 %v8115_v35  ;;  %v8154_v30 = vld [vmem:[#allocation4 + $0xc08] ss:$28 sps:$4 sm:$0xff]   ;;  %v8159_v35 = vld [vmem:[#allocation4 + $0x854] ss:$28 sps:$4 sm:$0xff]  }
 0x4bd   :  { %5973 = vmatprep.subr.bf16.mxu0 %v8117_v36  ;;  %v8162_v36 = vld [vmem:[#allocation4 + $0xbd4] ss:$28 sps:$4 sm:$0xff]  }
 0x4bf   :  { %5931 = vmatpush2.bf16.msra.mxu1 %v8119_v46  ;;  %v8183_v46 = vld [vmem:[#allocation4 + $0x774] ss:$28 sps:$4 sm:$0xff]  }
 0x4c0   :  { %5974 = vmatpush2.bf16.msra.mxu0 %v8120_v31  ;;  %5932 = vmatprep.subr.bf16.mxu1 %v8121_v32  ;;  %v8186_v31 = vld [vmem:[#allocation4 + $0xaf4] ss:$28 sps:$4 sm:$0xff]  }
 0x4c1   :  { %5975 = vmatprep.subr.bf16.mxu0 %v8123_v27  ;;  %v8181_v32 = vld [vmem:[#allocation4 + $0x770] ss:$28 sps:$4 sm:$0xff]  }
 0x4c2   :  { %v8184_v27 = vld [vmem:[#allocation4 + $0xaf0] ss:$28 sps:$4 sm:$0xff]  }
 0x4c3   :  { %5933 = vmatpush2.bf16.msra.mxu1 %v8125_v37  ;;  %v8189_v37 = vld [vmem:[#allocation4 + $0x73c] ss:$28 sps:$4 sm:$0xff]  }
 0x4c4   :  { %5976 = vmatpush2.bf16.msra.mxu0 %v8126_v47  ;;  %5934 = vmatprep.subr.bf16.mxu1 %v8127_v60  ;;  %v8192_v47 = vld [vmem:[#allocation4 + $0xabc] ss:$28 sps:$4 sm:$0xff]  }
 0x4c5   :  { %5977 = vmatprep.subr.bf16.mxu0 %v8129_v63  ;;  %v8187_v60 = vld [vmem:[#allocation4 + $0x738] ss:$28 sps:$4 sm:$0xff]  }
 0x4c6   :  { %v8190_v63 = vld [vmem:[#allocation4 + $0xab8] ss:$28 sps:$4 sm:$0xff]  }
 0x4c7   :  { %5935 = vmatpush2.bf16.msra.mxu1 %v8131_v16  ;;  %v8195_v16 = vld [vmem:[#allocation4 + $0x704] ss:$28 sps:$4 sm:$0xff]  }
 0x4c8   :  { %5978 = vmatpush2.bf16.msra.mxu0 %v8132_v17  ;;  %5936 = vmatprep.subr.bf16.mxu1 %v8133_v21  ;;  %v8198_v17 = vld [vmem:[#allocation4 + $0xa84] ss:$28 sps:$4 sm:$0xff]  }
 0x4c9   :  { %5979 = vmatprep.subr.bf16.mxu0 %v8135_v34  ;;  %v8193_v21 = vld [vmem:[#allocation4 + $0x700] ss:$28 sps:$4 sm:$0xff]  }
 0x4ca   :  { %v8196_v34 = vld [vmem:[#allocation4 + $0xa80] ss:$28 sps:$4 sm:$0xff]  }
 0x4cb   :  { %5937 = vmatpush2.bf16.msra.mxu1 %v8137_v13  ;;  %v8201_v13 = vld [vmem:[#allocation4 + $0xa4c] ss:$28 sps:$4 sm:$0xff]  }
 0x4cc   :  { %5980 = vmatpush2.bf16.msra.mxu0 %v8138_v41  ;;  %5938 = vmatprep.subr.bf16.mxu1 %v8139_v38  ;;  %v8204_v41 = vld [vmem:[#allocation4 + $0xdcc] ss:$28 sps:$4 sm:$0xff]  }
 0x4cd   :  { %5981 = vmatprep.subr.bf16.mxu0 %v8141_v48  ;;  %v8199_v38 = vld [vmem:[#allocation4 + $0xa48] ss:$28 sps:$4 sm:$0xff]  }
 0x4ce   :  { %v8202_v48 = vld [vmem:[#allocation4 + $0xdc8] ss:$28 sps:$4 sm:$0xff]  }
 0x4cf   :  { %5939 = vmatpush2.bf16.msra.mxu1 %v8143_v45  ;;  %v8207_v45 = vld [vmem:[#allocation4 + $0xa14] ss:$28 sps:$4 sm:$0xff]  }
 0x4d0   :  { %5982 = vmatpush2.bf16.msra.mxu0 %v8144_v51  ;;  %5940 = vmatprep.subr.bf16.mxu1 %v8145_v11  ;;  %v8210_v51 = vld [vmem:[#allocation4 + $0xd94] ss:$28 sps:$4 sm:$0xff]  }
 0x4d1   :  { %5983 = vmatprep.subr.bf16.mxu0 %v8147_v57  ;;  %v8205_v11 = vld [vmem:[#allocation4 + $0xa10] ss:$28 sps:$4 sm:$0xff]  }
 0x4d2   :  { %v8208_v57 = vld [vmem:[#allocation4 + $0xd90] ss:$28 sps:$4 sm:$0xff]  }
 0x4d3   :  { %5941 = vmatpush2.bf16.msra.mxu1 %v8149_v61  ;;  %v8213_v61 = vld [vmem:[#allocation4 + $0x9dc] ss:$28 sps:$4 sm:$0xff]  }
 0x4d4   :  { %5984 = vmatpush2.bf16.msra.mxu0 %v8150_v44  ;;  %5996 = vmatprep.subr.bf16.mxu1 %v8153_v18  ;;  %v8216_v44 = vld [vmem:[#allocation4 + $0xd5c] ss:$28 sps:$4 sm:$0xff]  }
 0x4d5   :  { %6039 = vmatprep.subr.bf16.mxu0 %v8156_v54  ;;  %v8211_v18 = vld [vmem:[#allocation4 + $0x9d8] ss:$28 sps:$4 sm:$0xff]  }
 0x4d6   :  { %5943 = vmatmul.mubr.bf16.vlgmr.msra.gmra.mxu1 %v9214_v22  ;;  %v8214_v54 = vld [vmem:[#allocation4 + $0xd58] ss:$28 sps:$4 sm:$0xff]  }
 0x4d7   :  { %5986 = vmatmul.mubr.bf16.vlgmr.msra.gmra.mxu0 %v9220_v59  ;;  %5997 = vmatpush1.bf16.msra.mxu1 %v8151_v26  ;;  %v8219_v26 = vld [vmem:[#allocation4 + $0x9a4] ss:$28 sps:$4 sm:$0xff]  }
 0x4d8   :  { %6040 = vmatpush1.bf16.msra.mxu0 %v8154_v30  ;;  %5998 = vmatprep.subr.bf16.mxu1 %v8159_v35  ;;  %v8222_v30 = vld [vmem:[#allocation4 + $0xd24] ss:$28 sps:$4 sm:$0xff]  }
 0x4d9   :  { %6041 = vmatprep.subr.bf16.mxu0 %v8162_v36  ;;  %6028 = vmatprep.mubr.bf16.mxu1 %v9226_v14  ;;  %v8217_v35 = vld [vmem:[#allocation4 + $0x9a0] ss:$28 sps:$4 sm:$0xff]  }
 0x4da   :  { %6071 = vmatprep.mubr.bf16.mxu0 %v9232_v49  ;;  %v8220_v36 = vld [vmem:[#allocation4 + $0xd20] ss:$28 sps:$4 sm:$0xff]  }
 0x4db   :  { %5999 = vmatpush1.bf16.msra.mxu1 %v8157_v50  ;;  %v8225_v50 = vld [vmem:[#allocation4 + $0x96c] ss:$28 sps:$4 sm:$0xff]  }
 0x4dc   :  { %6042 = vmatpush1.bf16.msra.mxu0 %v8160_v53  ;;  %6000 = vmatprep.subr.bf16.mxu1 %v8165_v19  ;;  %v8228_v53 = vld [vmem:[#allocation4 + $0xcec] ss:$28 sps:$4 sm:$0xff]  }
 0x4dd   :  { %6043 = vmatprep.subr.bf16.mxu0 %v8168_v20  ;;  %v8223_v19 = vld [vmem:[#allocation4 + $0x968] ss:$28 sps:$4 sm:$0xff]  }
 0x4de   :  { %v8226_v20 = vld [vmem:[#allocation4 + $0xce8] ss:$28 sps:$4 sm:$0xff]  }
 0x4df   :  { %6001 = vmatpush1.bf16.msra.mxu1 %v8163_v23  ;;  %v8231_v23 = vld [vmem:[#allocation4 + $0x934] ss:$28 sps:$4 sm:$0xff]  }
 0x4e0   :  { %6044 = vmatpush1.bf16.msra.mxu0 %v8166_v33  ;;  %6002 = vmatprep.subr.bf16.mxu1 %v8171_v9  ;;  %v8234_v33 = vld [vmem:[#allocation4 + $0xcb4] ss:$28 sps:$4 sm:$0xff]  }
 0x4e1   :  { %6045 = vmatprep.subr.bf16.mxu0 %v8174_v58  ;;  %v8229_v9 = vld [vmem:[#allocation4 + $0x930] ss:$28 sps:$4 sm:$0xff]  }
 0x4e2   :  { %v8232_v58 = vld [vmem:[#allocation4 + $0xcb0] ss:$28 sps:$4 sm:$0xff]  }
 0x4e3   :  { %6003 = vmatpush1.bf16.msra.mxu1 %v8169_v62  ;;  %v8237_v62 = vld [vmem:[#allocation4 + $0x8fc] ss:$28 sps:$4 sm:$0xff]  }
 0x4e4   :  { %6046 = vmatpush1.bf16.msra.mxu0 %v8172_v29  ;;  %6004 = vmatprep.subr.bf16.mxu1 %v8177_v55  ;;  %v8240_v29 = vld [vmem:[#allocation4 + $0xc7c] ss:$28 sps:$4 sm:$0xff]  }
 0x4e5   :  { %6047 = vmatprep.subr.bf16.mxu0 %v8180_v56  ;;  %v8235_v55 = vld [vmem:[#allocation4 + $0x8f8] ss:$28 sps:$4 sm:$0xff]  }
 0x4e6   :  { %v8238_v56 = vld [vmem:[#allocation4 + $0xc78] ss:$28 sps:$4 sm:$0xff]  }
 0x4e7   :  { %6005 = vmatpush1.bf16.msra.mxu1 %v8175_v10  ;;  %v8243_v10 = vld [vmem:[#allocation4 + $0x8c4] ss:$28 sps:$4 sm:$0xff]  }
 0x4e8   :  { %6048 = vmatpush1.bf16.msra.mxu0 %v8178_v25  ;;  %6006 = vmatprep.subr.bf16.mxu1 %v8183_v46  ;;  %v8246_v25 = vld [vmem:[#allocation4 + $0xc44] ss:$28 sps:$4 sm:$0xff]  }
 0x4e9   :  { %6049 = vmatprep.subr.bf16.mxu0 %v8186_v31  ;;  %v8241_v46 = vld [vmem:[#allocation4 + $0x8c0] ss:$28 sps:$4 sm:$0xff]  }
 0x4ea   :  { %v8244_v31 = vld [vmem:[#allocation4 + $0xc40] ss:$28 sps:$4 sm:$0xff]  }
 0x4eb   :  { %6007 = vmatpush1.bf16.msra.mxu1 %v8181_v32  ;;  %v8249_v32 = vld [vmem:[#allocation4 + $0x194] ss:$28 sps:$4 sm:$0xff]  }
 0x4ec   :  { %6050 = vmatpush1.bf16.msra.mxu0 %v8184_v27  ;;  %6008 = vmatprep.subr.bf16.mxu1 %v8189_v37  ;;  %v8252_v27 = vld [vmem:[#allocation4 + $0x514] ss:$28 sps:$4 sm:$0xff]   ;;  %v9242_v37 = vpack.c.bf16 %v3078_v0, %v3070_v24  ;;  %v8261_v24 = vld [vmem:[#allocation4 + $0x124] ss:$28 sps:$4 sm:$0xff]  }
 0x4ed   :  { %6051 = vmatprep.subr.bf16.mxu0 %v8192_v47  ;;  %v9248_v47 = vpack.c.bf16 %v3080_v43, %v3072_v52  ;;  %v8264_v0 = vld [vmem:[#allocation4 + $0x4a4] ss:$28 sps:$4 sm:$0xff]   ;;  %v8267_v52 = vld [vmem:[#allocation4 + $0xec] ss:$28 sps:$4 sm:$0xff]  }
 0x4ee   :  { %v8270_v43 = vld [vmem:[#allocation4 + $0x46c] ss:$28 sps:$4 sm:$0xff]  }
 0x4ef   :  { %6009 = vmatpush1.bf16.msra.mxu1 %v8187_v60  ;;  %v8247_v60 = vld [vmem:[#allocation4 + $0x190] ss:$28 sps:$4 sm:$0xff]  }
 0x4f0   :  { %6052 = vmatpush1.bf16.msra.mxu0 %v8190_v63  ;;  %6010 = vmatprep.subr.bf16.mxu1 %v8195_v16  ;;  %v8250_v63 = vld [vmem:[#allocation4 + $0x510] ss:$28 sps:$4 sm:$0xff]   ;;  %v8255_v16 = vld [vmem:[#allocation4 + $0x15c] ss:$28 sps:$4 sm:$0xff]  }
 0x4f1   :  { %6053 = vmatprep.subr.bf16.mxu0 %v8198_v17  ;;  %v8258_v17 = vld [vmem:[#allocation4 + $0x4dc] ss:$28 sps:$4 sm:$0xff]  }
 0x4f3   :  { %6011 = vmatpush1.bf16.msra.mxu1 %v8193_v21  ;;  %v8265_v21 = vld [vmem:[#allocation4 + $0xe8] ss:$28 sps:$4 sm:$0xff]  }
 0x4f4   :  { %6054 = vmatpush1.bf16.msra.mxu0 %v8196_v34  ;;  %6012 = vmatprep.subr.bf16.mxu1 %v8201_v13  ;;  %v8268_v34 = vld [vmem:[#allocation4 + $0x468] ss:$28 sps:$4 sm:$0xff]   ;;  %v8273_v13 = vld [vmem:[#allocation4 + $0xb4] ss:$28 sps:$4 sm:$0xff]  }
 0x4f5   :  { %6055 = vmatprep.subr.bf16.mxu0 %v8204_v41  ;;  %v8276_v41 = vld [vmem:[#allocation4 + $0x434] ss:$28 sps:$4 sm:$0xff]  }
 0x4f7   :  { %6013 = vmatpush2.bf16.msra.mxu1 %v8199_v38  ;;  %v8271_v38 = vld [vmem:[#allocation4 + $0xb0] ss:$28 sps:$4 sm:$0xff]  }
 0x4f8   :  { %6056 = vmatpush2.bf16.msra.mxu0 %v8202_v48  ;;  %6014 = vmatprep.subr.bf16.mxu1 %v8207_v45  ;;  %v8274_v48 = vld [vmem:[#allocation4 + $0x430] ss:$28 sps:$4 sm:$0xff]   ;;  %v8279_v45 = vld [vmem:[#allocation4 + $0x7c] ss:$28 sps:$4 sm:$0xff]  }
 0x4f9   :  { %6057 = vmatprep.subr.bf16.mxu0 %v8210_v51  ;;  %v8282_v51 = vld [vmem:[#allocation4 + $0x3fc] ss:$28 sps:$4 sm:$0xff]  }
 0x4fb   :  { %6015 = vmatpush2.bf16.msra.mxu1 %v8205_v11  ;;  %v8277_v11 = vld [vmem:[#allocation4 + $0x78] ss:$28 sps:$4 sm:$0xff]  }
 0x4fc   :  { %6058 = vmatpush2.bf16.msra.mxu0 %v8208_v57  ;;  %6016 = vmatprep.subr.bf16.mxu1 %v8213_v61  ;;  %v8280_v57 = vld [vmem:[#allocation4 + $0x3f8] ss:$28 sps:$4 sm:$0xff]   ;;  %v8285_v61 = vld [vmem:[#allocation4 + $0x44] ss:$28 sps:$4 sm:$0xff]  }
 0x4fd   :  { %6059 = vmatprep.subr.bf16.mxu0 %v8216_v44  ;;  %v8288_v44 = vld [vmem:[#allocation4 + $0x3c4] ss:$28 sps:$4 sm:$0xff]  }
 0x4ff   :  { %6017 = vmatpush2.bf16.msra.mxu1 %v8211_v18  ;;  %v8283_v18 = vld [vmem:[#allocation4 + $0x40] ss:$28 sps:$4 sm:$0xff]  }
 0x500   :  { %6060 = vmatpush2.bf16.msra.mxu0 %v8214_v54  ;;  %6018 = vmatprep.subr.bf16.mxu1 %v8219_v26  ;;  %v8286_v54 = vld [vmem:[#allocation4 + $0x3c0] ss:$28 sps:$4 sm:$0xff]   ;;  %v8291_v26 = vld [vmem:[#allocation4 + $0xc] ss:$28 sps:$4 sm:$0xff]  }
 0x501   :  { %6061 = vmatprep.subr.bf16.mxu0 %v8222_v30  ;;  %v8294_v30 = vld [vmem:[#allocation4 + $0x38c] ss:$28 sps:$4 sm:$0xff]  }
 0x503   :  { %6019 = vmatpush2.bf16.msra.mxu1 %v8217_v35  ;;  %v8289_v35 = vld [vmem:[#allocation4 + $0x8] ss:$28 sps:$4 sm:$0xff]  }
 0x504   :  { %6062 = vmatpush2.bf16.msra.mxu0 %v8220_v36  ;;  %6020 = vmatprep.subr.bf16.mxu1 %v8225_v50  ;;  %v8292_v36 = vld [vmem:[#allocation4 + $0x388] ss:$28 sps:$4 sm:$0xff]   ;;  %v8297_v50 = vld [vmem:[#allocation4 + $0x354] ss:$28 sps:$4 sm:$0xff]  }
 0x505   :  { %6063 = vmatprep.subr.bf16.mxu0 %v8228_v53  ;;  %v8300_v53 = vld [vmem:[#allocation4 + $0x6d4] ss:$28 sps:$4 sm:$0xff]  }
 0x507   :  { %6021 = vmatpush2.bf16.msra.mxu1 %v8223_v19  ;;  %v8295_v19 = vld [vmem:[#allocation4 + $0x350] ss:$28 sps:$4 sm:$0xff]  }
 0x508   :  { %6064 = vmatpush2.bf16.msra.mxu0 %v8226_v20  ;;  %6022 = vmatprep.subr.bf16.mxu1 %v8231_v23  ;;  %v8298_v20 = vld [vmem:[#allocation4 + $0x6d0] ss:$28 sps:$4 sm:$0xff]   ;;  %v8303_v23 = vld [vmem:[#allocation4 + $0x31c] ss:$28 sps:$4 sm:$0xff]  }
 0x509   :  { %6065 = vmatprep.subr.bf16.mxu0 %v8234_v33  ;;  %v8306_v33 = vld [vmem:[#allocation4 + $0x69c] ss:$28 sps:$4 sm:$0xff]  }
 0x50b   :  { %6023 = vmatpush2.bf16.msra.mxu1 %v8229_v9  ;;  %v8301_v9 = vld [vmem:[#allocation4 + $0x318] ss:$28 sps:$4 sm:$0xff]  }
 0x50c   :  { %6066 = vmatpush2.bf16.msra.mxu0 %v8232_v58  ;;  %6024 = vmatprep.subr.bf16.mxu1 %v8237_v62  ;;  %v8304_v58 = vld [vmem:[#allocation4 + $0x698] ss:$28 sps:$4 sm:$0xff]   ;;  %v8309_v62 = vld [vmem:[#allocation4 + $0x2e4] ss:$28 sps:$4 sm:$0xff]  }
 0x50d   :  { %6067 = vmatprep.subr.bf16.mxu0 %v8240_v29  ;;  %v8312_v29 = vld [vmem:[#allocation4 + $0x664] ss:$28 sps:$4 sm:$0xff]  }
 0x50f   :  { %6025 = vmatpush2.bf16.msra.mxu1 %v8235_v55  ;;  %v8307_v55 = vld [vmem:[#allocation4 + $0x2e0] ss:$28 sps:$4 sm:$0xff]  }
 0x510   :  { %6068 = vmatpush2.bf16.msra.mxu0 %v8238_v56  ;;  %6026 = vmatprep.subr.bf16.mxu1 %v8243_v10  ;;  %v8310_v56 = vld [vmem:[#allocation4 + $0x660] ss:$28 sps:$4 sm:$0xff]   ;;  %v8315_v10 = vld [vmem:[#allocation4 + $0x2ac] ss:$28 sps:$4 sm:$0xff]  }
 0x511   :  { %6069 = vmatprep.subr.bf16.mxu0 %v8246_v25  ;;  %v8318_v25 = vld [vmem:[#allocation4 + $0x62c] ss:$28 sps:$4 sm:$0xff]  }
 0x513   :  { %6027 = vmatpush2.bf16.msra.mxu1 %v8241_v46  ;;  %v8313_v46 = vld [vmem:[#allocation4 + $0x2a8] ss:$28 sps:$4 sm:$0xff]  }
 0x514   :  { %6070 = vmatpush2.bf16.msra.mxu0 %v8244_v31  ;;  %6082 = vmatprep.subr.bf16.mxu1 %v8249_v32  ;;  %v8316_v31 = vld [vmem:[#allocation4 + $0x628] ss:$28 sps:$4 sm:$0xff]   ;;  %v8321_v32 = vld [vmem:[#allocation4 + $0x274] ss:$28 sps:$4 sm:$0xff]  }
 0x515   :  { %6125 = vmatprep.subr.bf16.mxu0 %v8252_v27  ;;  %v8324_v27 = vld [vmem:[#allocation4 + $0x5f4] ss:$28 sps:$4 sm:$0xff]  }
 0x516   :  { %6029 = vmatmul.mubr.bf16.vlgmr.msra.gmra.mxu1 %v9242_v37 }
 0x517   :  { %6072 = vmatmul.mubr.bf16.vlgmr.msra.gmra.mxu0 %v9248_v47  ;;  %6083 = vmatpush1.bf16.msra.mxu1 %v8247_v60  ;;  %v8319_v60 = vld [vmem:[#allocation4 + $0x270] ss:$28 sps:$4 sm:$0xff]  }
 0x518   :  { %6126 = vmatpush1.bf16.msra.mxu0 %v8250_v63  ;;  %6084 = vmatprep.subr.bf16.mxu1 %v8255_v16  ;;  %v8322_v63 = vld [vmem:[#allocation4 + $0x5f0] ss:$28 sps:$4 sm:$0xff]   ;;  %v8327_v16 = vld [vmem:[#allocation4 + $0x23c] ss:$28 sps:$4 sm:$0xff]  }
 0x519   :  { %6127 = vmatprep.subr.bf16.mxu0 %v8258_v17  ;;  %6114 = vmatprep.mubr.bf16.mxu1 %v9200_v6  ;;  %v8330_v17 = vld [vmem:[#allocation4 + $0x5bc] ss:$28 sps:$4 sm:$0xff]  }
 0x51a   :  { %6157 = vmatprep.mubr.bf16.mxu0 %v9206_v28 }
 0x51b   :  { %6085 = vmatpush1.bf16.msra.mxu1 %v8253_v40  ;;  %v8325_v40 = vld [vmem:[#allocation4 + $0x238] ss:$28 sps:$4 sm:$0xff]  }
 0x51c   :  { %6128 = vmatpush1.bf16.msra.mxu0 %v8256_v42  ;;  %6086 = vmatprep.subr.bf16.mxu1 %v8261_v24  ;;  %v8328_v42 = vld [vmem:[#allocation4 + $0x5b8] ss:$28 sps:$4 sm:$0xff]   ;;  %v8333_v24 = vld [vmem:[#allocation4 + $0x204] ss:$28 sps:$4 sm:$0xff]  }
 0x51d   :  { %6129 = vmatprep.subr.bf16.mxu0 %v8264_v0  ;;  %v8336_v0 = vld [vmem:[#allocation4 + $0x584] ss:$28 sps:$4 sm:$0xff]  }
 0x51f   :  { %6087 = vmatpush1.bf16.msra.mxu1 %v8259_v15  ;;  %v8331_v15 = vld [vmem:[#allocation4 + $0x200] ss:$28 sps:$4 sm:$0xff]  }
 0x520   :  { %6130 = vmatpush1.bf16.msra.mxu0 %v8262_v39  ;;  %6088 = vmatprep.subr.bf16.mxu1 %v8267_v52  ;;  %v8334_v39 = vld [vmem:[#allocation4 + $0x580] ss:$28 sps:$4 sm:$0xff]   ;;  %v8339_v52 = vld [vmem:[#allocation4 + $0x1cc] ss:$28 sps:$4 sm:$0xff]  }
 0x521   :  { %6131 = vmatprep.subr.bf16.mxu0 %v8270_v43  ;;  %v8342_v43 = vld [vmem:[#allocation4 + $0x54c] ss:$28 sps:$4 sm:$0xff]  }
 0x523   :  { %6089 = vmatpush1.bf16.msra.mxu1 %v8265_v21  ;;  %v8337_v21 = vld [vmem:[#allocation4 + $0x1c8] ss:$28 sps:$4 sm:$0xff]  }
 0x524   :  { %6132 = vmatpush1.bf16.msra.mxu0 %v8268_v34  ;;  %6090 = vmatprep.subr.bf16.mxu1 %v8273_v13  ;;  %v8340_v34 = vld [vmem:[#allocation4 + $0x548] ss:$28 sps:$4 sm:$0xff]   ;;  %v8345_v13 = vld [vmem:[#allocation4 + $0x894] ss:$28 sps:$4 sm:$0xff]  }
 0x525   :  { %6133 = vmatprep.subr.bf16.mxu0 %v8276_v41  ;;  %v8348_v41 = vld [vmem:[#allocation4 + $0xc14] ss:$28 sps:$4 sm:$0xff]  }
 0x527   :  { %6091 = vmatpush1.bf16.msra.mxu1 %v8271_v38  ;;  %v8343_v38 = vld [vmem:[#allocation4 + $0x890] ss:$28 sps:$4 sm:$0xff]  }
 0x528   :  { %6134 = vmatpush1.bf16.msra.mxu0 %v8274_v48  ;;  %6092 = vmatprep.subr.bf16.mxu1 %v8279_v45  ;;  %v8346_v48 = vld [vmem:[#allocation4 + $0xc10] ss:$28 sps:$4 sm:$0xff]   ;;  %v8351_v45 = vld [vmem:[#allocation4 + $0x85c] ss:$28 sps:$4 sm:$0xff]  }
 0x529   :  { %6135 = vmatprep.subr.bf16.mxu0 %v8282_v51  ;;  %v8354_v51 = vld [vmem:[#allocation4 + $0xbdc] ss:$28 sps:$4 sm:$0xff]  }
 0x52b   :  { %6093 = vmatpush1.bf16.msra.mxu1 %v8277_v11  ;;  %v8349_v11 = vld [vmem:[#allocation4 + $0x858] ss:$28 sps:$4 sm:$0xff]  }
 0x52c   :  { %6136 = vmatpush1.bf16.msra.mxu0 %v8280_v57  ;;  %6094 = vmatprep.subr.bf16.mxu1 %v8285_v61  ;;  %v8352_v57 = vld [vmem:[#allocation4 + $0xbd8] ss:$28 sps:$4 sm:$0xff]   ;;  %v8357_v61 = vld [vmem:[#allocation4 + $0x824] ss:$28 sps:$4 sm:$0xff]  }
 0x52d   :  { %6137 = vmatprep.subr.bf16.mxu0 %v8288_v44  ;;  %v8360_v44 = vld [vmem:[#allocation4 + $0xba4] ss:$28 sps:$4 sm:$0xff]  }
 0x52f   :  { %6095 = vmatpush1.bf16.msra.mxu1 %v8283_v18  ;;  %v8355_v18 = vld [vmem:[#allocation4 + $0x820] ss:$28 sps:$4 sm:$0xff]  }
 0x530   :  { %6138 = vmatpush1.bf16.msra.mxu0 %v8286_v54  ;;  %6096 = vmatprep.subr.bf16.mxu1 %v8291_v26  ;;  %v8358_v54 = vld [vmem:[#allocation4 + $0xba0] ss:$28 sps:$4 sm:$0xff]   ;;  %v8363_v26 = vld [vmem:[#allocation4 + $0x7ec] ss:$28 sps:$4 sm:$0xff]  }
 0x531   :  { %6139 = vmatprep.subr.bf16.mxu0 %v8294_v30  ;;  %v8366_v30 = vld [vmem:[#allocation4 + $0xb6c] ss:$28 sps:$4 sm:$0xff]  }
 0x533   :  { %6097 = vmatpush1.bf16.msra.mxu1 %v8289_v35  ;;  %v8361_v35 = vld [vmem:[#allocation4 + $0x7e8] ss:$28 sps:$4 sm:$0xff]  }
 0x534   :  { %6140 = vmatpush1.bf16.msra.mxu0 %v8292_v36  ;;  %6098 = vmatprep.subr.bf16.mxu1 %v8297_v50  ;;  %v8364_v36 = vld [vmem:[#allocation4 + $0xb68] ss:$28 sps:$4 sm:$0xff]   ;;  %v8369_v50 = vld [vmem:[#allocation4 + $0x7b4] ss:$28 sps:$4 sm:$0xff]  }
 0x535   :  { %6141 = vmatprep.subr.bf16.mxu0 %v8300_v53  ;;  %v8372_v53 = vld [vmem:[#allocation4 + $0xb34] ss:$28 sps:$4 sm:$0xff]  }
 0x537   :  { %6099 = vmatpush2.bf16.msra.mxu1 %v8295_v19  ;;  %v8367_v19 = vld [vmem:[#allocation4 + $0x7b0] ss:$28 sps:$4 sm:$0xff]  }
 0x538   :  { %6142 = vmatpush2.bf16.msra.mxu0 %v8298_v20  ;;  %6100 = vmatprep.subr.bf16.mxu1 %v8303_v23  ;;  %v8370_v20 = vld [vmem:[#allocation4 + $0xb30] ss:$28 sps:$4 sm:$0xff]   ;;  %v8375_v23 = vld [vmem:[#allocation4 + $0x77c] ss:$28 sps:$4 sm:$0xff]  }
 0x539   :  { %6143 = vmatprep.subr.bf16.mxu0 %v8306_v33  ;;  %v8378_v33 = vld [vmem:[#allocation4 + $0xafc] ss:$28 sps:$4 sm:$0xff]  }
 0x53b   :  { %6101 = vmatpush2.bf16.msra.mxu1 %v8301_v9  ;;  %v8373_v9 = vld [vmem:[#allocation4 + $0x778] ss:$28 sps:$4 sm:$0xff]  }
 0x53c   :  { %6144 = vmatpush2.bf16.msra.mxu0 %v8304_v58  ;;  %6102 = vmatprep.subr.bf16.mxu1 %v8309_v62  ;;  %v8376_v58 = vld [vmem:[#allocation4 + $0xaf8] ss:$28 sps:$4 sm:$0xff]   ;;  %v8381_v62 = vld [vmem:[#allocation4 + $0x744] ss:$28 sps:$4 sm:$0xff]  }
 0x53d   :  { %6145 = vmatprep.subr.bf16.mxu0 %v8312_v29  ;;  %v8384_v29 = vld [vmem:[#allocation4 + $0xac4] ss:$28 sps:$4 sm:$0xff]  }
 0x53f   :  { %6103 = vmatpush2.bf16.msra.mxu1 %v8307_v55  ;;  %v8379_v55 = vld [vmem:[#allocation4 + $0x740] ss:$28 sps:$4 sm:$0xff]  }
 0x540   :  { %6146 = vmatpush2.bf16.msra.mxu0 %v8310_v56  ;;  %6104 = vmatprep.subr.bf16.mxu1 %v8315_v10  ;;  %v8382_v56 = vld [vmem:[#allocation4 + $0xac0] ss:$28 sps:$4 sm:$0xff]   ;;  %v8387_v10 = vld [vmem:[#allocation4 + $0x70c] ss:$28 sps:$4 sm:$0xff]  }
 0x541   :  { %6147 = vmatprep.subr.bf16.mxu0 %v8318_v25  ;;  %v8390_v25 = vld [vmem:[#allocation4 + $0xa8c] ss:$28 sps:$4 sm:$0xff]  }
 0x543   :  { %6105 = vmatpush2.bf16.msra.mxu1 %v8313_v46  ;;  %v8385_v46 = vld [vmem:[#allocation4 + $0x708] ss:$28 sps:$4 sm:$0xff]  }
 0x544   :  { %6148 = vmatpush2.bf16.msra.mxu0 %v8316_v31  ;;  %6106 = vmatprep.subr.bf16.mxu1 %v8321_v32  ;;  %v8388_v31 = vld [vmem:[#allocation4 + $0xa88] ss:$28 sps:$4 sm:$0xff]   ;;  %v8393_v32 = vld [vmem:[#allocation4 + $0xa54] ss:$28 sps:$4 sm:$0xff]  }
 0x545   :  { %6149 = vmatprep.subr.bf16.mxu0 %v8324_v27  ;;  %v8396_v27 = vld [vmem:[#allocation4 + $0xdd4] ss:$28 sps:$4 sm:$0xff]  }
 0x547   :  { %6107 = vmatpush2.bf16.msra.mxu1 %v8319_v60  ;;  %v8391_v60 = vld [vmem:[#allocation4 + $0xa50] ss:$28 sps:$4 sm:$0xff]  }
 0x548   :  { %6150 = vmatpush2.bf16.msra.mxu0 %v8322_v63  ;;  %6108 = vmatprep.subr.bf16.mxu1 %v8327_v16  ;;  %v8394_v63 = vld [vmem:[#allocation4 + $0xdd0] ss:$28 sps:$4 sm:$0xff]   ;;  %v8399_v16 = vld [vmem:[#allocation4 + $0xa1c] ss:$28 sps:$4 sm:$0xff]  }
 0x549   :  { %6151 = vmatprep.subr.bf16.mxu0 %v8330_v17  ;;  %v8402_v17 = vld [vmem:[#allocation4 + $0xd9c] ss:$28 sps:$4 sm:$0xff]  }
 0x54b   :  { %6109 = vmatpush2.bf16.msra.mxu1 %v8325_v40  ;;  %v8397_v40 = vld [vmem:[#allocation4 + $0xa18] ss:$28 sps:$4 sm:$0xff]  }
 0x54c   :  { %6152 = vmatpush2.bf16.msra.mxu0 %v8328_v42  ;;  %6110 = vmatprep.subr.bf16.mxu1 %v8333_v24  ;;  %v8400_v42 = vld [vmem:[#allocation4 + $0xd98] ss:$28 sps:$4 sm:$0xff]   ;;  %v8405_v24 = vld [vmem:[#allocation4 + $0x9e4] ss:$28 sps:$4 sm:$0xff]  }
 0x54d   :  { %6153 = vmatprep.subr.bf16.mxu0 %v8336_v0  ;;  %v8408_v0 = vld [vmem:[#allocation4 + $0xd64] ss:$28 sps:$4 sm:$0xff]  }
 0x54f   :  { %6111 = vmatpush2.bf16.msra.mxu1 %v8331_v15  ;;  %v8403_v15 = vld [vmem:[#allocation4 + $0x9e0] ss:$28 sps:$4 sm:$0xff]  }
 0x550   :  { %6154 = vmatpush2.bf16.msra.mxu0 %v8334_v39  ;;  %6112 = vmatprep.subr.bf16.mxu1 %v8339_v52  ;;  %v8406_v39 = vld [vmem:[#allocation4 + $0xd60] ss:$28 sps:$4 sm:$0xff]   ;;  %v8411_v52 = vld [vmem:[#allocation4 + $0x9ac] ss:$28 sps:$4 sm:$0xff]  }
 0x551   :  { %6155 = vmatprep.subr.bf16.mxu0 %v8342_v43  ;;  %v8414_v43 = vld [vmem:[#allocation4 + $0xd2c] ss:$28 sps:$4 sm:$0xff]  }
 0x553   :  { %6113 = vmatpush2.bf16.msra.mxu1 %v8337_v21  ;;  %v8409_v21 = vld [vmem:[#allocation4 + $0x9a8] ss:$28 sps:$4 sm:$0xff]  }
 0x554   :  { %6156 = vmatpush2.bf16.msra.mxu0 %v8340_v34  ;;  %6168 = vmatprep.subr.bf16.mxu1 %v8345_v13  ;;  %v8412_v34 = vld [vmem:[#allocation4 + $0xd28] ss:$28 sps:$4 sm:$0xff]   ;;  %v8417_v13 = vld [vmem:[#allocation4 + $0x974] ss:$28 sps:$4 sm:$0xff]  }
 0x555   :  { %6211 = vmatprep.subr.bf16.mxu0 %v8348_v41  ;;  %v8420_v41 = vld [vmem:[#allocation4 + $0xcf4] ss:$28 sps:$4 sm:$0xff]  }
 0x556   :  { %6115 = vmatmul.mubr.bf16.vlgmr.msra.gmra.mxu1 %v9214_v22 }
 0x557   :  { %6158 = vmatmul.mubr.bf16.vlgmr.msra.gmra.mxu0 %v9220_v59  ;;  %6169 = vmatpush1.bf16.msra.mxu1 %v8343_v38  ;;  %v8415_v38 = vld [vmem:[#allocation4 + $0x970] ss:$28 sps:$4 sm:$0xff]  }
 0x558   :  { %6212 = vmatpush1.bf16.msra.mxu0 %v8346_v48  ;;  %6170 = vmatprep.subr.bf16.mxu1 %v8351_v45  ;;  %v8418_v48 = vld [vmem:[#allocation4 + $0xcf0] ss:$28 sps:$4 sm:$0xff]   ;;  %v8423_v45 = vld [vmem:[#allocation4 + $0x93c] ss:$28 sps:$4 sm:$0xff]  }
 0x559   :  { %6213 = vmatprep.subr.bf16.mxu0 %v8354_v51  ;;  %6200 = vmatprep.mubr.bf16.mxu1 %v9226_v14  ;;  %v8426_v51 = vld [vmem:[#allocation4 + $0xcbc] ss:$28 sps:$4 sm:$0xff]  }
 0x55a   :  { %6243 = vmatprep.mubr.bf16.mxu0 %v9232_v49 }
 0x55b   :  { %6171 = vmatpush1.bf16.msra.mxu1 %v8349_v11  ;;  %v8421_v11 = vld [vmem:[#allocation4 + $0x938] ss:$28 sps:$4 sm:$0xff]  }
 0x55c   :  { %6214 = vmatpush1.bf16.msra.mxu0 %v8352_v57  ;;  %6172 = vmatprep.subr.bf16.mxu1 %v8357_v61  ;;  %v8424_v57 = vld [vmem:[#allocation4 + $0xcb8] ss:$28 sps:$4 sm:$0xff]   ;;  %v8429_v61 = vld [vmem:[#allocation4 + $0x904] ss:$28 sps:$4 sm:$0xff]  }
 0x55d   :  { %6215 = vmatprep.subr.bf16.mxu0 %v8360_v44  ;;  %v8432_v44 = vld [vmem:[#allocation4 + $0xc84] ss:$28 sps:$4 sm:$0xff]  }
 0x55f   :  { %6173 = vmatpush1.bf16.msra.mxu1 %v8355_v18  ;;  %v8427_v18 = vld [vmem:[#allocation4 + $0x900] ss:$28 sps:$4 sm:$0xff]  }
 0x560   :  { %6216 = vmatpush1.bf16.msra.mxu0 %v8358_v54  ;;  %6174 = vmatprep.subr.bf16.mxu1 %v8363_v26  ;;  %v8430_v54 = vld [vmem:[#allocation4 + $0xc80] ss:$28 sps:$4 sm:$0xff]   ;;  %v8435_v26 = vld [vmem:[#allocation4 + $0x8cc] ss:$28 sps:$4 sm:$0xff]  }
 0x561   :  { %6217 = vmatprep.subr.bf16.mxu0 %v8366_v30  ;;  %v8438_v30 = vld [vmem:[#allocation4 + $0xc4c] ss:$28 sps:$4 sm:$0xff]  }
 0x563   :  { %6175 = vmatpush1.bf16.msra.mxu1 %v8361_v35  ;;  %v8433_v35 = vld [vmem:[#allocation4 + $0x8c8] ss:$28 sps:$4 sm:$0xff]  }
 0x564   :  { %6218 = vmatpush1.bf16.msra.mxu0 %v8364_v36  ;;  %6176 = vmatprep.subr.bf16.mxu1 %v8369_v50  ;;  %v8436_v36 = vld [vmem:[#allocation4 + $0xc48] ss:$28 sps:$4 sm:$0xff]   ;;  %v8441_v50 = vld [vmem:[#allocation4 + $0x19c] ss:$28 sps:$4 sm:$0xff]  }
 0x565   :  { %6219 = vmatprep.subr.bf16.mxu0 %v8372_v53  ;;  %v8444_v53 = vld [vmem:[#allocation4 + $0x51c] ss:$28 sps:$4 sm:$0xff]  }
 0x567   :  { %6177 = vmatpush1.bf16.msra.mxu1 %v8367_v19  ;;  %v8439_v19 = vld [vmem:[#allocation4 + $0x198] ss:$28 sps:$4 sm:$0xff]  }
 0x568   :  { %6220 = vmatpush1.bf16.msra.mxu0 %v8370_v20  ;;  %6178 = vmatprep.subr.bf16.mxu1 %v8375_v23  ;;  %v8442_v20 = vld [vmem:[#allocation4 + $0x518] ss:$28 sps:$4 sm:$0xff]   ;;  %v8447_v23 = vld [vmem:[#allocation4 + $0x164] ss:$28 sps:$4 sm:$0xff]  }
 0x569   :  { %6221 = vmatprep.subr.bf16.mxu0 %v8378_v33  ;;  %v8450_v33 = vld [vmem:[#allocation4 + $0x4e4] ss:$28 sps:$4 sm:$0xff]  }
 0x56b   :  { %6179 = vmatpush1.bf16.msra.mxu1 %v8373_v9  ;;  %v8445_v9 = vld [vmem:[#allocation4 + $0x160] ss:$28 sps:$4 sm:$0xff]  }
 0x56c   :  { %6222 = vmatpush1.bf16.msra.mxu0 %v8376_v58  ;;  %6180 = vmatprep.subr.bf16.mxu1 %v8381_v62  ;;  %v8448_v58 = vld [vmem:[#allocation4 + $0x4e0] ss:$28 sps:$4 sm:$0xff]   ;;  %v8453_v62 = vld [vmem:[#allocation4 + $0x12c] ss:$28 sps:$4 sm:$0xff]  }
 0x56d   :  { %6223 = vmatprep.subr.bf16.mxu0 %v8384_v29  ;;  %v8456_v29 = vld [vmem:[#allocation4 + $0x4ac] ss:$28 sps:$4 sm:$0xff]  }
 0x56f   :  { %6181 = vmatpush1.bf16.msra.mxu1 %v8379_v55  ;;  %v8451_v55 = vld [vmem:[#allocation4 + $0x128] ss:$28 sps:$4 sm:$0xff]  }
 0x570   :  { %6224 = vmatpush1.bf16.msra.mxu0 %v8382_v56  ;;  %6182 = vmatprep.subr.bf16.mxu1 %v8387_v10  ;;  %v8454_v56 = vld [vmem:[#allocation4 + $0x4a8] ss:$28 sps:$4 sm:$0xff]   ;;  %v8459_v10 = vld [vmem:[#allocation4 + $0xf4] ss:$28 sps:$4 sm:$0xff]  }
 0x571   :  { %6225 = vmatprep.subr.bf16.mxu0 %v8390_v25  ;;  %v8462_v25 = vld [vmem:[#allocation4 + $0x474] ss:$28 sps:$4 sm:$0xff]  }
 0x573   :  { %6183 = vmatpush1.bf16.msra.mxu1 %v8385_v46  ;;  %v8457_v46 = vld [vmem:[#allocation4 + $0xf0] ss:$28 sps:$4 sm:$0xff]  }
 0x574   :  { %6226 = vmatpush1.bf16.msra.mxu0 %v8388_v31  ;;  %6184 = vmatprep.subr.bf16.mxu1 %v8393_v32  ;;  %v8460_v31 = vld [vmem:[#allocation4 + $0x470] ss:$28 sps:$4 sm:$0xff]   ;;  %v8465_v32 = vld [vmem:[#allocation4 + $0xbc] ss:$28 sps:$4 sm:$0xff]  }
 0x575   :  { %6227 = vmatprep.subr.bf16.mxu0 %v8396_v27  ;;  %v8468_v27 = vld [vmem:[#allocation4 + $0x43c] ss:$28 sps:$4 sm:$0xff]  }
 0x577   :  { %6185 = vmatpush2.bf16.msra.mxu1 %v8391_v60  ;;  %v8463_v60 = vld [vmem:[#allocation4 + $0xb8] ss:$28 sps:$4 sm:$0xff]  }
 0x578   :  { %6228 = vmatpush2.bf16.msra.mxu0 %v8394_v63  ;;  %6186 = vmatprep.subr.bf16.mxu1 %v8399_v16  ;;  %v8466_v63 = vld [vmem:[#allocation4 + $0x438] ss:$28 sps:$4 sm:$0xff]   ;;  %v8471_v16 = vld [vmem:[#allocation4 + $0x84] ss:$28 sps:$4 sm:$0xff]  }
 0x579   :  { %6229 = vmatprep.subr.bf16.mxu0 %v8402_v17  ;;  %v8474_v17 = vld [vmem:[#allocation4 + $0x404] ss:$28 sps:$4 sm:$0xff]  }
 0x57b   :  { %6187 = vmatpush2.bf16.msra.mxu1 %v8397_v40  ;;  %v8469_v40 = vld [vmem:[#allocation4 + $0x80] ss:$28 sps:$4 sm:$0xff]  }
 0x57c   :  { %6230 = vmatpush2.bf16.msra.mxu0 %v8400_v42  ;;  %6188 = vmatprep.subr.bf16.mxu1 %v8405_v24  ;;  %v8472_v42 = vld [vmem:[#allocation4 + $0x400] ss:$28 sps:$4 sm:$0xff]   ;;  %v8477_v24 = vld [vmem:[#allocation4 + $0x4c] ss:$28 sps:$4 sm:$0xff]  }
 0x57d   :  { %6231 = vmatprep.subr.bf16.mxu0 %v8408_v0  ;;  %v8480_v0 = vld [vmem:[#allocation4 + $0x3cc] ss:$28 sps:$4 sm:$0xff]  }
 0x57f   :  { %6189 = vmatpush2.bf16.msra.mxu1 %v8403_v15  ;;  %v8475_v15 = vld [vmem:[#allocation4 + $0x48] ss:$28 sps:$4 sm:$0xff]  }
 0x580   :  { %6232 = vmatpush2.bf16.msra.mxu0 %v8406_v39  ;;  %6190 = vmatprep.subr.bf16.mxu1 %v8411_v52  ;;  %v8478_v39 = vld [vmem:[#allocation4 + $0x3c8] ss:$28 sps:$4 sm:$0xff]   ;;  %v8483_v52 = vld [vmem:[#allocation4 + $0x14] ss:$28 sps:$4 sm:$0xff]  }
 0x581   :  { %6233 = vmatprep.subr.bf16.mxu0 %v8414_v43  ;;  %v8486_v43 = vld [vmem:[#allocation4 + $0x394] ss:$28 sps:$4 sm:$0xff]  }
 0x583   :  { %6191 = vmatpush2.bf16.msra.mxu1 %v8409_v21  ;;  %v8481_v21 = vld [vmem:[#allocation4 + $0x10] ss:$28 sps:$4 sm:$0xff]  }
 0x584   :  { %6234 = vmatpush2.bf16.msra.mxu0 %v8412_v34  ;;  %6192 = vmatprep.subr.bf16.mxu1 %v8417_v13  ;;  %v8484_v34 = vld [vmem:[#allocation4 + $0x390] ss:$28 sps:$4 sm:$0xff]   ;;  %v8489_v13 = vld [vmem:[#allocation4 + $0x35c] ss:$28 sps:$4 sm:$0xff]  }
 0x585   :  { %6235 = vmatprep.subr.bf16.mxu0 %v8420_v41  ;;  %v8492_v41 = vld [vmem:[#allocation4 + $0x6dc] ss:$28 sps:$4 sm:$0xff]  }
 0x587   :  { %6193 = vmatpush2.bf16.msra.mxu1 %v8415_v38  ;;  %v8487_v38 = vld [vmem:[#allocation4 + $0x358] ss:$28 sps:$4 sm:$0xff]  }
 0x588   :  { %6236 = vmatpush2.bf16.msra.mxu0 %v8418_v48  ;;  %6194 = vmatprep.subr.bf16.mxu1 %v8423_v45  ;;  %v8490_v48 = vld [vmem:[#allocation4 + $0x6d8] ss:$28 sps:$4 sm:$0xff]   ;;  %v8495_v45 = vld [vmem:[#allocation4 + $0x324] ss:$28 sps:$4 sm:$0xff]  }
 0x589   :  { %6237 = vmatprep.subr.bf16.mxu0 %v8426_v51  ;;  %v8498_v51 = vld [vmem:[#allocation4 + $0x6a4] ss:$28 sps:$4 sm:$0xff]  }
 0x58b   :  { %6195 = vmatpush2.bf16.msra.mxu1 %v8421_v11  ;;  %v8493_v11 = vld [vmem:[#allocation4 + $0x320] ss:$28 sps:$4 sm:$0xff]  }
 0x58c   :  { %6238 = vmatpush2.bf16.msra.mxu0 %v8424_v57  ;;  %6196 = vmatprep.subr.bf16.mxu1 %v8429_v61  ;;  %v8496_v57 = vld [vmem:[#allocation4 + $0x6a0] ss:$28 sps:$4 sm:$0xff]   ;;  %v8501_v61 = vld [vmem:[#allocation4 + $0x2ec] ss:$28 sps:$4 sm:$0xff]  }
 0x58d   :  { %6239 = vmatprep.subr.bf16.mxu0 %v8432_v44  ;;  %v8504_v44 = vld [vmem:[#allocation4 + $0x66c] ss:$28 sps:$4 sm:$0xff]  }
 0x58f   :  { %6197 = vmatpush2.bf16.msra.mxu1 %v8427_v18  ;;  %v8499_v18 = vld [vmem:[#allocation4 + $0x2e8] ss:$28 sps:$4 sm:$0xff]  }
 0x590   :  { %6240 = vmatpush2.bf16.msra.mxu0 %v8430_v54  ;;  %6198 = vmatprep.subr.bf16.mxu1 %v8435_v26  ;;  %v8502_v54 = vld [vmem:[#allocation4 + $0x668] ss:$28 sps:$4 sm:$0xff]   ;;  %v8507_v26 = vld [vmem:[#allocation4 + $0x2b4] ss:$28 sps:$4 sm:$0xff]  }
 0x591   :  { %6241 = vmatprep.subr.bf16.mxu0 %v8438_v30  ;;  %v8510_v30 = vld [vmem:[#allocation4 + $0x634] ss:$28 sps:$4 sm:$0xff]  }
 0x593   :  { %6199 = vmatpush2.bf16.msra.mxu1 %v8433_v35  ;;  %v8505_v35 = vld [vmem:[#allocation4 + $0x2b0] ss:$28 sps:$4 sm:$0xff]  }
 0x594   :  { %6242 = vmatpush2.bf16.msra.mxu0 %v8436_v36  ;;  %6254 = vmatprep.subr.bf16.mxu1 %v8441_v50  ;;  %v8508_v36 = vld [vmem:[#allocation4 + $0x630] ss:$28 sps:$4 sm:$0xff]   ;;  %v8513_v50 = vld [vmem:[#allocation4 + $0x27c] ss:$28 sps:$4 sm:$0xff]  }
 0x595   :  { %6297 = vmatprep.subr.bf16.mxu0 %v8444_v53  ;;  %v8516_v53 = vld [vmem:[#allocation4 + $0x5fc] ss:$28 sps:$4 sm:$0xff]  }
 0x596   :  { %6201 = vmatmul.mubr.bf16.vlgmr.msra.gmra.mxu1 %v9242_v37 }
 0x597   :  { %6244 = vmatmul.mubr.bf16.vlgmr.msra.gmra.mxu0 %v9248_v47  ;;  %6255 = vmatpush1.bf16.msra.mxu1 %v8439_v19  ;;  %v8511_v19 = vld [vmem:[#allocation4 + $0x278] ss:$28 sps:$4 sm:$0xff]  }
 0x598   :  { %6298 = vmatpush1.bf16.msra.mxu0 %v8442_v20  ;;  %6256 = vmatprep.subr.bf16.mxu1 %v8447_v23  ;;  %v8514_v20 = vld [vmem:[#allocation4 + $0x5f8] ss:$28 sps:$4 sm:$0xff]   ;;  %v8519_v23 = vld [vmem:[#allocation4 + $0x244] ss:$28 sps:$4 sm:$0xff]  }
 0x599   :  { %6299 = vmatprep.subr.bf16.mxu0 %v8450_v33  ;;  %6286 = vmatprep.mubr.bf16.mxu1 %v9200_v6  ;;  %v8522_v33 = vld [vmem:[#allocation4 + $0x5c4] ss:$28 sps:$4 sm:$0xff]  }
 0x59a   :  { %6329 = vmatprep.mubr.bf16.mxu0 %v9206_v28 }
 0x59b   :  { %6257 = vmatpush1.bf16.msra.mxu1 %v8445_v9  ;;  %v8517_v9 = vld [vmem:[#allocation4 + $0x240] ss:$28 sps:$4 sm:$0xff]  }
 0x59c   :  { %6300 = vmatpush1.bf16.msra.mxu0 %v8448_v58  ;;  %6258 = vmatprep.subr.bf16.mxu1 %v8453_v62  ;;  %v8520_v58 = vld [vmem:[#allocation4 + $0x5c0] ss:$28 sps:$4 sm:$0xff]   ;;  %v8525_v62 = vld [vmem:[#allocation4 + $0x20c] ss:$28 sps:$4 sm:$0xff]  }
 0x59d   :  { %6301 = vmatprep.subr.bf16.mxu0 %v8456_v29  ;;  %v5944_v29 = vpop.f32.mrf.mxu1 }
 0x59f   :  { %6259 = vmatpush1.bf16.msra.mxu1 %v8451_v55  ;;  %v5987_v55 = vpop.f32.mrf.mxu0 }
 0x5a0   :  { %6302 = vmatpush1.bf16.msra.mxu0 %v8454_v56  ;;  %6260 = vmatprep.subr.bf16.mxu1 %v8459_v10  ;;  %v8528_v56 = vld [vmem:[#allocation4 + $0x58c] ss:$28 sps:$4 sm:$0xff]  }
 0x5a1   :  { %6303 = vmatprep.subr.bf16.mxu0 %v8462_v25  ;;  %v8523_v10 = vld [vmem:[#allocation4 + $0x208] ss:$28 sps:$4 sm:$0xff]  }
 0x5a2   :  { %v8526_v25 = vld [vmem:[#allocation4 + $0x588] ss:$28 sps:$4 sm:$0xff]  }
 0x5a3   :  { %6261 = vmatpush1.bf16.msra.mxu1 %v8457_v46  ;;  %v8531_v46 = vld [vmem:[#allocation4 + $0x1d4] ss:$28 sps:$4 sm:$0xff]  }
 0x5a4   :  { %6304 = vmatpush1.bf16.msra.mxu0 %v8460_v31  ;;  %6262 = vmatprep.subr.bf16.mxu1 %v8465_v32  ;;  %v5946_v31 = vpop.f32.mrf.mxu1  ;;  %v5989_v32 = vpop.f32.mrf.mxu0 }
 0x5a5   :  { %6305 = vmatprep.subr.bf16.mxu0 %v8468_v27  ;;  %v8534_v27 = vld [vmem:[#allocation4 + $0x554] ss:$28 sps:$4 sm:$0xff]  }
 0x5a7   :  { %6263 = vmatpush1.bf16.msra.mxu1 %v8463_v60  ;;  %v8529_v60 = vld [vmem:[#allocation4 + $0x1d0] ss:$28 sps:$4 sm:$0xff]  }
 0x5a8   :  { %6306 = vmatpush1.bf16.msra.mxu0 %v8466_v63  ;;  %6264 = vmatprep.subr.bf16.mxu1 %v8471_v16  ;;  %v8532_v63 = vld [vmem:[#allocation4 + $0x550] ss:$28 sps:$4 sm:$0xff]   ;;  %v8537_v16 = vld [vmem:[#allocation4 + $0x89c] ss:$28 sps:$4 sm:$0xff]  }
 0x5a9   :  { %6307 = vmatprep.subr.bf16.mxu0 %v8474_v17  ;;  %v5948_v17 = vpop.f32.mrf.mxu1 }
 0x5ab   :  { %6265 = vmatpush1.bf16.msra.mxu1 %v8469_v40  ;;  %v5991_v40 = vpop.f32.mrf.mxu0 }
 0x5ac   :  { %6308 = vmatpush1.bf16.msra.mxu0 %v8472_v42  ;;  %6266 = vmatprep.subr.bf16.mxu1 %v8477_v24  ;;  %v8540_v42 = vld [vmem:[#allocation4 + $0xc1c] ss:$28 sps:$4 sm:$0xff]  }
 0x5ad   :  { %6309 = vmatprep.subr.bf16.mxu0 %v8480_v0  ;;  %v8535_v24 = vld [vmem:[#allocation4 + $0x898] ss:$28 sps:$4 sm:$0xff]  }
 0x5ae   :  { %v8538_v0 = vld [vmem:[#allocation4 + $0xc18] ss:$28 sps:$4 sm:$0xff]  }
 0x5af   :  { %6267 = vmatpush1.bf16.msra.mxu1 %v8475_v15  ;;  %v5950_v15 = vpop.f32.mrf.mxu1 }
 0x5b0   :  { %6310 = vmatpush1.bf16.msra.mxu0 %v8478_v39  ;;  %6268 = vmatprep.subr.bf16.mxu1 %v8483_v52  ;;  %v5993_v39 = vpop.f32.mrf.mxu0  ;;  %v8543_v52 = vld [vmem:[#allocation4 + $0x864] ss:$28 sps:$4 sm:$0xff]  }
 0x5b1   :  { %6311 = vmatprep.subr.bf16.mxu0 %v8486_v43  ;;  %v8546_v43 = vld [vmem:[#allocation4 + $0xbe4] ss:$28 sps:$4 sm:$0xff]  }
 0x5b3   :  { %6269 = vmatpush1.bf16.msra.mxu1 %v8481_v21 }
 0x5b4   :  { %6312 = vmatpush1.bf16.msra.mxu0 %v8484_v34  ;;  %6270 = vmatprep.subr.bf16.mxu1 %v8489_v13  ;;  %v5988_v13 = vadd.f32 %v5987_v55, %v5944_v29 }
 0x5b5   :  { %6313 = vmatprep.subr.bf16.mxu0 %v8492_v41  ;;  %v8541_v41 = vld [vmem:[#allocation4 + $0x860] ss:$28 sps:$4 sm:$0xff]  }
 0x5b7   :  { %6271 = vmatpush2.bf16.msra.mxu1 %v8487_v38  ;;  %v8544_v38 = vld [vmem:[#allocation4 + $0xbe0] ss:$28 sps:$4 sm:$0xff]  }
 0x5b8   :  { %6314 = vmatpush2.bf16.msra.mxu0 %v8490_v48  ;;  %6272 = vmatprep.subr.bf16.mxu1 %v8495_v45 }
 0x5b9   :  { %6315 = vmatprep.subr.bf16.mxu0 %v8498_v51  ;;  %v8549_v51 = vld [vmem:[#allocation4 + $0x82c] ss:$28 sps:$4 sm:$0xff]  }
 0x5bb   :  { %6273 = vmatpush2.bf16.msra.mxu1 %v8493_v11  ;;  %v8552_v11 = vld [vmem:[#allocation4 + $0xbac] ss:$28 sps:$4 sm:$0xff]  }
 0x5bc   :  { %6316 = vmatpush2.bf16.msra.mxu0 %v8496_v57  ;;  %6274 = vmatprep.subr.bf16.mxu1 %v8501_v61  ;;  %v5990_v57 = vadd.f32 %v5989_v32, %v5946_v31  ;;  %v5992_v61 = vadd.f32 %v5991_v40, %v5948_v17  ;;  %v8567_v17 = vld [vmem:[#allocation4 + $0x784] ss:$28 sps:$4 sm:$0xff]  }
 0x5bd   :  { %6317 = vmatprep.subr.bf16.mxu0 %v8504_v44  ;;  %v8570_v40 = vld [vmem:[#allocation4 + $0xb04] ss:$28 sps:$4 sm:$0xff]  }
 0x5bf   :  { %6275 = vmatpush2.bf16.msra.mxu1 %v8499_v18 }
 0x5c0   :  { %6318 = vmatpush2.bf16.msra.mxu0 %v8502_v54  ;;  %6276 = vmatprep.subr.bf16.mxu1 %v8507_v26  ;;  %v5994_v26 = vadd.f32 %v5993_v39, %v5950_v15  ;;  %v8565_v39 = vld [vmem:[#allocation4 + $0x780] ss:$28 sps:$4 sm:$0xff]  }
 0x5c1   :  { %6319 = vmatprep.subr.bf16.mxu0 %v8510_v30 }
 0x5c3   :  { %6277 = vmatpush2.bf16.msra.mxu1 %v8505_v35 }
 0x5c4   :  { %6320 = vmatpush2.bf16.msra.mxu0 %v8508_v36  ;;  %6278 = vmatprep.subr.bf16.mxu1 %v8513_v50  ;;  %v8547_v36 = vld [vmem:[#allocation4 + $0x828] ss:$28 sps:$4 sm:$0xff]  }
 0x5c5   :  { %6321 = vmatprep.subr.bf16.mxu0 %v8516_v53  ;;  %v8550_v50 = vld [vmem:[#allocation4 + $0xba8] ss:$28 sps:$4 sm:$0xff]  }
 0x5c7   :  { %6279 = vmatpush2.bf16.msra.mxu1 %v8511_v19  ;;  %v8555_v19 = vld [vmem:[#allocation4 + $0x7f4] ss:$28 sps:$4 sm:$0xff]  }
 0x5c8   :  { %6322 = vmatpush2.bf16.msra.mxu0 %v8514_v20  ;;  %6280 = vmatprep.subr.bf16.mxu1 %v8519_v23  ;;  %v8558_v20 = vld [vmem:[#allocation4 + $0xb74] ss:$28 sps:$4 sm:$0xff]  }
 0x5c9   :  { %6323 = vmatprep.subr.bf16.mxu0 %v8522_v33 }
 0x5cb   :  { %6281 = vmatpush2.bf16.msra.mxu1 %v8517_v9 }
 0x5cc   :  { %6324 = vmatpush2.bf16.msra.mxu0 %v8520_v58  ;;  %6282 = vmatprep.subr.bf16.mxu1 %v8525_v62 }
 0x5cd   :  { %6325 = vmatprep.subr.bf16.mxu0 %v8528_v56  ;;  %v8553_v56 = vld [vmem:[#allocation4 + $0x7f0] ss:$28 sps:$4 sm:$0xff]  }
 0x5cf   :  { %6283 = vmatpush2.bf16.msra.mxu1 %v8523_v10  ;;  %v8556_v10 = vld [vmem:[#allocation4 + $0xb70] ss:$28 sps:$4 sm:$0xff]  }
 0x5d0   :  { %6326 = vmatpush2.bf16.msra.mxu0 %v8526_v25  ;;  %6284 = vmatprep.subr.bf16.mxu1 %v8531_v46  ;;  %v8561_v25 = vld [vmem:[#allocation4 + $0x7bc] ss:$28 sps:$4 sm:$0xff]  }
 0x5d1   :  { %6327 = vmatprep.subr.bf16.mxu0 %v8534_v27  ;;  %v8564_v46 = vld [vmem:[#allocation4 + $0xb3c] ss:$28 sps:$4 sm:$0xff]  }
 0x5d3   :  { %6285 = vmatpush2.bf16.msra.mxu1 %v8529_v60 }
 0x5d4   :  { %6328 = vmatpush2.bf16.msra.mxu0 %v8532_v63  ;;  %6340 = vmatprep.subr.bf16.mxu1 %v8537_v16  ;;  %v8559_v63 = vld [vmem:[#allocation4 + $0x7b8] ss:$28 sps:$4 sm:$0xff]  }
 0x5d5   :  { %6383 = vmatprep.subr.bf16.mxu0 %v8540_v42  ;;  %v8562_v16 = vld [vmem:[#allocation4 + $0xb38] ss:$28 sps:$4 sm:$0xff]  }
 0x5d6   :  { %v6030_v21 = vpop.f32.mrf.mxu1  ;;  %6287 = vmatmul.mubr.bf16.vlgmr.msra.gmra.mxu1 %v9214_v22 }
 0x5d7   :  { %v6073_v34 = vpop.f32.mrf.mxu0  ;;  %6330 = vmatmul.mubr.bf16.vlgmr.msra.gmra.mxu0 %v9220_v59  ;;  %6341 = vmatpush1.bf16.msra.mxu1 %v8535_v24  ;;  %v6031_v44 = vadd.f32 %v6030_v21, %v5988_v13  ;;  %v8576_v21 = vld [vmem:[#allocation4 + $0xacc] ss:$28 sps:$4 sm:$0xff]  }
 0x5d8   :  { %6384 = vmatpush1.bf16.msra.mxu0 %v8538_v0  ;;  %v6032_v48 = vpop.f32.mrf.mxu1  ;;  %6342 = vmatprep.subr.bf16.mxu1 %v8543_v52  ;;  %v8568_v52 = vld [vmem:[#allocation4 + $0xb00] ss:$28 sps:$4 sm:$0xff]  }
 0x5d9   :  { %v6075_v45 = vpop.f32.mrf.mxu0  ;;  %6385 = vmatprep.subr.bf16.mxu0 %v8546_v43  ;;  %6372 = vmatprep.mubr.bf16.mxu1 %v9226_v14  ;;  %v6033_v30 = vadd.f32 %v6032_v48, %v5990_v57  ;;  %v6074_v23 = vadd.f32 %v6073_v34, %v6031_v44  ;;  %v8573_v43 = vld [vmem:[#allocation4 + $0x74c] ss:$28 sps:$4 sm:$0xff]  }
 0x5da   :  { %6415 = vmatprep.mubr.bf16.mxu0 %v9232_v49  ;;  %v6034_v18 = vpop.f32.mrf.mxu1  ;;  %v8571_v48 = vld [vmem:[#allocation4 + $0x748] ss:$28 sps:$4 sm:$0xff]  }
 0x5db   :  { %v6077_v54 = vpop.f32.mrf.mxu0  ;;  %v6035_v35 = vadd.f32 %v6034_v18, %v5992_v61  ;;  %6343 = vmatpush1.bf16.msra.mxu1 %v8541_v41  ;;  %v6076_v62 = vadd.f32 %v6075_v45, %v6033_v30  ;;  %v8574_v45 = vld [vmem:[#allocation4 + $0xac8] ss:$28 sps:$4 sm:$0xff]   ;;  %v8580_v30 = vld [vmem:[#allocation4 + $0xa90] ss:$28 sps:$4 sm:$0xff]  }
 0x5dc   :  { %6386 = vmatpush1.bf16.msra.mxu0 %v8544_v38  ;;  %v6036_v53 = vpop.f32.mrf.mxu1  ;;  %6344 = vmatprep.subr.bf16.mxu1 %v8549_v51  ;;  %v8579_v51 = vld [vmem:[#allocation4 + $0x714] ss:$28 sps:$4 sm:$0xff]  }
 0x5dd   :  { %6387 = vmatprep.subr.bf16.mxu0 %v8552_v11  ;;  %v6078_v33 = vadd.f32 %v6077_v54, %v6035_v35  ;;  %v6037_v9 = vadd.f32 %v6036_v53, %v5994_v26  ;;  %v6079_v58 = vpop.f32.mrf.mxu0  ;;  %v8582_v11 = vld [vmem:[#allocation4 + $0xa94] ss:$28 sps:$4 sm:$0xff]   ;;  %v8585_v35 = vld [vmem:[#allocation4 + $0xa5c] ss:$28 sps:$4 sm:$0xff]  }
 0x5de   :  { %v8577_v26 = vld [vmem:[#allocation4 + $0x710] ss:$28 sps:$4 sm:$0xff]  }
 0x5df   :  { %v6590_v29 = vadd.f32 %v6078_v33, %v6074_v23  ;;  %v6080_v55 = vadd.f32 %v6079_v58, %v6037_v9  ;;  %6345 = vmatpush1.bf16.msra.mxu1 %v8547_v36  ;;  %v8588_v36 = vld [vmem:[#allocation4 + $0xddc] ss:$28 sps:$4 sm:$0xff]  }
 0x5e0   :  { %6388 = vmatpush1.bf16.msra.mxu0 %v8550_v50  ;;  %6346 = vmatprep.subr.bf16.mxu1 %v8555_v19  ;;  %v8583_v58 = vld [vmem:[#allocation4 + $0xa58] ss:$28 sps:$4 sm:$0xff]  }
 0x5e1   :  { %6389 = vmatprep.subr.bf16.mxu0 %v8558_v20  ;;  %v6591_v31 = vrot.slane %v6590_v29, 4  ;;  %v6597_v32 = vadd.f32 %v6080_v55, %v6076_v62 }
 0x5e3   :  { %v6592_v27 = vadd.f32 %v6591_v31, %v6590_v29  ;;  %v6598_v60 = vrot.slane %v6597_v32, 4  ;;  %6347 = vmatpush1.bf16.msra.mxu1 %v8553_v56  ;;  %v8586_v29 = vld [vmem:[#allocation4 + $0xdd8] ss:$28 sps:$4 sm:$0xff]   ;;  %v8591_v56 = vld [vmem:[#allocation4 + $0xa24] ss:$28 sps:$4 sm:$0xff]  }
 0x5e4   :  { %6390 = vmatpush1.bf16.msra.mxu0 %v8556_v10  ;;  %6348 = vmatprep.subr.bf16.mxu1 %v8561_v25  ;;  %v8594_v10 = vld [vmem:[#allocation4 + $0xda4] ss:$28 sps:$4 sm:$0xff]  }
 0x5e5   :  { %6391 = vmatprep.subr.bf16.mxu0 %v8564_v46  ;;  %v6593_v42 = vrot.slane %v6592_v27, 2  ;;  %v6599_v24 = vadd.f32 %v6598_v60, %v6597_v32  ;;  %v8589_v31 = vld [vmem:[#allocation4 + $0xa20] ss:$28 sps:$4 sm:$0xff]   ;;  %v8600_v60 = vld [vmem:[#allocation4 + $0xd6c] ss:$28 sps:$4 sm:$0xff]  }
 0x5e6   :  { %v8592_v32 = vld [vmem:[#allocation4 + $0xda0] ss:$28 sps:$4 sm:$0xff]  }
 0x5e7   :  { %v6594_v0 = vadd.f32 %v6593_v42, %v6592_v27  ;;  %v6600_v15 = vrot.slane %v6599_v24, 2  ;;  %6349 = vmatpush1.bf16.msra.mxu1 %v8559_v63  ;;  %v8597_v27 = vld [vmem:[#allocation4 + $0x9ec] ss:$28 sps:$4 sm:$0xff]  }
 0x5e8   :  { %6392 = vmatpush1.bf16.msra.mxu0 %v8562_v16  ;;  %6350 = vmatprep.subr.bf16.mxu1 %v8567_v17  ;;  %v8595_v42 = vld [vmem:[#allocation4 + $0x9e8] ss:$28 sps:$4 sm:$0xff]  }
 0x5e9   :  { %6393 = vmatprep.subr.bf16.mxu0 %v8570_v40  ;;  %v6595_v34 = vrot.slane %v6594_v0, 1  ;;  %v6601_v13 = vadd.f32 %v6600_v15, %v6599_v24  ;;  %v8598_v24 = vld [vmem:[#allocation4 + $0xd68] ss:$28 sps:$4 sm:$0xff]   ;;  %v8606_v15 = vld [vmem:[#allocation4 + $0xd34] ss:$28 sps:$4 sm:$0xff]  }
 0x5eb   :  { %v6596_v41 = vadd.f32 %v6595_v34, %v6594_v0  ;;  %v6602_v38 = vrot.slane %v6601_v13, 1  ;;  %6351 = vmatpush1.bf16.msra.mxu1 %v8565_v39  ;;  %v8603_v0 = vld [vmem:[#allocation4 + $0x9b4] ss:$28 sps:$4 sm:$0xff]  }
 0x5ec   :  { %6394 = vmatpush1.bf16.msra.mxu0 %v8568_v52  ;;  %6352 = vmatprep.subr.bf16.mxu1 %v8573_v43  ;;  %v8601_v34 = vld [vmem:[#allocation4 + $0x9b0] ss:$28 sps:$4 sm:$0xff]  }
 0x5ed   :  { %6395 = vmatprep.subr.bf16.mxu0 %v8576_v21  ;;  %v6639_v57 = vmul.f32 0.0625, %v6596_v41  ;;  %v6603_v61 = vadd.f32 %v6602_v38, %v6601_v13  ;;  %v8604_v13 = vld [vmem:[#allocation4 + $0xd30] ss:$28 sps:$4 sm:$0xff]   ;;  %v8609_v41 = vld [vmem:[#allocation4 + $0x97c] ss:$28 sps:$4 sm:$0xff]  }
 0x5ee   :  { %v8612_v38 = vld [vmem:[#allocation4 + $0xcfc] ss:$28 sps:$4 sm:$0xff]  }
 0x5ef   :  { %v9266_v44 = vsub.f32 %v6074_v23, %v6639_v57  ;;  %v9268_v18 = vsub.f32 %v6078_v33, %v6639_v57  ;;  %v6640_v54 = vmul.f32 0.0625, %v6603_v61  ;;  %6353 = vmatpush1.bf16.msra.mxu1 %v8571_v48  ;;  %v8610_v61 = vld [vmem:[#allocation4 + $0xcf8] ss:$28 sps:$4 sm:$0xff]  }
 0x5f0   :  { %6396 = vmatpush1.bf16.msra.mxu0 %v8574_v45  ;;  %6354 = vmatprep.subr.bf16.mxu1 %v8579_v51  ;;  %v8607_v51 = vld [vmem:[#allocation4 + $0x978] ss:$28 sps:$4 sm:$0xff]  }
 0x5f1   :  { %6397 = vmatprep.subr.bf16.mxu0 %v8582_v11  ;;  %v6660_v50 = vmul.f32 %v9266_v44, %v9266_v44  ;;  %v6667_v53 = vmul.f32 %v9268_v18, %v9268_v18  ;;  %v9274_v19 = vsub.f32 %v6076_v62, %v6640_v54  ;;  %v9276_v20 = vsub.f32 %v6080_v55, %v6640_v54  ;;  %v8615_v54 = vld [vmem:[#allocation4 + $0x944] ss:$28 sps:$4 sm:$0xff]  }
 0x5f3   :  { %v6674_v23 = vadd.f32 %v6667_v53, %v6660_v50  ;;  %v6661_v33 = vmul.f32 %v9274_v19, %v9274_v19  ;;  %v6668_v9 = vmul.f32 %v9276_v20, %v9276_v20  ;;  %6355 = vmatpush1.bf16.msra.mxu1 %v8577_v26  ;;  %v8618_v26 = vld [vmem:[#allocation4 + $0xcc4] ss:$28 sps:$4 sm:$0xff]   ;;  %v8621_v50 = vld [vmem:[#allocation4 + $0x90c] ss:$28 sps:$4 sm:$0xff]  }
 0x5f4   :  { %6398 = vmatpush1.bf16.msra.mxu0 %v8580_v30  ;;  %6356 = vmatprep.subr.bf16.mxu1 %v8585_v35  ;;  %v8613_v35 = vld [vmem:[#allocation4 + $0x940] ss:$28 sps:$4 sm:$0xff]   ;;  %v8624_v53 = vld [vmem:[#allocation4 + $0xc8c] ss:$28 sps:$4 sm:$0xff]  }
 0x5f5   :  { %6399 = vmatprep.subr.bf16.mxu0 %v8588_v36  ;;  %v6675_v25 = vrot.slane %v6674_v23, 4  ;;  %v6681_v62 = vadd.f32 %v6668_v9, %v6661_v33  ;;  %v8616_v36 = vld [vmem:[#allocation4 + $0xcc0] ss:$28 sps:$4 sm:$0xff]   ;;  %v8622_v33 = vld [vmem:[#allocation4 + $0xc88] ss:$28 sps:$4 sm:$0xff]  }
 0x5f6   :  { %v8627_v9 = vld [vmem:[#allocation4 + $0x8d4] ss:$28 sps:$4 sm:$0xff]  }
 0x5f7   :  { %v6676_v46 = vadd.f32 %v6675_v25, %v6674_v23  ;;  %v6682_v55 = vrot.slane %v6681_v62, 4  ;;  %6357 = vmatpush2.bf16.msra.mxu1 %v8583_v58  ;;  %v8619_v23 = vld [vmem:[#allocation4 + $0x908] ss:$28 sps:$4 sm:$0xff]   ;;  %v8630_v58 = vld [vmem:[#allocation4 + $0xc54] ss:$28 sps:$4 sm:$0xff]  }
 0x5f8   :  { %6400 = vmatpush2.bf16.msra.mxu0 %v8586_v29  ;;  %6358 = vmatprep.subr.bf16.mxu1 %v8591_v56  ;;  %v8625_v29 = vld [vmem:[#allocation4 + $0x8d0] ss:$28 sps:$4 sm:$0xff]   ;;  %v8632_v25 = vld [vmem:[#allocation4 + $0x6e0] ss:$28 sps:$4 sm:$0xff]  }
 0x5f9   :  { %6401 = vmatprep.subr.bf16.mxu0 %v8594_v10  ;;  %v6677_v63 = vrot.slane %v6676_v46, 2  ;;  %v6683_v16 = vadd.f32 %v6682_v55, %v6681_v62  ;;  %v8628_v56 = vld [vmem:[#allocation4 + $0xc50] ss:$28 sps:$4 sm:$0xff]   ;;  %v8631_v10 = vld [vmem:[#allocation4 + $0x360] ss:$28 sps:$4 sm:$0xff]   ;;  %v9283_v62 = vsub.s32 3, %v8994_v7 }
 0x5fb   :  { %v6678_v17 = vadd.f32 %v6677_v63, %v6676_v46  ;;  %v6684_v40 = vrot.slane %v6683_v16, 2  ;;  %6359 = vmatpush2.bf16.msra.mxu1 %v8589_v31  ;;  %v9286_v46 = vsub.s32 7, %v8994_v7  ;;  %v8635_v63 = vld [vmem:[#allocation4 + $0x328] ss:$28 sps:$4 sm:$0xff]  }
 0x5fc   :  { %6402 = vmatpush2.bf16.msra.mxu0 %v8592_v32  ;;  %6360 = vmatprep.subr.bf16.mxu1 %v8597_v27  ;;  %v8633_v32 = vld [vmem:[#allocation4 + $0x1a0] ss:$28 sps:$4 sm:$0xff]   ;;  %v8636_v7 = vld [vmem:[#allocation4 + $0x6a8] ss:$28 sps:$4 sm:$0xff]  }
 0x5fd   :  { %6403 = vmatprep.subr.bf16.mxu0 %v8600_v60  ;;  %v6679_v39 = vrot.slane %v6678_v17, 1  ;;  %v6685_v52 = vadd.f32 %v6684_v40, %v6683_v16  ;;  %v8634_v60 = vld [vmem:[#allocation4 + $0x520] ss:$28 sps:$4 sm:$0xff]  }
 0x5ff   :  { %v6680_v43 = vadd.f32 %v6679_v39, %v6678_v17  ;;  %v6686_v21 = vrot.slane %v6685_v52, 1  ;;  %6361 = vmatpush2.bf16.msra.mxu1 %v8595_v42  ;;  %v6796_v17 = vrot.slane %v8996_v8, %v9286_v46  ;;  %v8637_v39 = vld [vmem:[#allocation4 + $0x168] ss:$28 sps:$4 sm:$0xff]  }
 0x600   :  { %6404 = vmatpush2.bf16.msra.mxu0 %v8598_v24  ;;  %6362 = vmatprep.subr.bf16.mxu1 %v8603_v0 }
 0x601   :  { %6405 = vmatprep.subr.bf16.mxu0 %v8606_v15  ;;  %v6723_v48 = vmul.f32 0.0625, %v6680_v43  ;;  %v6687_v45 = vadd.f32 %v6686_v21, %v6685_v52  ;;  %v6800_v15 = vrot.slane %v9000_v12, %v9286_v46  ;;  %v8639_v52 = vld [vmem:[#allocation4 + $0x2f0] ss:$28 sps:$4 sm:$0xff]  }
 0x603   :  { %v6730_v11 = vadd.f32 1e-05, %v6723_v48  ;;  %v6724_v57 = vmul.f32 0.0625, %v6687_v45  ;;  %6363 = vmatpush2.bf16.msra.mxu1 %v8601_v34  ;;  %v8641_v48 = vld [vmem:[#allocation4 + $0x130] ss:$28 sps:$4 sm:$0xff]  }
 0x604   :  { %6406 = vmatpush2.bf16.msra.mxu0 %v8604_v13  ;;  %6364 = vmatprep.subr.bf16.mxu1 %v8609_v41  ;;  %v8642_v45 = vld [vmem:[#allocation4 + $0x4b0] ss:$28 sps:$4 sm:$0xff]  }
 0x605   :  { %6407 = vmatprep.subr.bf16.mxu0 %v8612_v38  ;;  %8695 = vrsqrt.f32 %v6730_v11  ;;  %v6731_v30 = vadd.f32 1e-05, %v6724_v57  ;;  %v8647_v57 = vld [vmem:[#allocation4 + $0x280] ss:$28 sps:$4 sm:$0xff]  }
 0x607   :  { %8697 = vrsqrt.f32 %v6731_v30  ;;  %6365 = vmatpush2.bf16.msra.mxu1 %v8607_v51  ;;  %v8643_v51 = vld [vmem:[#allocation4 + $0x2b8] ss:$28 sps:$4 sm:$0xff]   ;;  %v8651_v30 = vld [vmem:[#allocation4 + $0x248] ss:$28 sps:$4 sm:$0xff]  }
 0x608   :  { %6408 = vmatpush2.bf16.msra.mxu0 %v8610_v61  ;;  %6366 = vmatprep.subr.bf16.mxu1 %v8615_v54  ;;  %v8648_v61 = vld [vmem:[#allocation4 + $0x600] ss:$28 sps:$4 sm:$0xff]  }
 0x609   :  { %6409 = vmatprep.subr.bf16.mxu0 %v8618_v26  ;;  %v8649_v54 = vld [vmem:[#allocation4 + $0xc0] ss:$28 sps:$4 sm:$0xff]  }
 0x60a   :  { %v8650_v26 = vld [vmem:[#allocation4 + $0x440] ss:$28 sps:$4 sm:$0xff]  }
 0x60b   :  { %6367 = vmatpush2.bf16.msra.mxu1 %v8613_v35  ;;  %v8652_v35 = vld [vmem:[#allocation4 + $0x5c8] ss:$28 sps:$4 sm:$0xff]  }
 0x60c   :  { %6410 = vmatpush2.bf16.msra.mxu0 %v8616_v36  ;;  %6368 = vmatprep.subr.bf16.mxu1 %v8621_v50  ;;  %v8653_v36 = vld [vmem:[#allocation4 + $0x88] ss:$28 sps:$4 sm:$0xff]  }
 0x60d   :  { %6411 = vmatprep.subr.bf16.mxu0 %v8624_v53  ;;  %v8654_v50 = vld [vmem:[#allocation4 + $0x408] ss:$28 sps:$4 sm:$0xff]   ;;  %v8655_v53 = vld [vmem:[#allocation4 + $0x210] ss:$28 sps:$4 sm:$0xff]  }
 0x60f   :  { %6369 = vmatpush2.bf16.msra.mxu1 %v8619_v23  ;;  %v8656_v23 = vld [vmem:[#allocation4 + $0x590] ss:$28 sps:$4 sm:$0xff]  }
 0x610   :  { %6412 = vmatpush2.bf16.msra.mxu0 %v8622_v33  ;;  %6370 = vmatprep.subr.bf16.mxu1 %v8627_v9 }
 0x611   :  { %6413 = vmatprep.subr.bf16.mxu0 %v8630_v58 }
 0x612   :  { %v8696_v55 = vpop.eup %8695 }
 0x613   :  { %v6744_v31 = vmul.f32 %v8696_v55, %v8996_v8  ;;  %6371 = vmatpush2.bf16.msra.mxu1 %v8625_v29  ;;  %v8638_v8 = vld [vmem:[#allocation4 + $0x4e8] ss:$28 sps:$4 sm:$0xff]   ;;  %v8657_v29 = vld [vmem:[#allocation4 + $0x50] ss:$28 sps:$4 sm:$0xff]   ;;  %v8659_v55 = vld [vmem:[#allocation4 + $0x1d8] ss:$28 sps:$4 sm:$0xff]  }
 0x614   :  { %6414 = vmatpush2.bf16.msra.mxu0 %v8628_v56  ;;  %v8698_v27 = vpop.eup %8697  ;;  %7819 = vmatprep.subr.bf16.mxu1 %v8631_v10 }
 0x615   :  { %7841 = vmatprep.subr.bf16.mxu0 %v8632_v25  ;;  %v6754_v16 = vrot.slane %v6744_v31, %v9283_v62  ;;  %v6745_v40 = vmul.f32 %v8698_v27, %v9000_v12  ;;  %v8658_v25 = vld [vmem:[#allocation4 + $0x3d0] ss:$28 sps:$4 sm:$0xff]   ;;  %v8660_v27 = vld [vmem:[#allocation4 + $0x558] ss:$28 sps:$4 sm:$0xff]  }
 0x616   :  { %6373 = vmatmul.mubr.bf16.vlgmr.msra.gmra.mxu1 %v9242_v37 }
 0x617   :  { %6416 = vmatmul.mubr.bf16.vlgmr.msra.gmra.mxu0 %v9248_v47  ;;  %v6779_v42 = vmul.f32 %v6754_v16, %v9266_v44  ;;  %v6786_v24 = vmul.f32 %v6754_v16, %v9268_v18  ;;  %v6758_v0 = vrot.slane %v6745_v40, %v9283_v62  ;;  %7820 = vmatpush3.bf16.msra.mxu1 %v8633_v32  ;;  %v8640_v44 = vld [vmem:[#allocation4 + $0x670] ss:$28 sps:$4 sm:$0xff]   ;;  %v8662_v16 = vld [vmem:[#allocation4 + $0x398] ss:$28 sps:$4 sm:$0xff]   ;;  %v8664_v40 = vld [vmem:[#allocation4 + $0xde0] ss:$28 sps:$4 sm:$0xff]  }
 0x618   :  { %7842 = vmatpush3.bf16.msra.mxu0 %v8634_v60  ;;  %7821 = vmatprep.subr.bf16.mxu1 %v8635_v63  ;;  %v8661_v63 = vld [vmem:[#allocation4 + $0x18] ss:$28 sps:$4 sm:$0xff]  }
 0x619   :  { %v6821_v43 = vadd.f32 %v6796_v17, %v6779_v42  ;;  %v6828_v21 = vadd.f32 %v6796_v17, %v6786_v24  ;;  %v6780_v34 = vmul.f32 %v6758_v0, %v9274_v19  ;;  %v6787_v13 = vmul.f32 %v6758_v0, %v9276_v20  ;;  %7843 = vmatprep.subr.bf16.mxu0 %v8636_v7  ;;  %v8644_v20 = vld [vmem:[#allocation4 + $0x638] ss:$28 sps:$4 sm:$0xff]   ;;  %v8663_v17 = vld [vmem:[#allocation4 + $0xa60] ss:$28 sps:$4 sm:$0xff]   ;;  %v8667_v24 = vld [vmem:[#allocation4 + $0xa28] ss:$28 sps:$4 sm:$0xff]  }
 0x61a   :  { %6458 = vmatprep.mubr.bf16.mxu1 %v9200_v6  ;;  %6499 = vmatprep.mubr.bf16.mxu0 %v9206_v28  ;;  %v8645_v6 = vld [vmem:[#allocation4 + $0xf8] ss:$28 sps:$4 sm:$0xff]   ;;  %v8665_v7 = vld [vmem:[#allocation4 + $0x8a0] ss:$28 sps:$4 sm:$0xff]   ;;  %v8668_v0 = vld [vmem:[#allocation4 + $0xda8] ss:$28 sps:$4 sm:$0xff]  }
 0x61b   :  { %v7786_v18 = vmul.f32 -1.442695, %v6821_v43  ;;  %v7793_v12 = vmul.f32 -1.442695, %v6828_v21  ;;  %v6822_v41 = vadd.f32 %v6800_v15, %v6780_v34  ;;  %v6829_v38 = vadd.f32 %v6800_v15, %v6787_v13  ;;  %7822 = vmatpush3.bf16.msra.mxu1 %v8637_v39  ;;  %v8646_v28 = vld [vmem:[#allocation4 + $0x478] ss:$28 sps:$4 sm:$0xff]  }
 0x61c   :  { %7844 = vmatpush3.bf16.msra.mxu0 %v8638_v8  ;;  %7823 = vmatprep.subr.bf16.mxu1 %v8639_v52  ;;  %v8666_v42 = vld [vmem:[#allocation4 + $0xc20] ss:$28 sps:$4 sm:$0xff]   ;;  %v8669_v15 = vld [vmem:[#allocation4 + $0x868] ss:$28 sps:$4 sm:$0xff]   ;;  %v8671_v8 = vld [vmem:[#allocation4 + $0x9f0] ss:$28 sps:$4 sm:$0xff]  }
 0x61d   :  { %8699 = vpow2.f32 %v7786_v18  ;;  %v7787_v19 = vmul.f32 -1.442695, %v6822_v41  ;;  %v7794_v11 = vmul.f32 -1.442695, %v6829_v38  ;;  %7845 = vmatprep.subr.bf16.mxu0 %v8640_v44  ;;  %v8670_v39 = vld [vmem:[#allocation4 + $0xbe8] ss:$28 sps:$4 sm:$0xff]  }
 0x61e   :  { %8701 = vpow2.f32 %v7793_v12  ;;  %v8672_v52 = vld [vmem:[#allocation4 + $0xd70] ss:$28 sps:$4 sm:$0xff]   ;;  %v8676_v12 = vld [vmem:[#allocation4 + $0xd38] ss:$28 sps:$4 sm:$0xff]  }
 0x61f   :  { %8703 = vpow2.f32 %v7787_v19  ;;  %7824 = vmatpush3.bf16.msra.mxu1 %v8641_v48  ;;  %v8673_v34 = vld [vmem:[#allocation4 + $0x830] ss:$28 sps:$4 sm:$0xff]   ;;  %v8677_v38 = vld [vmem:[#allocation4 + $0x7f8] ss:$28 sps:$4 sm:$0xff]   ;;  %v8680_v48 = vld [vmem:[#allocation4 + $0xd00] ss:$28 sps:$4 sm:$0xff]  }
 0x620   :  { %8705 = vpow2.f32 %v7794_v11  ;;  %7846 = vmatpush3.bf16.msra.mxu0 %v8642_v45  ;;  %7825 = vmatprep.subr.bf16.mxu1 %v8643_v51  ;;  %v8681_v45 = vld [vmem:[#allocation4 + $0x7c0] ss:$28 sps:$4 sm:$0xff]   ;;  %v8683_v19 = vld [vmem:[#allocation4 + $0x948] ss:$28 sps:$4 sm:$0xff]  }
 0x621   :  { %7847 = vmatprep.subr.bf16.mxu0 %v8644_v20  ;;  %v8682_v51 = vld [vmem:[#allocation4 + $0xb40] ss:$28 sps:$4 sm:$0xff]   ;;  %v8684_v11 = vld [vmem:[#allocation4 + $0xcc8] ss:$28 sps:$4 sm:$0xff]  }
 0x622   :  { %v8685_v20 = vld [vmem:[#allocation4 + $0x788] ss:$28 sps:$4 sm:$0xff]  }
 0x623   :  { %7826 = vmatpush3.bf16.msra.mxu1 %v8645_v6  ;;  %v6116_v6 = vpop.f32.mrf.mxu1 }
 0x624   :  { %7848 = vmatpush3.bf16.msra.mxu0 %v8646_v28  ;;  %7827 = vmatprep.subr.bf16.mxu1 %v8647_v57  ;;  %v6159_v28 = vpop.f32.mrf.mxu0  ;;  %v8686_v57 = vld [vmem:[#allocation4 + $0xb08] ss:$28 sps:$4 sm:$0xff]  }
 0x625   :  { %7849 = vmatprep.subr.bf16.mxu0 %v8648_v61  ;;  %v8687_v61 = vld [vmem:[#allocation4 + $0x910] ss:$28 sps:$4 sm:$0xff]  }
 0x627   :  { %7828 = vmatpush3.bf16.msra.mxu1 %v8649_v54  ;;  %v8688_v54 = vld [vmem:[#allocation4 + $0xc90] ss:$28 sps:$4 sm:$0xff]  }
 0x628   :  { %7850 = vmatpush3.bf16.msra.mxu0 %v8650_v26  ;;  %7829 = vmatprep.subr.bf16.mxu1 %v8651_v30  ;;  %v8689_v26 = vld [vmem:[#allocation4 + $0x750] ss:$28 sps:$4 sm:$0xff]   ;;  %v6118_v30 = vpop.f32.mrf.mxu1 }
 0x629   :  { %7851 = vmatprep.subr.bf16.mxu0 %v8652_v35  ;;  %v6161_v35 = vpop.f32.mrf.mxu0 }
 0x62a   :  { %v8700_v33 = vpop.eup %8699 }
 0x62b   :  { %v8702_v9 = vpop.eup %8701  ;;  %v6877_v58 = vadd.f32 1.0, %v8700_v33  ;;  %7830 = vmatpush3.bf16.msra.mxu1 %v8653_v36  ;;  %v8690_v36 = vld [vmem:[#allocation4 + $0xad0] ss:$28 sps:$4 sm:$0xff]   ;;  %v6120_v33 = vpop.f32.mrf.mxu1 }
 0x62c   :  { %v8704_v56 = vpop.eup %8703  ;;  %v6884_v10 = vadd.f32 1.0, %v8702_v9  ;;  %7852 = vmatpush3.bf16.msra.mxu0 %v8654_v50  ;;  %7831 = vmatprep.subr.bf16.mxu1 %v8655_v53  ;;  %v8691_v50 = vld [vmem:[#allocation4 + $0x8d8] ss:$28 sps:$4 sm:$0xff]   ;;  %v6163_v9 = vpop.f32.mrf.mxu0 }
 0x62d   :  { %v8706_v31 = vpop.eup %8705  ;;  %8707 = vrcp.f32 %v6877_v58  ;;  %v6878_v32 = vadd.f32 1.0, %v8704_v56  ;;  %7853 = vmatprep.subr.bf16.mxu0 %v8656_v23  ;;  %v8692_v53 = vld [vmem:[#allocation4 + $0xc58] ss:$28 sps:$4 sm:$0xff]  }
 0x62e   :  { %8709 = vrcp.f32 %v6884_v10  ;;  %v6885_v60 = vadd.f32 1.0, %v8706_v31  ;;  %v8693_v23 = vld [vmem:[#allocation4 + $0x718] ss:$28 sps:$4 sm:$0xff]   ;;  %v6165_v56 = vpop.f32.mrf.mxu0 }
 0x62f   :  { %8711 = vrcp.f32 %v6878_v32  ;;  %7832 = vmatpush3.bf16.msra.mxu1 %v8657_v29  ;;  %v8694_v58 = vld [vmem:[#allocation4 + $0xa98] ss:$28 sps:$4 sm:$0xff]   ;;  %v6122_v29 = vpop.f32.mrf.mxu1 }
 0x630   :  { %8713 = vrcp.f32 %v6885_v60  ;;  %7854 = vmatpush3.bf16.msra.mxu0 %v8658_v25  ;;  %7833 = vmatprep.subr.bf16.mxu1 %v8659_v55  ;;  %v6160_v55 = vadd.f32 %v6159_v28, %v6116_v6  ;;  %v6164_v60 = vadd.f32 %v6163_v9, %v6120_v33 }
 0x631   :  { %7855 = vmatprep.subr.bf16.mxu0 %v8660_v27  ;;  %v6162_v27 = vadd.f32 %v6161_v35, %v6118_v30 }
 0x633   :  { %7834 = vmatpush3.bf16.msra.mxu1 %v8661_v63 }
 0x634   :  { %7856 = vmatpush3.bf16.msra.mxu0 %v8662_v16  ;;  %7863 = vmatprep.subr.bf16.mxu1 %v8663_v17 }
 0x635   :  { %7885 = vmatprep.subr.bf16.mxu0 %v8664_v40  ;;  %v6166_v40 = vadd.f32 %v6165_v56, %v6122_v29 }
 0x636   :  { %6459 = vmatmul.mubr.bf16.vlgmr.msra.gmra.mxu1 %v9214_v22  ;;  %v8674_v22 = vld [vmem:[#allocation4 + $0xbb0] ss:$28 sps:$4 sm:$0xff]  }
 0x637   :  { %6500 = vmatmul.mubr.bf16.vlgmr.msra.gmra.mxu0 %v9220_v59  ;;  %7864 = vmatpush3.bf16.msra.mxu1 %v8665_v7  ;;  %v8675_v59 = vld [vmem:[#allocation4 + $0x9b8] ss:$28 sps:$4 sm:$0xff]  }
 0x638   :  { %7886 = vmatpush3.bf16.msra.mxu0 %v8666_v42  ;;  %7865 = vmatprep.subr.bf16.mxu1 %v8667_v24 }
 0x639   :  { %7887 = vmatprep.subr.bf16.mxu0 %v8668_v0  ;;  %6540 = vmatprep.mubr.bf16.mxu1 %v9226_v14  ;;  %v8678_v14 = vld [vmem:[#allocation4 + $0xb78] ss:$28 sps:$4 sm:$0xff]  }
 0x63a   :  { %v8708_v43 = vpop.eup %8707  ;;  %6581 = vmatprep.mubr.bf16.mxu0 %v9232_v49  ;;  %v8679_v49 = vld [vmem:[#allocation4 + $0x980] ss:$28 sps:$4 sm:$0xff]  }
 0x63b   :  { %v8710_v21 = vpop.eup %8709  ;;  %7866 = vmatpush3.bf16.msra.mxu1 %v8669_v15 }
 0x63c   :  { %v8712_v13 = vpop.eup %8711  ;;  %7888 = vmatpush3.bf16.msra.mxu0 %v8670_v39  ;;  %7867 = vmatprep.subr.bf16.mxu1 %v8671_v8 }
 0x63d   :  { %v8714_v44 = vpop.eup %8713  ;;  %v7811_v18 = vpack.c.bf16 %v8712_v13, %v8708_v43  ;;  %7889 = vmatprep.subr.bf16.mxu0 %v8672_v52 }
 0x63e   :  { %v7815_v41 = vpack.c.bf16 %v8714_v44, %v8710_v21 }
 0x63f   :  { %6963 = vst [vmem:[#allocation12] sm:$0xff] %v7811_v18  ;;  %7868 = vmatpush3.bf16.msra.mxu1 %v8673_v34 }
 0x640   :  { %6967 = vst [vmem:[#allocation12 + $0x1c] sm:$0xff] %v7815_v41  ;;  %7890 = vmatpush3.bf16.msra.mxu0 %v8674_v22  ;;  %7869 = vmatprep.subr.bf16.mxu1 %v8675_v59 }
 0x641   :  { %7891 = vmatprep.subr.bf16.mxu0 %v8676_v12 }
 0x643   :  { %7870 = vmatpush3.bf16.msra.mxu1 %v8677_v38 }
 0x644   :  { %7892 = vmatpush3.bf16.msra.mxu0 %v8678_v14  ;;  %7871 = vmatprep.subr.bf16.mxu1 %v8679_v49 }
 0x645   :  { %7893 = vmatprep.subr.bf16.mxu0 %v8680_v48 }
 0x647   :  { %7872 = vmatpush3.bf16.msra.mxu1 %v8681_v45 }
 0x648   :  { %7894 = vmatpush3.bf16.msra.mxu0 %v8682_v51  ;;  %7873 = vmatprep.subr.bf16.mxu1 %v8683_v19 }
 0x649   :  { %7895 = vmatprep.subr.bf16.mxu0 %v8684_v11 }
 0x64b   :  { %7874 = vmatpush3.bf16.msra.mxu1 %v8685_v20 }
 0x64c   :  { %7896 = vmatpush3.bf16.msra.mxu0 %v8686_v57  ;;  %7875 = vmatprep.subr.bf16.mxu1 %v8687_v61 }
 0x64d   :  { %7897 = vmatprep.subr.bf16.mxu0 %v8688_v54 }
 0x64f   :  { %7876 = vmatpush3.bf16.msra.mxu1 %v8689_v26 }
 0x650   :  { %7898 = vmatpush3.bf16.msra.mxu0 %v8690_v36  ;;  %7877 = vmatprep.subr.bf16.mxu1 %v8691_v50 }
 0x651   :  { %7899 = vmatprep.subr.bf16.mxu0 %v8692_v53 }
 0x653   :  { %7878 = vmatpush3.bf16.msra.mxu1 %v8693_v23 }
 0x654   :  { %7900 = vmatpush3.bf16.msra.mxu0 %v8694_v58 }
 0x656   :  { %v6202_v10 = vpop.f32.mrf.mxu1  ;;  %6541 = vmatmul.mubr.bf16.vlgmr.msra.gmra.mxu1 %v9242_v37 }
 0x657   :  { %v6245_v25 = vpop.f32.mrf.mxu0  ;;  %6582 = vmatmul.mubr.bf16.vlgmr.msra.gmra.mxu0 %v9248_v47  ;;  %v6203_v63 = vadd.f32 %v6202_v10, %v6160_v55 }
 0x658   :  { %v6204_v31 = vpop.f32.mrf.mxu1 }
 0x659   :  { %v6247_v32 = vpop.f32.mrf.mxu0  ;;  %v6205_v7 = vadd.f32 %v6204_v31, %v6162_v27  ;;  %v6246_v0 = vadd.f32 %v6245_v25, %v6203_v63 }
 0x65a   :  { %v6206_v16 = vpop.f32.mrf.mxu1 }
 0x65b   :  { %v6249_v17 = vpop.f32.mrf.mxu0  ;;  %v6207_v42 = vadd.f32 %v6206_v16, %v6164_v60  ;;  %v6248_v52 = vadd.f32 %v6247_v32, %v6205_v7 }
 0x65c   :  { %v6208_v24 = vpop.f32.mrf.mxu1 }
 0x65d   :  { %v6250_v15 = vadd.f32 %v6249_v17, %v6207_v42  ;;  %v6209_v39 = vadd.f32 %v6208_v24, %v6166_v40  ;;  %v6251_v8 = vpop.f32.mrf.mxu0  ;;  %v6804_v17 = vrot.slane %v8973_v1, %v9286_v46 }
 0x65f   :  { %v6604_v37 = vadd.f32 %v6250_v15, %v6246_v0  ;;  %v6252_v43 = vadd.f32 %v6251_v8, %v6209_v39 }
 0x661   :  { %v6605_v21 = vrot.slane %v6604_v37, 4  ;;  %v6611_v47 = vadd.f32 %v6252_v43, %v6248_v52 }
 0x663   :  { %v6606_v34 = vadd.f32 %v6605_v21, %v6604_v37  ;;  %v6612_v13 = vrot.slane %v6611_v47, 4 }
 0x665   :  { %v6607_v22 = vrot.slane %v6606_v34, 2  ;;  %v6613_v59 = vadd.f32 %v6612_v13, %v6611_v47 }
 0x667   :  { %v6608_v44 = vadd.f32 %v6607_v22, %v6606_v34  ;;  %v6614_v18 = vrot.slane %v6613_v59, 2 }
 0x669   :  { %v6609_v12 = vrot.slane %v6608_v44, 1  ;;  %v6615_v41 = vadd.f32 %v6614_v18, %v6613_v59 }
 0x66b   :  { %v6610_v38 = vadd.f32 %v6609_v12, %v6608_v44  ;;  %v6616_v14 = vrot.slane %v6615_v41, 1 }
 0x66d   :  { %v6641_v49 = vmul.f32 0.0625, %v6610_v38  ;;  %v6617_v48 = vadd.f32 %v6616_v14, %v6615_v41 }
 0x66f   :  { %v6648_v45 = vsub.f32 %v6246_v0, %v6641_v49  ;;  %v6655_v51 = vsub.f32 %v6250_v15, %v6641_v49  ;;  %v6642_v19 = vmul.f32 0.0625, %v6617_v48  ;;  %v6808_v0 = vrot.slane %v8975_v2, %v9286_v46 }
 0x671   :  { %v6662_v11 = vmul.f32 %v6648_v45, %v6648_v45  ;;  %v6669_v20 = vmul.f32 %v6655_v51, %v6655_v51  ;;  %v6649_v6 = vsub.f32 %v6248_v52, %v6642_v19  ;;  %v6656_v28 = vsub.f32 %v6252_v43, %v6642_v19 }
 0x673   :  { %v6688_v57 = vadd.f32 %v6669_v20, %v6662_v11  ;;  %v6663_v61 = vmul.f32 %v6649_v6, %v6649_v6  ;;  %v6670_v54 = vmul.f32 %v6656_v28, %v6656_v28 }
 0x675   :  { %v6689_v26 = vrot.slane %v6688_v57, 4  ;;  %v6695_v30 = vadd.f32 %v6670_v54, %v6663_v61 }
 0x677   :  { %v6690_v35 = vadd.f32 %v6689_v26, %v6688_v57  ;;  %v6696_v36 = vrot.slane %v6695_v30, 4 }
 0x679   :  { %v6691_v50 = vrot.slane %v6690_v35, 2  ;;  %v6697_v53 = vadd.f32 %v6696_v36, %v6695_v30 }
 0x67b   :  { %v6692_v23 = vadd.f32 %v6691_v50, %v6690_v35  ;;  %v6698_v33 = vrot.slane %v6697_v53, 2 }
 0x67d   :  { %v6693_v9 = vrot.slane %v6692_v23, 1  ;;  %v6699_v58 = vadd.f32 %v6698_v33, %v6697_v53 }
 0x67f   :  { %v6694_v29 = vadd.f32 %v6693_v9, %v6692_v23  ;;  %v6700_v56 = vrot.slane %v6699_v58, 1 }
 0x681   :  { %v6725_v10 = vmul.f32 0.0625, %v6694_v29  ;;  %v6701_v25 = vadd.f32 %v6700_v56, %v6699_v58 }
 0x683   :  { %v6732_v55 = vadd.f32 1e-05, %v6725_v10  ;;  %v6726_v31 = vmul.f32 0.0625, %v6701_v25 }
 0x685   :  { %8715 = vrsqrt.f32 %v6732_v55  ;;  %v6733_v32 = vadd.f32 1e-05, %v6726_v31 }
 0x687   :  { %8717 = vrsqrt.f32 %v6733_v32 }
 0x692   :  { %v8716_v27 = vpop.eup %8715 }
 0x693   :  { %v6746_v60 = vmul.f32 %v8716_v27, %v8973_v1 }
 0x694   :  { %v8718_v63 = vpop.eup %8717 }
 0x695   :  { %v6762_v16 = vrot.slane %v6746_v60, %v9283_v62  ;;  %v6747_v40 = vmul.f32 %v8718_v63, %v8975_v2 }
 0x696   :  { %v6288_v19 = vpop.f32.mrf.mxu1 }
 0x697   :  { %v6781_v7 = vmul.f32 %v6762_v16, %v6648_v45  ;;  %v6788_v42 = vmul.f32 %v6762_v16, %v6655_v51  ;;  %v6766_v24 = vrot.slane %v6747_v40, %v9283_v62  ;;  %v6331_v11 = vpop.f32.mrf.mxu0 }
 0x698   :  { %v6290_v20 = vpop.f32.mrf.mxu1  ;;  %v6332_v35 = vadd.f32 %v6331_v11, %v6288_v19 }
 0x699   :  { %v6823_v15 = vadd.f32 %v6804_v17, %v6781_v7  ;;  %v6830_v39 = vadd.f32 %v6804_v17, %v6788_v42  ;;  %v6782_v8 = vmul.f32 %v6766_v24, %v6649_v6  ;;  %v6789_v52 = vmul.f32 %v6766_v24, %v6656_v28  ;;  %v6333_v6 = vpop.f32.mrf.mxu0 }
 0x69a   :  { %v6292_v28 = vpop.f32.mrf.mxu1  ;;  %v6334_v53 = vadd.f32 %v6333_v6, %v6290_v20 }
 0x69b   :  { %v7788_v37 = vmul.f32 -1.442695, %v6823_v15  ;;  %v7795_v43 = vmul.f32 -1.442695, %v6830_v39  ;;  %v6824_v21 = vadd.f32 %v6808_v0, %v6782_v8  ;;  %v6831_v47 = vadd.f32 %v6808_v0, %v6789_v52  ;;  %v6335_v57 = vpop.f32.mrf.mxu0 }
 0x69c   :  { %v6294_v61 = vpop.f32.mrf.mxu1  ;;  %v6336_v23 = vadd.f32 %v6335_v57, %v6292_v28 }
 0x69d   :  { %8719 = vpow2.f32 %v7788_v37  ;;  %v7789_v34 = vmul.f32 -1.442695, %v6824_v21  ;;  %v7796_v1 = vmul.f32 -1.442695, %v6831_v47  ;;  %v6337_v54 = vpop.f32.mrf.mxu0 }
 0x69e   :  { %8721 = vpow2.f32 %v7795_v43  ;;  %v6338_v29 = vadd.f32 %v6337_v54, %v6294_v61 }
 0x69f   :  { %8723 = vpow2.f32 %v7789_v34 }
 0x6a0   :  { %8725 = vpow2.f32 %v7796_v1 }
 0x6aa   :  { %v8720_v13 = vpop.eup %8719 }
 0x6ab   :  { %v8722_v22 = vpop.eup %8721  ;;  %v6879_v59 = vadd.f32 1.0, %v8720_v13 }
 0x6ac   :  { %v8724_v44 = vpop.eup %8723  ;;  %v6886_v18 = vadd.f32 1.0, %v8722_v22 }
 0x6ad   :  { %v8726_v2 = vpop.eup %8725  ;;  %8727 = vrcp.f32 %v6879_v59  ;;  %v6880_v12 = vadd.f32 1.0, %v8724_v44 }
 0x6ae   :  { %8729 = vrcp.f32 %v6886_v18  ;;  %v6887_v41 = vadd.f32 1.0, %v8726_v2 }
 0x6af   :  { %8731 = vrcp.f32 %v6880_v12 }
 0x6b0   :  { %8733 = vrcp.f32 %v6887_v41 }
 0x6ba   :  { %v8728_v38 = vpop.eup %8727 }
 0x6bb   :  { %v8730_v14 = vpop.eup %8729 }
 0x6bc   :  { %v8732_v49 = vpop.eup %8731 }
 0x6bd   :  { %v8734_v48 = vpop.eup %8733  ;;  %v7812_v45 = vpack.c.bf16 %v8732_v49, %v8728_v38 }
 0x6be   :  { %v7816_v51 = vpack.c.bf16 %v8734_v48, %v8730_v14 }
 0x6bf   :  { %6964 = vst [vmem:[#allocation12 + $0x8] sm:$0xff] %v7812_v45 }
 0x6c0   :  { %6968 = vst [vmem:[#allocation12 + $0x24] sm:$0xff] %v7816_v51 }
 0x6d6   :  { %v6374_v26 = vpop.f32.mrf.mxu1 }
 0x6d7   :  { %v6417_v30 = vpop.f32.mrf.mxu0  ;;  %v6375_v33 = vadd.f32 %v6374_v26, %v6332_v35 }
 0x6d8   :  { %v6376_v36 = vpop.f32.mrf.mxu1 }
 0x6d9   :  { %v6419_v50 = vpop.f32.mrf.mxu0  ;;  %v6377_v56 = vadd.f32 %v6376_v36, %v6334_v53  ;;  %v6418_v55 = vadd.f32 %v6417_v30, %v6375_v33 }
 0x6da   :  { %v6378_v9 = vpop.f32.mrf.mxu1 }
 0x6db   :  { %v6421_v58 = vpop.f32.mrf.mxu0  ;;  %v6379_v10 = vadd.f32 %v6378_v9, %v6336_v23  ;;  %v6420_v60 = vadd.f32 %v6419_v50, %v6377_v56 }
 0x6dc   :  { %v6380_v25 = vpop.f32.mrf.mxu1 }
 0x6dd   :  { %v6422_v31 = vadd.f32 %v6421_v58, %v6379_v10  ;;  %v6381_v32 = vadd.f32 %v6380_v25, %v6338_v29  ;;  %v6423_v27 = vpop.f32.mrf.mxu0 }
 0x6df   :  { %v6618_v63 = vadd.f32 %v6422_v31, %v6418_v55  ;;  %v6424_v16 = vadd.f32 %v6423_v27, %v6381_v32 }
 0x6e1   :  { %v6619_v17 = vrot.slane %v6618_v63, 4  ;;  %v6625_v40 = vadd.f32 %v6424_v16, %v6420_v60 }
 0x6e3   :  { %v6620_v7 = vadd.f32 %v6619_v17, %v6618_v63  ;;  %v6626_v42 = vrot.slane %v6625_v40, 4 }
 0x6e5   :  { %v6621_v24 = vrot.slane %v6620_v7, 2  ;;  %v6627_v0 = vadd.f32 %v6626_v42, %v6625_v40 }
 0x6e7   :  { %v6622_v15 = vadd.f32 %v6621_v24, %v6620_v7  ;;  %v6628_v39 = vrot.slane %v6627_v0, 2  ;;  %v6816_v7 = vrot.slane %v8979_v4, %v9286_v46 }
 0x6e9   :  { %v6623_v8 = vrot.slane %v6622_v15, 1  ;;  %v6629_v52 = vadd.f32 %v6628_v39, %v6627_v0 }
 0x6eb   :  { %v6624_v37 = vadd.f32 %v6623_v8, %v6622_v15  ;;  %v6630_v43 = vrot.slane %v6629_v52, 1 }
 0x6ed   :  { %v6643_v21 = vmul.f32 0.0625, %v6624_v37  ;;  %v6631_v47 = vadd.f32 %v6630_v43, %v6629_v52 }
 0x6ef   :  { %v6650_v34 = vsub.f32 %v6418_v55, %v6643_v21  ;;  %v6657_v1 = vsub.f32 %v6422_v31, %v6643_v21  ;;  %v6644_v13 = vmul.f32 0.0625, %v6631_v47  ;;  %v6812_v55 = vrot.slane %v8977_v3, %v9286_v46 }
 0x6f1   :  { %v6664_v22 = vmul.f32 %v6650_v34, %v6650_v34  ;;  %v6671_v59 = vmul.f32 %v6657_v1, %v6657_v1  ;;  %v6651_v44 = vsub.f32 %v6420_v60, %v6644_v13  ;;  %v6658_v18 = vsub.f32 %v6424_v16, %v6644_v13 }
 0x6f3   :  { %v6702_v2 = vadd.f32 %v6671_v59, %v6664_v22  ;;  %v6665_v12 = vmul.f32 %v6651_v44, %v6651_v44  ;;  %v6672_v41 = vmul.f32 %v6658_v18, %v6658_v18 }
 0x6f5   :  { %v6703_v38 = vrot.slane %v6702_v2, 4  ;;  %v6709_v14 = vadd.f32 %v6672_v41, %v6665_v12 }
 0x6f6   :  { %v7835_v36 = vpop.f32.mrf.mxu1 }
 0x6f7   :  { %v6704_v49 = vadd.f32 %v6703_v38, %v6702_v2  ;;  %v6710_v48 = vrot.slane %v6709_v14, 4  ;;  %v7857_v50 = vpop.f32.mrf.mxu0 }
 0x6f8   :  { %v7836_v53 = vpop.f32.mrf.mxu1 }
 0x6f9   :  { %v6705_v45 = vrot.slane %v6704_v49, 2  ;;  %v6711_v51 = vadd.f32 %v6710_v48, %v6709_v14  ;;  %v7858_v23 = vpop.f32.mrf.mxu0  ;;  %v7837_v27 = vadd.f32 %v7836_v53, %v7835_v36 }
 0x6fa   :  { %v7838_v33 = vpop.f32.mrf.mxu1  ;;  %v7859_v60 = vadd.f32 %v7858_v23, %v7857_v50 }
 0x6fb   :  { %v6706_v19 = vadd.f32 %v6705_v45, %v6704_v49  ;;  %v6712_v11 = vrot.slane %v6711_v51, 2  ;;  %v7860_v9 = vpop.f32.mrf.mxu0 }
 0x6fc   :  { %v7839_v10 = vpop.f32.mrf.mxu1  ;;  %v6502_v43 = vadd.f32 %v7859_v60, %v7837_v27 }
 0x6fd   :  { %v6707_v20 = vrot.slane %v6706_v19, 1  ;;  %v6713_v6 = vadd.f32 %v6712_v11, %v6711_v51  ;;  %v7861_v32 = vpop.f32.mrf.mxu0  ;;  %v7840_v24 = vadd.f32 %v7839_v10, %v7838_v33 }
 0x6fe   :  { %v7862_v0 = vadd.f32 %v7861_v32, %v7860_v9 }
 0x6ff   :  { %v6708_v28 = vadd.f32 %v6707_v20, %v6706_v19  ;;  %v6714_v57 = vrot.slane %v6713_v6, 1 }
 0x700   :  { %v6505_v2 = vadd.f32 %v7862_v0, %v7840_v24 }
 0x701   :  { %v6727_v61 = vmul.f32 0.0625, %v6708_v28  ;;  %v6715_v54 = vadd.f32 %v6714_v57, %v6713_v6 }
 0x703   :  { %v6734_v26 = vadd.f32 1e-05, %v6727_v61  ;;  %v6728_v30 = vmul.f32 0.0625, %v6715_v54 }
 0x705   :  { %8735 = vrsqrt.f32 %v6734_v26  ;;  %v6735_v35 = vadd.f32 1e-05, %v6728_v30 }
 0x707   :  { %8737 = vrsqrt.f32 %v6735_v35 }
 0x712   :  { %v8736_v58 = vpop.eup %8735 }
 0x713   :  { %v6748_v29 = vmul.f32 %v8736_v58, %v8977_v3 }
 0x714   :  { %v8738_v56 = vpop.eup %8737 }
 0x715   :  { %v6770_v25 = vrot.slane %v6748_v29, %v9283_v62  ;;  %v6749_v31 = vmul.f32 %v8738_v56, %v8979_v4 }
 0x716   :  { %v7879_v63 = vpop.f32.mrf.mxu1 }
 0x717   :  { %v6783_v16 = vmul.f32 %v6770_v25, %v6650_v34  ;;  %v6790_v17 = vmul.f32 %v6770_v25, %v6657_v1  ;;  %v6774_v40 = vrot.slane %v6749_v31, %v9283_v62  ;;  %v7901_v42 = vpop.f32.mrf.mxu0 }
 0x718   :  { %v7880_v15 = vpop.f32.mrf.mxu1 }
 0x719   :  { %v6825_v39 = vadd.f32 %v6812_v55, %v6783_v16  ;;  %v6832_v8 = vadd.f32 %v6812_v55, %v6790_v17  ;;  %v6784_v3 = vmul.f32 %v6774_v40, %v6651_v44  ;;  %v6791_v52 = vmul.f32 %v6774_v40, %v6658_v18  ;;  %v7902_v37 = vpop.f32.mrf.mxu0 }
 0x71a   :  { %v7881_v21 = vadd.f32 %v7880_v15, %v7879_v63  ;;  %v7882_v47 = vpop.f32.mrf.mxu1  ;;  %v7903_v44 = vadd.f32 %v7902_v37, %v7901_v42 }
 0x71b   :  { %v7790_v13 = vmul.f32 -1.442695, %v6825_v39  ;;  %v7797_v34 = vmul.f32 -1.442695, %v6832_v8  ;;  %v6826_v1 = vadd.f32 %v6816_v7, %v6784_v3  ;;  %v6833_v22 = vadd.f32 %v6816_v7, %v6791_v52  ;;  %v7904_v59 = vpop.f32.mrf.mxu0 }
 0x71c   :  { %v6543_v12 = vadd.f32 %v7881_v21, %v6502_v43  ;;  %v7883_v4 = vpop.f32.mrf.mxu1  ;;  %v6820_v3 = vrot.slane %v8981_v5, %v9286_v46 }
 0x71d   :  { %8739 = vpow2.f32 %v7790_v13  ;;  %v7791_v41 = vmul.f32 -1.442695, %v6826_v1  ;;  %v7798_v38 = vmul.f32 -1.442695, %v6833_v22  ;;  %v7884_v14 = vadd.f32 %v7883_v4, %v7882_v47  ;;  %v7905_v49 = vpop.f32.mrf.mxu0 }
 0x71e   :  { %8741 = vpow2.f32 %v7797_v34  ;;  %v7906_v48 = vadd.f32 %v7905_v49, %v7904_v59  ;;  %v6584_v45 = vadd.f32 %v7903_v44, %v6543_v12 }
 0x71f   :  { %8743 = vpow2.f32 %v7791_v41  ;;  %v6546_v18 = vadd.f32 %v7884_v14, %v6505_v2 }
 0x720   :  { %8745 = vpow2.f32 %v7798_v38 }
 0x721   :  { %v6587_v51 = vadd.f32 %v7906_v48, %v6546_v18 }
 0x723   :  { %v6632_v19 = vadd.f32 %v6587_v51, %v6584_v45 }
 0x725   :  { %v6633_v11 = vrot.slane %v6632_v19, 4 }
 0x727   :  { %v6634_v20 = vadd.f32 %v6633_v11, %v6632_v19 }
 0x729   :  { %v6635_v6 = vrot.slane %v6634_v20, 2 }
 0x72a   :  { %v8740_v28 = vpop.eup %8739 }
 0x72b   :  { %v8742_v57 = vpop.eup %8741  ;;  %v6881_v61 = vadd.f32 1.0, %v8740_v28  ;;  %v6636_v54 = vadd.f32 %v6635_v6, %v6634_v20 }
 0x72c   :  { %v8744_v26 = vpop.eup %8743  ;;  %v6888_v30 = vadd.f32 1.0, %v8742_v57 }
 0x72d   :  { %v8746_v35 = vpop.eup %8745  ;;  %8747 = vrcp.f32 %v6881_v61  ;;  %v6882_v36 = vadd.f32 1.0, %v8744_v26  ;;  %v6637_v50 = vrot.slane %v6636_v54, 1 }
 0x72e   :  { %8749 = vrcp.f32 %v6888_v30  ;;  %v6889_v53 = vadd.f32 1.0, %v8746_v35 }
 0x72f   :  { %8751 = vrcp.f32 %v6882_v36  ;;  %v6638_v23 = vadd.f32 %v6637_v50, %v6636_v54 }
 0x730   :  { %8753 = vrcp.f32 %v6889_v53 }
 0x731   :  { %v6645_v33 = vmul.f32 0.0625, %v6638_v23 }
 0x733   :  { %v6652_v9 = vsub.f32 %v6584_v45, %v6645_v33  ;;  %v6659_v58 = vsub.f32 %v6587_v51, %v6645_v33 }
 0x735   :  { %v6666_v29 = vmul.f32 %v6652_v9, %v6652_v9  ;;  %v6673_v56 = vmul.f32 %v6659_v58, %v6659_v58 }
 0x737   :  { %v6716_v10 = vadd.f32 %v6673_v56, %v6666_v29 }
 0x739   :  { %v6717_v25 = vrot.slane %v6716_v10, 4 }
 0x73a   :  { %v8748_v55 = vpop.eup %8747 }
 0x73b   :  { %v8750_v31 = vpop.eup %8749  ;;  %v6718_v32 = vadd.f32 %v6717_v25, %v6716_v10 }
 0x73c   :  { %v8752_v27 = vpop.eup %8751 }
 0x73d   :  { %v8754_v60 = vpop.eup %8753  ;;  %v7813_v63 = vpack.c.bf16 %v8752_v27, %v8748_v55  ;;  %v6719_v16 = vrot.slane %v6718_v32, 2 }
 0x73e   :  { %v7817_v17 = vpack.c.bf16 %v8754_v60, %v8750_v31 }
 0x73f   :  { %6965 = vst [vmem:[#allocation12 + $0x10] sm:$0xff] %v7813_v63  ;;  %v6720_v40 = vadd.f32 %v6719_v16, %v6718_v32 }
 0x740   :  { %6969 = vst [vmem:[#allocation12 + $0x2c] sm:$0xff] %v7817_v17 }
 0x741   :  { %v6721_v7 = vrot.slane %v6720_v40, 1 }
 0x743   :  { %v6722_v42 = vadd.f32 %v6721_v7, %v6720_v40 }
 0x745   :  { %v6729_v24 = vmul.f32 0.0625, %v6722_v42 }
 0x747   :  { %v6736_v0 = vadd.f32 1e-05, %v6729_v24 }
 0x749   :  { %8755 = vrsqrt.f32 %v6736_v0 }
 0x756   :  { %v8756_v15 = vpop.eup %8755 }
 0x757   :  { %v6750_v39 = vmul.f32 %v8756_v15, %v8981_v5 }
 0x759   :  { %v6778_v8 = vrot.slane %v6750_v39, %v9283_v62 }
 0x75b   :  { %v6785_v52 = vmul.f32 %v6778_v8, %v6652_v9  ;;  %v6792_v37 = vmul.f32 %v6778_v8, %v6659_v58 }
 0x75d   :  { %v6827_v43 = vadd.f32 %v6820_v3, %v6785_v52  ;;  %v6834_v21 = vadd.f32 %v6820_v3, %v6792_v37 }
 0x75f   :  { %v7792_v47 = vmul.f32 -1.442695, %v6827_v43  ;;  %v7799_v13 = vmul.f32 -1.442695, %v6834_v21 }
 0x761   :  { %8757 = vpow2.f32 %v7792_v47 }
 0x762   :  { %8759 = vpow2.f32 %v7799_v13 }
 0x76e   :  { %v8758_v34 = vpop.eup %8757 }
 0x76f   :  { %v8760_v1 = vpop.eup %8759  ;;  %v6883_v22 = vadd.f32 1.0, %v8758_v34 }
 0x770   :  { %v6890_v59 = vadd.f32 1.0, %v8760_v1 }
 0x771   :  { %8761 = vrcp.f32 %v6883_v22 }
 0x772   :  { %8763 = vrcp.f32 %v6890_v59 }
 0x77e   :  { %v8762_v62 = vpop.eup %8761 }
 0x77f   :  { %v8764_v2 = vpop.eup %8763  ;;  %v7814_v12 = vpack.c.bf16 %v8762_v62, %v8762_v62 }
 0x780   :  { %v7818_v5 = vpack.c.bf16 %v8764_v2, %v8764_v2 }
 0x781   :  { %6966 = vst [vmem:[#allocation12 + $0x18] sm:$0xf] %v7814_v12 }
 0x782   :  { %6970 = vst [vmem:[#allocation12 + $0x34] sm:$0xf] %v7818_v5 }
 0x783   :  { %8896 = shalt.err (!%p8893_p6)
}
 0x784   :  { %s8927_s26 = smov 448   ;;  %s8928_s27 = smov 28  }
 0x785   :  { %6982 = dma.vmem_to_hbm [thread:$0]  %s6977_s5, 896, %s9339_s6, [#allocation8], %s8927_s26, %s8927_s26, %s8928_s27  }
 0x786   :  { %8915 = dma.done.wait [#allocation8], 896  }
 0x787   :  { %8916 = vsyncadd [#allocation8], 4294966400 }
 0x788   :  { %6986 = vsyncpa [#allocation7], 1 }
 0x789   :  { %6987 = vsyncpa [#allocation10], 1 }
 0x78a   :  { %6988 = vsyncpa [#allocation8], 1 }
 0x78b   :  { %6989 = vsyncmov [#allocation5] }
 0x78e   :  { %s6990_s30 = vpop.sfrf %6989 }
 0x78f   :  { %p7808_p7 = scmp.ne.s32.totalorder %s6990_s30, 0 }
 0x791   :  { %6994 = shalt.err (%p7808_p7)  }
 0x792   :  { %6996 = vsyncmov [#allocation5 + $0x1] }
 0x795   :  { %s6997_s7 = vpop.sfrf %6996 }
 0x796   :  { %p7809_p8 = scmp.ne.s32.totalorder %s6997_s7, 0 }
 0x798   :  { %7001 = shalt.err (%p7809_p8)  }
 0x799   :  { %7003 = vsyncmov [#allocation5 + $0x2] }
 0x79c   :  { %s7004_s8 = vpop.sfrf %7003 }
 0x79d   :  { %p7810_p9 = scmp.ne.s32.totalorder %s7004_s8, 0 }
 0x79f   :  { %7008 = shalt.err (%p7810_p9)  }

</bundles_post_ra>
